<compile_context>
chip_gen: v6e
topology: v6e:2x2x1
jax: 0.10.0
libtpu: 0.0.40
codegen_flags: <defaults>
</compile_context>

<pallas_src>
import functools

import jax
import jax.numpy as jnp
from jax import lax
from jax.experimental import pallas as pl
from jax.experimental.pallas import tpu as pltpu


# (cin, cout, temporal_kernel) for the 4 st_gcn_layers of the PyTorch module.
LAYER_CFG = [(3, 64, 3), (64, 64, 1), (64, 128, 3), (128, 128, 1)]
NUM_CLASSES = 5
K0_PAD = 16      # layer-0 im2col K: 3 taps * 3 channels = 9 -> pad to 16
OUT_PAD = 128    # fc output lanes padded 5 -> 128 for an unmasked final store


# ---------------------------------------------------------------------------
# Fused kernel: 4x (conv + ReLU) + global avg pool + fc, B samples per step.
# ---------------------------------------------------------------------------
def _stgcn_fused_kernel(x_ref, w0_ref, b0_ref, w1_ref, b1_ref, w2_ref, b2_ref,
                        w3_ref, b3_ref, fw_ref, fb_ref, p_ref, o_ref,
                        apad_ref, *, t, v_pad, bb, inv_pool):
    f32, bf16 = jnp.float32, jnp.bfloat16
    tv = t * v_pad
    rows = bb * tv

    # ---- layer 0: Conv2d(3->64, kernel (3,1), padding (1,0)) + ReLU ----
    # Temporal taps were pre-gathered (im2col) in the wrapper -> one K=16 dot.
    x0 = x_ref[...]                                               # (rows, 16)
    a1 = jnp.maximum(
        jnp.dot(x0, w0_ref[...], preferred_element_type=f32) + b0_ref[...],
        0.0).astype(bf16)                                         # (rows, 64)

    # ---- layer 1: Conv2d(64->64, 1x1) + ReLU ----
    a2 = jnp.maximum(
        jnp.dot(a1, w1_ref[...], preferred_element_type=f32) + b1_ref[...],
        0.0).astype(bf16)                                         # (rows, 64)

    # ---- layer 2: Conv2d(64->128, kernel (3,1), padding (1,0)) + ReLU ----
    # Stage a2 with one zero frame (v_pad rows) on each side of every sample.
    # Only the 2*v_pad pad rows are zeroed; all shift offsets (0/32/64 rows)
    # are multiples of the bf16 sublane pack, so reads/stores stay aligned.
    zpad = jnp.zeros((bb, v_pad, 64), bf16)
    apad_ref[:, 0:v_pad, :] = zpad
    apad_ref[:, tv + v_pad:tv + 2 * v_pad, :] = zpad
    apad_ref[:, v_pad:v_pad + tv, :] = a2.reshape(bb, tv, 64)

    acc = jnp.dot(apad_ref[:, 0:tv, :].reshape(rows, 64), w2_ref[0],
                  preferred_element_type=f32)
    acc = acc + jnp.dot(apad_ref[:, v_pad:v_pad + tv, :].reshape(rows, 64),
                        w2_ref[1], preferred_element_type=f32)
    acc = acc + jnp.dot(apad_ref[:, 2 * v_pad:2 * v_pad + tv, :].reshape(rows, 64),
                        w2_ref[2], preferred_element_type=f32)
    a3 = jnp.maximum(acc + b2_ref[...], 0.0).astype(bf16)         # (rows, 128)

    # ---- layer 3: Conv2d(128->128, 1x1) + ReLU ----
    # Single bf16 cast right after the ReLU; the pool matmul below therefore
    # uses bf16 operands with f32 accumulation.
    a4 = jnp.maximum(
        jnp.dot(a3, w3_ref[...], preferred_element_type=f32) + b3_ref[...],
        0.0).astype(bf16)                                         # (rows, 128)

    # ---- AdaptiveAvgPool2d((1,1)): per-sample masked mean on the MXU ----
    # p_ref is a (bb, rows) block-diagonal 0/1 mask selecting each sample's
    # real T*V joint rows (padded joints excluded); the 1/(T*V) scale is f32.
    pooled = jnp.dot(p_ref[...], a4, preferred_element_type=f32) * inv_pool

    # ---- fc: Linear(128 -> num_classes), lanes padded to 128 ----
    o_ref[...] = (jnp.dot(pooled.astype(bf16), fw_ref[...],
                          preferred_element_type=f32) + fb_ref[...])


# ---------------------------------------------------------------------------
# Parameters (deterministic, synthetic) & forward wrapper
# ---------------------------------------------------------------------------
def init_params(key):
    params = {"layers": []}
    for cin, cout, k in LAYER_CFG:
        key, kw, kb = jax.random.split(key, 3)
        w = (jax.random.normal(kw, (k, cin, cout), jnp.float32)
             * 0.1).astype(jnp.bfloat16)
        b = jax.random.normal(kb, (1, cout), jnp.float32) * 0.1
        params["layers"].append((w, b, k))
    key, kw, kb = jax.random.split(key, 3)
    params["fc_w"] = (jax.random.normal(kw, (128, NUM_CLASSES), jnp.float32)
                      * 0.1).astype(jnp.bfloat16)
    params["fc_b"] = jax.random.normal(kb, (1, NUM_CLASSES), jnp.float32) * 0.1
    return params


def stgcn_forward(x_nchw, params, *, max_block_batch=8):
    n, c, t, v = x_nchw.shape
    v_pad = ((v + 31) // 32) * 32      # 25 -> 32: one time-step shift = 32 rows
    tv = t * v_pad
    bb = min(n, max_block_batch)       # samples per grid step (whole batch here)
    n_pad = -(-n // bb) * bb

    # NCHW -> (N, T, V, C); pad joints V -> v_pad with zeros.
    x = jnp.transpose(x_nchw, (0, 2, 3, 1))
    x = jnp.pad(x, ((0, 0), (0, 0), (0, v_pad - v), (0, 0)))
    # im2col of layer 0's (3,1) temporal kernel: frames t-1 / t / t+1 stacked
    # along channels (zero frames at the sequence ends), K padded 9 -> 16.
    x_prev = jnp.pad(x, ((0, 0), (1, 0), (0, 0), (0, 0)))[:, :t]
    x_next = jnp.pad(x, ((0, 0), (0, 1), (0, 0), (0, 0)))[:, 1:]
    x_cat = jnp.concatenate([x_prev, x, x_next], axis=-1)           # (N,T,Vp,9)
    x_cat = jnp.pad(x_cat, ((0, n_pad - n), (0, 0), (0, 0),
                            (0, K0_PAD - 3 * c)))
    x_cat = x_cat.reshape(n_pad * tv, K0_PAD).astype(jnp.bfloat16)

    (w0, b0, _), (w1, b1, _), (w2, b2, _), (w3, b3, _) = params["layers"]
    # Stack the 3 temporal taps of w0 along K to match the im2col layout.
    w0_cat = jnp.pad(jnp.concatenate([w0[0], w0[1], w0[2]], axis=0),
                     ((0, K0_PAD - 3 * c), (0, 0)))                  # (16, 64)
    w1k, w3k = w1[0], w3[0]                                          # (64,64),(128,128)
    fw = jnp.pad(params["fc_w"], ((0, 0), (0, OUT_PAD - NUM_CLASSES)))
    fb = jnp.pad(params["fc_b"], ((0, 0), (0, OUT_PAD - NUM_CLASSES)))

    # Block-diagonal pooling mask: row b selects the real V joints of sample b
    # within the block (padded joints / other samples are 0). Exact in bf16.
    joint_mask = (jnp.arange(tv) % v_pad < v).astype(jnp.float32)[None, :]
    pool_p = jnp.kron(jnp.eye(bb, dtype=jnp.float32),
                      joint_mask).astype(jnp.bfloat16)               # (bb, bb*tv)

    args = (x_cat, w0_cat, b0, w1k, b1, w2, b2, w3k, b3, fw, fb, pool_p)
    rows_total = n_pad * tv
    flops = (2 * rows_total * (K0_PAD * 64 + 64 * 64 + 3 * 64 * 128
                               + 128 * 128 + 128)
             + 2 * n_pad * 128 * OUT_PAD)
    bytes_accessed = (sum(int(a.size) * a.dtype.itemsize for a in args)
                      + n_pad * OUT_PAD * 4)

    kernel = functools.partial(_stgcn_fused_kernel, t=t, v_pad=v_pad, bb=bb,
                               inv_pool=1.0 / (t * v))
    out = pl.pallas_call(
        kernel,
        out_shape=jax.ShapeDtypeStruct((n_pad, OUT_PAD), jnp.float32),
        grid=(n_pad // bb,),
        in_specs=[
            pl.BlockSpec((bb * tv, K0_PAD), lambda i: (i, 0)),       # x (im2col)
            pl.BlockSpec((K0_PAD, 64), lambda i: (0, 0)),            # w0_cat
            pl.BlockSpec((1, 64), lambda i: (0, 0)),                 # b0
            pl.BlockSpec((64, 64), lambda i: (0, 0)),                # w1
            pl.BlockSpec((1, 64), lambda i: (0, 0)),                 # b1
            pl.BlockSpec((3, 64, 128), lambda i: (0, 0, 0)),         # w2
            pl.BlockSpec((1, 128), lambda i: (0, 0)),                # b2
            pl.BlockSpec((128, 128), lambda i: (0, 0)),              # w3
            pl.BlockSpec((1, 128), lambda i: (0, 0)),                # b3
            pl.BlockSpec((128, OUT_PAD), lambda i: (0, 0)),          # fc_w
            pl.BlockSpec((1, OUT_PAD), lambda i: (0, 0)),            # fc_b
            pl.BlockSpec((bb, bb * tv), lambda i: (0, 0)),           # pool mask
        ],
        out_specs=pl.BlockSpec((bb, OUT_PAD), lambda i: (i, 0)),
        scratch_shapes=[
            pltpu.VMEM((bb, tv + 2 * v_pad, 64), jnp.bfloat16),      # padded a2
        ],
        compiler_params=pltpu.CompilerParams(
            dimension_semantics=("parallel",)),
        cost_estimate=pl.CostEstimate(
            flops=flops, transcendentals=0, bytes_accessed=bytes_accessed),
    )(*args)
    return out[:n, :NUM_CLASSES]


def reference_forward(x_nchw, params):
    # Pure-JAX f32 reference replicating the PyTorch NCHW semantics.
    x = x_nchw.astype(jnp.float32)
    for (w, b, k) in params["layers"]:
        w_oihw = jnp.transpose(w.astype(jnp.float32), (2, 1, 0))[:, :, :, None]
        x = lax.conv_general_dilated(
            x, w_oihw, window_strides=(1, 1),
            padding=((k // 2, k // 2), (0, 0)),
            dimension_numbers=("NCHW", "OIHW", "NCHW"))
        x = jnp.maximum(x + b[0][None, :, None, None], 0.0)
    pooled = jnp.mean(x, axis=(2, 3))
    return pooled @ params["fc_w"].astype(jnp.float32) + params["fc_b"]


if __name__ == "__main__":
    key = jax.random.PRNGKey(0)
    key, kx = jax.random.split(key)
    # small NCHW input: batch=2, in_channels=3, T=8 frames, V=25 joints
    x = jax.random.normal(kx, (2, 3, 8, 25), jnp.float32)
    params = init_params(key)

    fwd = jax.jit(stgcn_forward)
    out = jax.block_until_ready(fwd(x, params))

    ref = reference_forward(x, params)
    assert out.shape == (2, NUM_CLASSES)
    # bf16 matmul operands + f32 accumulation vs. pure-f32 reference.
    assert jnp.allclose(out, ref, rtol=5e-2, atol=5e-2), "mismatch vs reference"

    print("KERNEL_OK")
</pallas_src>

<mosaic_0001>
module attributes {stable_mosaic.version = 11 : i64} {
  func.func @_stgcn_fused_kernel(%arg0: i32, %arg1: memref<512x16xbf16, #tpu.memory_space<vmem>>, %arg2: memref<16x64xbf16, #tpu.memory_space<vmem>>, %arg3: memref<1x64xf32, #tpu.memory_space<vmem>>, %arg4: memref<64x64xbf16, #tpu.memory_space<vmem>>, %arg5: memref<1x64xf32, #tpu.memory_space<vmem>>, %arg6: memref<3x64x128xbf16, #tpu.memory_space<vmem>>, %arg7: memref<1x128xf32, #tpu.memory_space<vmem>>, %arg8: memref<128x128xbf16, #tpu.memory_space<vmem>>, %arg9: memref<1x128xf32, #tpu.memory_space<vmem>>, %arg10: memref<128x128xbf16, #tpu.memory_space<vmem>>, %arg11: memref<1x128xf32, #tpu.memory_space<vmem>>, %arg12: memref<2x512xbf16, #tpu.memory_space<vmem>>, %arg13: memref<2x128xf32, #tpu.memory_space<vmem>>, %arg14: memref<2x320x64xbf16, #tpu.memory_space<vmem>>) attributes {dimension_semantics = [#tpu.dimension_semantics<parallel>], iteration_bounds = array<i64: 1>, scalar_prefetch = 0 : i64, scratch_operands = 1 : i64, tpu.core_type = #tpu.core_type<tc>, window_params = [{transform_indices = @transform_0, window_bounds = array<i64: 512, 16>}, {pipeline_mode = #tpu.pipeline_mode<synchronous>, transform_indices = @transform_1, window_bounds = array<i64: 16, 64>}, {pipeline_mode = #tpu.pipeline_mode<synchronous>, transform_indices = @transform_2, window_bounds = array<i64: 1, 64>}, {pipeline_mode = #tpu.pipeline_mode<synchronous>, transform_indices = @transform_3, window_bounds = array<i64: 64, 64>}, {pipeline_mode = #tpu.pipeline_mode<synchronous>, transform_indices = @transform_4, window_bounds = array<i64: 1, 64>}, {pipeline_mode = #tpu.pipeline_mode<synchronous>, transform_indices = @transform_5, window_bounds = array<i64: 3, 64, 128>}, {pipeline_mode = #tpu.pipeline_mode<synchronous>, transform_indices = @transform_6, window_bounds = array<i64: 1, 128>}, {pipeline_mode = #tpu.pipeline_mode<synchronous>, transform_indices = @transform_7, window_bounds = array<i64: 128, 128>}, {pipeline_mode = #tpu.pipeline_mode<synchronous>, transform_indices = @transform_8, window_bounds = array<i64: 1, 128>}, {pipeline_mode = #tpu.pipeline_mode<synchronous>, transform_indices = @transform_9, window_bounds = array<i64: 128, 128>}, {pipeline_mode = #tpu.pipeline_mode<synchronous>, transform_indices = @transform_10, window_bounds = array<i64: 1, 128>}, {pipeline_mode = #tpu.pipeline_mode<synchronous>, transform_indices = @transform_11, window_bounds = array<i64: 2, 512>}, {transform_indices = @transform_12, window_bounds = array<i64: 2, 128>}]} {
    %c0 = arith.constant 0 : index
    %c0_0 = arith.constant 0 : index
    %0 = vector.load %arg1[%c0, %c0_0] : memref<512x16xbf16, #tpu.memory_space<vmem>>, vector<512x16xbf16>
    %c0_1 = arith.constant 0 : index
    %c0_2 = arith.constant 0 : index
    %1 = vector.load %arg2[%c0_1, %c0_2] : memref<16x64xbf16, #tpu.memory_space<vmem>>, vector<16x64xbf16>
    %cst = arith.constant dense<0.000000e+00> : vector<512x64xf32>
    %2 = tpu.matmul %0, %1, %cst {dimension_numbers = #tpu.dot_dimension_numbers<[1], [0], [0], [1], [0, 0, 1, 1], [], []>} : vector<512x16xbf16>, vector<16x64xbf16>, vector<512x64xf32> -> vector<512x64xf32>
    %c0_3 = arith.constant 0 : index
    %c0_4 = arith.constant 0 : index
    %3 = vector.load %arg3[%c0_3, %c0_4] : memref<1x64xf32, #tpu.memory_space<vmem>>, vector<1x64xf32>
    %4 = vector.broadcast %3 : vector<1x64xf32> to vector<512x64xf32>
    %5 = arith.addf %2, %4 : vector<512x64xf32>
    %cst_5 = arith.constant 0.000000e+00 : f32
    %6 = vector.broadcast %cst_5 : f32 to vector<512x64xf32>
    %7 = arith.maximumf %5, %6 : vector<512x64xf32>
    %8 = arith.truncf %7 : vector<512x64xf32> to vector<512x64xbf16>
    %c0_6 = arith.constant 0 : index
    %c0_7 = arith.constant 0 : index
    %9 = vector.load %arg4[%c0_6, %c0_7] : memref<64x64xbf16, #tpu.memory_space<vmem>>, vector<64x64xbf16>
    %cst_8 = arith.constant dense<0.000000e+00> : vector<512x64xf32>
    %10 = tpu.matmul %8, %9, %cst_8 {dimension_numbers = #tpu.dot_dimension_numbers<[1], [0], [0], [1], [0, 0, 1, 1], [], []>} : vector<512x64xbf16>, vector<64x64xbf16>, vector<512x64xf32> -> vector<512x64xf32>
    %c0_9 = arith.constant 0 : index
    %c0_10 = arith.constant 0 : index
    %11 = vector.load %arg5[%c0_9, %c0_10] : memref<1x64xf32, #tpu.memory_space<vmem>>, vector<1x64xf32>
    %12 = vector.broadcast %11 : vector<1x64xf32> to vector<512x64xf32>
    %13 = arith.addf %10, %12 : vector<512x64xf32>
    %cst_11 = arith.constant 0.000000e+00 : f32
    %14 = vector.broadcast %cst_11 : f32 to vector<512x64xf32>
    %15 = arith.maximumf %13, %14 : vector<512x64xf32>
    %16 = arith.truncf %15 : vector<512x64xf32> to vector<512x64xbf16>
    %cst_12 = arith.constant 0.000000e+00 : bf16
    %17 = vector.broadcast %cst_12 : bf16 to vector<2x32x64xbf16>
    %c0_13 = arith.constant 0 : index
    %c0_14 = arith.constant 0 : index
    %c0_15 = arith.constant 0 : index
    %18 = vector.load %arg14[%c0_13, %c0_14, %c0_15] : memref<2x320x64xbf16, #tpu.memory_space<vmem>>, vector<2x32x64xbf16>
    tpu.vector_store %arg14[%c0_13, %c0_14, %c0_15], %17 {strides = array<i32>} : memref<2x320x64xbf16, #tpu.memory_space<vmem>>, vector<2x32x64xbf16>,
    %c0_16 = arith.constant 0 : index
    %c288 = arith.constant 288 : index
    %c0_17 = arith.constant 0 : index
    %19 = vector.load %arg14[%c0_16, %c288, %c0_17] : memref<2x320x64xbf16, #tpu.memory_space<vmem>>, vector<2x32x64xbf16>
    tpu.vector_store %arg14[%c0_16, %c288, %c0_17], %17 {strides = array<i32>} : memref<2x320x64xbf16, #tpu.memory_space<vmem>>, vector<2x32x64xbf16>,
    %20 = vector.shape_cast %16 : vector<512x64xbf16> to vector<2x256x64xbf16>
    %c0_18 = arith.constant 0 : index
    %c32 = arith.constant 32 : index
    %c0_19 = arith.constant 0 : index
    %21 = vector.load %arg14[%c0_18, %c32, %c0_19] : memref<2x320x64xbf16, #tpu.memory_space<vmem>>, vector<2x256x64xbf16>
    tpu.vector_store %arg14[%c0_18, %c32, %c0_19], %20 {strides = array<i32>} : memref<2x320x64xbf16, #tpu.memory_space<vmem>>, vector<2x256x64xbf16>,
    %c0_20 = arith.constant 0 : index
    %c0_21 = arith.constant 0 : index
    %c0_22 = arith.constant 0 : index
    %22 = vector.load %arg14[%c0_20, %c0_21, %c0_22] : memref<2x320x64xbf16, #tpu.memory_space<vmem>>, vector<2x256x64xbf16>
    %23 = vector.shape_cast %22 : vector<2x256x64xbf16> to vector<512x64xbf16>
    %c0_23 = arith.constant 0 : index
    %c0_24 = arith.constant 0 : index
    %c0_25 = arith.constant 0 : index
    %24 = vector.load %arg6[%c0_23, %c0_24, %c0_25] : memref<3x64x128xbf16, #tpu.memory_space<vmem>>, vector<1x64x128xbf16>
    %25 = vector.shape_cast %24 : vector<1x64x128xbf16> to vector<64x128xbf16>
    %cst_26 = arith.constant dense<0.000000e+00> : vector<512x128xf32>
    %26 = tpu.matmul %23, %25, %cst_26 {dimension_numbers = #tpu.dot_dimension_numbers<[1], [0], [0], [1], [0, 0, 1, 1], [], []>} : vector<512x64xbf16>, vector<64x128xbf16>, vector<512x128xf32> -> vector<512x128xf32>
    %c0_27 = arith.constant 0 : index
    %c32_28 = arith.constant 32 : index
    %c0_29 = arith.constant 0 : index
    %27 = vector.load %arg14[%c0_27, %c32_28, %c0_29] : memref<2x320x64xbf16, #tpu.memory_space<vmem>>, vector<2x256x64xbf16>
    %28 = vector.shape_cast %27 : vector<2x256x64xbf16> to vector<512x64xbf16>
    %c1 = arith.constant 1 : index
    %c0_30 = arith.constant 0 : index
    %c0_31 = arith.constant 0 : index
    %29 = vector.load %arg6[%c1, %c0_30, %c0_31] : memref<3x64x128xbf16, #tpu.memory_space<vmem>>, vector<1x64x128xbf16>
    %30 = vector.shape_cast %29 : vector<1x64x128xbf16> to vector<64x128xbf16>
    %cst_32 = arith.constant dense<0.000000e+00> : vector<512x128xf32>
    %31 = tpu.matmul %28, %30, %cst_32 {dimension_numbers = #tpu.dot_dimension_numbers<[1], [0], [0], [1], [0, 0, 1, 1], [], []>} : vector<512x64xbf16>, vector<64x128xbf16>, vector<512x128xf32> -> vector<512x128xf32>
    %32 = arith.addf %26, %31 : vector<512x128xf32>
    %c0_33 = arith.constant 0 : index
    %c64 = arith.constant 64 : index
    %c0_34 = arith.constant 0 : index
    %33 = vector.load %arg14[%c0_33, %c64, %c0_34] : memref<2x320x64xbf16, #tpu.memory_space<vmem>>, vector<2x256x64xbf16>
    %34 = vector.shape_cast %33 : vector<2x256x64xbf16> to vector<512x64xbf16>
    %c2 = arith.constant 2 : index
    %c0_35 = arith.constant 0 : index
    %c0_36 = arith.constant 0 : index
    %35 = vector.load %arg6[%c2, %c0_35, %c0_36] : memref<3x64x128xbf16, #tpu.memory_space<vmem>>, vector<1x64x128xbf16>
    %36 = vector.shape_cast %35 : vector<1x64x128xbf16> to vector<64x128xbf16>
    %cst_37 = arith.constant dense<0.000000e+00> : vector<512x128xf32>
    %37 = tpu.matmul %34, %36, %cst_37 {dimension_numbers = #tpu.dot_dimension_numbers<[1], [0], [0], [1], [0, 0, 1, 1], [], []>} : vector<512x64xbf16>, vector<64x128xbf16>, vector<512x128xf32> -> vector<512x128xf32>
    %38 = arith.addf %32, %37 : vector<512x128xf32>
    %c0_38 = arith.constant 0 : index
    %c0_39 = arith.constant 0 : index
    %39 = vector.load %arg7[%c0_38, %c0_39] : memref<1x128xf32, #tpu.memory_space<vmem>>, vector<1x128xf32>
    %40 = vector.broadcast %39 : vector<1x128xf32> to vector<512x128xf32>
    %41 = arith.addf %38, %40 : vector<512x128xf32>
    %cst_40 = arith.constant 0.000000e+00 : f32
    %42 = vector.broadcast %cst_40 : f32 to vector<512x128xf32>
    %43 = arith.maximumf %41, %42 : vector<512x128xf32>
    %44 = arith.truncf %43 : vector<512x128xf32> to vector<512x128xbf16>
    %c0_41 = arith.constant 0 : index
    %c0_42 = arith.constant 0 : index
    %45 = vector.load %arg8[%c0_41, %c0_42] : memref<128x128xbf16, #tpu.memory_space<vmem>>, vector<128x128xbf16>
    %cst_43 = arith.constant dense<0.000000e+00> : vector<512x128xf32>
    %46 = tpu.matmul %44, %45, %cst_43 {dimension_numbers = #tpu.dot_dimension_numbers<[1], [0], [0], [1], [0, 0, 1, 1], [], []>} : vector<512x128xbf16>, vector<128x128xbf16>, vector<512x128xf32> -> vector<512x128xf32>
    %c0_44 = arith.constant 0 : index
    %c0_45 = arith.constant 0 : index
    %47 = vector.load %arg9[%c0_44, %c0_45] : memref<1x128xf32, #tpu.memory_space<vmem>>, vector<1x128xf32>
    %48 = vector.broadcast %47 : vector<1x128xf32> to vector<512x128xf32>
    %49 = arith.addf %46, %48 : vector<512x128xf32>
    %cst_46 = arith.constant 0.000000e+00 : f32
    %50 = vector.broadcast %cst_46 : f32 to vector<512x128xf32>
    %51 = arith.maximumf %49, %50 : vector<512x128xf32>
    %52 = arith.truncf %51 : vector<512x128xf32> to vector<512x128xbf16>
    %c0_47 = arith.constant 0 : index
    %c0_48 = arith.constant 0 : index
    %53 = vector.load %arg12[%c0_47, %c0_48] : memref<2x512xbf16, #tpu.memory_space<vmem>>, vector<2x512xbf16>
    %cst_49 = arith.constant dense<0.000000e+00> : vector<2x128xf32>
    %54 = tpu.matmul %53, %52, %cst_49 {dimension_numbers = #tpu.dot_dimension_numbers<[1], [0], [0], [1], [0, 0, 1, 1], [], []>} : vector<2x512xbf16>, vector<512x128xbf16>, vector<2x128xf32> -> vector<2x128xf32>
    %cst_50 = arith.constant 5.000000e-03 : f32
    %55 = vector.broadcast %cst_50 : f32 to vector<2x128xf32>
    %56 = arith.mulf %54, %55 : vector<2x128xf32>
    %57 = arith.truncf %56 : vector<2x128xf32> to vector<2x128xbf16>
    %c0_51 = arith.constant 0 : index
    %c0_52 = arith.constant 0 : index
    %58 = vector.load %arg10[%c0_51, %c0_52] : memref<128x128xbf16, #tpu.memory_space<vmem>>, vector<128x128xbf16>
    %cst_53 = arith.constant dense<0.000000e+00> : vector<2x128xf32>
    %59 = tpu.matmul %57, %58, %cst_53 {dimension_numbers = #tpu.dot_dimension_numbers<[1], [0], [0], [1], [0, 0, 1, 1], [], []>} : vector<2x128xbf16>, vector<128x128xbf16>, vector<2x128xf32> -> vector<2x128xf32>
    %c0_54 = arith.constant 0 : index
    %c0_55 = arith.constant 0 : index
    %60 = vector.load %arg11[%c0_54, %c0_55] : memref<1x128xf32, #tpu.memory_space<vmem>>, vector<1x128xf32>
    %61 = vector.broadcast %60 : vector<1x128xf32> to vector<2x128xf32>
    %62 = arith.addf %59, %61 : vector<2x128xf32>
    %c0_56 = arith.constant 0 : index
    %c0_57 = arith.constant 0 : index
    %63 = vector.load %arg13[%c0_56, %c0_57] : memref<2x128xf32, #tpu.memory_space<vmem>>, vector<2x128xf32>
    tpu.vector_store %arg13[%c0_56, %c0_57], %62 {strides = array<i32>} : memref<2x128xf32, #tpu.memory_space<vmem>>, vector<2x128xf32>,
    return
  }
  func.func @transform_0(%arg0: i32) -> (i32, i32) {
    %c0_i32 = arith.constant 0 : i32
    %c0_i32_0 = arith.constant 0 : i32
    return %arg0, %c0_i32 : i32, i32
  }
  func.func @transform_1(%arg0: i32) -> (i32, i32) {
    %c0_i32 = arith.constant 0 : i32
    %c0_i32_0 = arith.constant 0 : i32
    %c0_i32_1 = arith.constant 0 : i32
    return %c0_i32, %c0_i32_0 : i32, i32
  }
  func.func @transform_2(%arg0: i32) -> (i32, i32) {
    %c0_i32 = arith.constant 0 : i32
    %c0_i32_0 = arith.constant 0 : i32
    %c0_i32_1 = arith.constant 0 : i32
    return %c0_i32, %c0_i32_0 : i32, i32
  }
  func.func @transform_3(%arg0: i32) -> (i32, i32) {
    %c0_i32 = arith.constant 0 : i32
    %c0_i32_0 = arith.constant 0 : i32
    %c0_i32_1 = arith.constant 0 : i32
    return %c0_i32, %c0_i32_0 : i32, i32
  }
  func.func @transform_4(%arg0: i32) -> (i32, i32) {
    %c0_i32 = arith.constant 0 : i32
    %c0_i32_0 = arith.constant 0 : i32
    %c0_i32_1 = arith.constant 0 : i32
    return %c0_i32, %c0_i32_0 : i32, i32
  }
  func.func @transform_5(%arg0: i32) -> (i32, i32, i32) {
    %c0_i32 = arith.constant 0 : i32
    %c0_i32_0 = arith.constant 0 : i32
    %c0_i32_1 = arith.constant 0 : i32
    %c0_i32_2 = arith.constant 0 : i32
    return %c0_i32, %c0_i32_0, %c0_i32_1 : i32, i32, i32
  }
  func.func @transform_6(%arg0: i32) -> (i32, i32) {
    %c0_i32 = arith.constant 0 : i32
    %c0_i32_0 = arith.constant 0 : i32
    %c0_i32_1 = arith.constant 0 : i32
    return %c0_i32, %c0_i32_0 : i32, i32
  }
  func.func @transform_7(%arg0: i32) -> (i32, i32) {
    %c0_i32 = arith.constant 0 : i32
    %c0_i32_0 = arith.constant 0 : i32
    %c0_i32_1 = arith.constant 0 : i32
    return %c0_i32, %c0_i32_0 : i32, i32
  }
  func.func @transform_8(%arg0: i32) -> (i32, i32) {
    %c0_i32 = arith.constant 0 : i32
    %c0_i32_0 = arith.constant 0 : i32
    %c0_i32_1 = arith.constant 0 : i32
    return %c0_i32, %c0_i32_0 : i32, i32
  }
  func.func @transform_9(%arg0: i32) -> (i32, i32) {
    %c0_i32 = arith.constant 0 : i32
    %c0_i32_0 = arith.constant 0 : i32
    %c0_i32_1 = arith.constant 0 : i32
    return %c0_i32, %c0_i32_0 : i32, i32
  }
  func.func @transform_10(%arg0: i32) -> (i32, i32) {
    %c0_i32 = arith.constant 0 : i32
    %c0_i32_0 = arith.constant 0 : i32
    %c0_i32_1 = arith.constant 0 : i32
    return %c0_i32, %c0_i32_0 : i32, i32
  }
  func.func @transform_11(%arg0: i32) -> (i32, i32) {
    %c0_i32 = arith.constant 0 : i32
    %c0_i32_0 = arith.constant 0 : i32
    %c0_i32_1 = arith.constant 0 : i32
    return %c0_i32, %c0_i32_0 : i32, i32
  }
  func.func @transform_12(%arg0: i32) -> (i32, i32) {
    %c0_i32 = arith.constant 0 : i32
    %c0_i32_0 = arith.constant 0 : i32
    return %arg0, %c0_i32 : i32, i32
  }
}

</mosaic_0001>

<bundles_post_ra>
// kernel: stgcn_forward.1
= control target key start
LH: loop header
LB: loop body
LE: loop exit
PB: predicated region body
PF: predicated region fallthrough
CT: control target
= control target key end

     0   :  { %vm282_vm0 = vcmask 130048   ;;  %s6738_s0 = inlined_call_operand.vmem [shape: bf16[512,16], index: 0, kind: input, shape index: {}]   ;;  %s6739_s1 = inlined_call_operand.vmem [shape: bf16[16,64], index: 1, kind: input, shape index: {}]   ;;  %s6740_s2 = inlined_call_operand.vmem [shape: f32[1,64], index: 2, kind: input, shape index: {}]   ;;  %s6741_s3 = inlined_call_operand.vmem [shape: bf16[64,64], index: 3, kind: input, shape index: {}]   ;;  %s6742_s4 = inlined_call_operand.vmem [shape: f32[1,64], index: 4, kind: input, shape index: {}]   ;;  %s6743_s5 = inlined_call_operand.vmem [shape: bf16[3,64,128], index: 5, kind: input, shape index: {}]   ;;  %s6744_s6 = inlined_call_operand.vmem [shape: f32[1,128], index: 6, kind: input, shape index: {}]   ;;  %s6745_s7 = inlined_call_operand.vmem [shape: bf16[128,128], index: 7, kind: input, shape index: {}]   ;;  %s6746_s8 = inlined_call_operand.vmem [shape: f32[1,128], index: 8, kind: input, shape index: {}]   ;;  %s6747_s9 = inlined_call_operand.vmem [shape: bf16[128,128], index: 9, kind: input, shape index: {}]   ;;  %s6748_s10 = inlined_call_operand.vmem [shape: f32[1,128], index: 10, kind: input, shape index: {}]   ;;  %s6749_s11 = inlined_call_operand.vmem [shape: bf16[2,512], index: 11, kind: input, shape index: {}]   ;;  %s6750_s12 = inlined_call_operand.hbm [shape: f32[2,128], index: 12, kind: output, shape index: {}]  }
   0x1   :  { %v5334_v0 = vld [vmem:[%s6739_s1] sm:$0xff]   ;;  %v5336_v2 = vld [vmem:[%s6738_s0 + $0x8] sm:$0xff]   ;;  %v5337_v3 = vld [vmem:[%s6738_s0 + $0x10] sm:$0xff]  }
   0x2   :  { %v5335_v1 = vld [vmem:[%s6738_s0] sm:$0xff]   ;;  %4873 = vmatprep.subr.bf16.mxu0 %v5334_v0  ;;  %5327 = vmatprep.subr.bf16.mxu1 %v5334_v0  ;;  %v5338_v4 = vld [vmem:[%s6738_s0 + $0x18] sm:$0xff]   ;;  %v5340_v6 = vld [vmem:[%s6738_s0 + $0x28] sm:$0xff]  }
   0x3   :  { %4874 = vmatpush3.bf16.msra.mxu0 %v5334_v0  ;;  %4875 = vmatprep.mubr.msk.bf16.mxu0 %vm282_vm0, %v5335_v1  ;;  %v5339_v5 = vld [vmem:[%s6738_s0 + $0x20] sm:$0xff]   ;;  %v5341_v7 = vld [vmem:[%s6738_s0 + $0x30] sm:$0xff]   ;;  %v5342_v8 = vld [vmem:[%s6738_s0 + $0x38] sm:$0xff]  }
   0x4   :  { %5328 = vmatpush3.bf16.msra.mxu1 %v5334_v0  ;;  %v5343_v9 = vld [vmem:[%s6738_s0 + $0x40] sm:$0xff]   ;;  %v5364_v11 = vld [vmem:[%s6738_s0 + $0xe8] sm:$0xff]   ;;  %v5365_v12 = vld [vmem:[%s6738_s0 + $0xf0] sm:$0xff]  }
   0x5   :  { %v5363_v10 = vld [vmem:[%s6738_s0 + $0xe0] sm:$0xff]   ;;  %v5344_v13 = vld [vmem:[%s6738_s0 + $0x48] sm:$0xff]   ;;  %v5345_v14 = vld [vmem:[%s6738_s0 + $0x50] sm:$0xff]  }
   0x6   :  { %4876 = vmatmul.mubr.msk.bf16.vlgmr.msra.gmra.mxu0 %vm282_vm0, %v5336_v2  ;;  %4931 = vmatprep.mubr.msk.bf16.mxu1 %vm282_vm0, %v5363_v10  ;;  %v5367_v15 = vld [vmem:[%s6741_s3 + $0x18] sm:$0xff]   ;;  %v5347_v18 = vld [vmem:[%s6738_s0 + $0x60] sm:$0xff]   ;;  %v5348_v19 = vld [vmem:[%s6738_s0 + $0x68] sm:$0xff]  }
   0x7   :  { %4879 = vmatprep.mubr.msk.bf16.mxu0 %vm282_vm0, %v5337_v3  ;;  %4932 = vmatmul.mubr.msk.bf16.vlgmr.msra.gmra.mxu1 %vm282_vm0, %v5364_v11  ;;  %v5366_v16 = vld [vmem:[%s6738_s0 + $0xf8] sm:$0xff]   ;;  %v5349_v20 = vld [vmem:[%s6738_s0 + $0x70] sm:$0xff]  }
   0x8   :  { %4935 = vmatprep.mubr.msk.bf16.mxu1 %vm282_vm0, %v5365_v12  ;;  %4939 = vmatprep.subr.bf16.mxu1 %v5367_v15  ;;  %v5346_v17 = vld [vmem:[%s6738_s0 + $0x58] sm:$0xff]  }
   0x9   :  { %4940 = vmatpush3.bf16.msra.mxu1 %v5367_v15 }
   0xe   :  { %4880 = vmatmul.mubr.msk.bf16.gmra.mxu0 %vm282_vm0, %v5338_v4 }
   0xf   :  { %4883 = vmatprep.mubr.msk.bf16.mxu0 %vm282_vm0, %v5339_v5  ;;  %4936 = vmatmul.mubr.msk.bf16.gmra.mxu1 %vm282_vm0, %v5366_v16 }
  0x16   :  { %4884 = vmatmul.mubr.msk.bf16.gmra.mxu0 %vm282_vm0, %v5340_v6 }
  0x17   :  { %4887 = vmatprep.mubr.msk.bf16.mxu0 %vm282_vm0, %v5341_v7 }
  0x1e   :  { %4888 = vmatmul.mubr.msk.bf16.gmra.mxu0 %vm282_vm0, %v5342_v8 }
  0x1f   :  { %4891 = vmatprep.mubr.msk.bf16.mxu0 %vm282_vm0, %v5343_v9 }
  0x26   :  { %4892 = vmatmul.mubr.msk.bf16.gmra.mxu0 %vm282_vm0, %v5344_v13 }
  0x27   :  { %4895 = vmatprep.mubr.msk.bf16.mxu0 %vm282_vm0, %v5345_v14 }
  0x2e   :  { %4896 = vmatmul.mubr.msk.bf16.gmra.mxu0 %vm282_vm0, %v5346_v17 }
  0x2f   :  { %4899 = vmatprep.mubr.msk.bf16.mxu0 %vm282_vm0, %v5347_v18 }
  0x36   :  { %4900 = vmatmul.mubr.msk.bf16.gmra.mxu0 %vm282_vm0, %v5348_v19 }
  0x37   :  { %17 = vsyncpa [#allocation4], 0  ;;  %4903 = vmatprep.mubr.msk.bf16.mxu0 %vm282_vm0, %v5349_v20  ;;  %v5350_v21 = vld [vmem:[%s6738_s0 + $0x78] sm:$0xff]   ;;  %v5351_v22 = vld [vmem:[%s6738_s0 + $0x80] sm:$0xff]   ;;  %vm803_vm1 = vcmask 523264   ;;  %vm1285_vm2 = vcmask 519168  }
  0x38   :  { %v5352_v23 = vld [vmem:[%s6738_s0 + $0x88] sm:$0xff]   ;;  %v5353_v24 = vld [vmem:[%s6738_s0 + $0x90] sm:$0xff]   ;;  %v5354_v26 = vld [vmem:[%s6738_s0 + $0x98] sm:$0xff]   ;;  %vm5493_vm3 = vmmov 0   ;;  %s5494_s13 = smov [#allocation3]  }
  0x39   :  { %v5368_v25 = vld [vmem:[%s6741_s3 + $0x10] sm:$0xff]   ;;  %v5369_v27 = vld [vmem:[%s6741_s3 + $0x8] sm:$0xff]   ;;  %v5355_v28 = vld [vmem:[%s6738_s0 + $0xa0] sm:$0xff]   ;;  %s4152_s14 = sshll.u32 %s5494_s13, 4  ;;  %s4153_s14 = int_to_ptr.vmem [resolvable:$true] %s4152_s14 }
  0x3a   :  { %4941 = vmatprep.subr.bf16.mxu1 %v5368_v25  ;;  %v5370_v29 = vld [vmem:[%s6741_s3] sm:$0xff]   ;;  %v5356_v30 = vld [vmem:[%s6738_s0 + $0xa8] sm:$0xff]   ;;  %v5357_v31 = vld [vmem:[%s6738_s0 + $0xb0] sm:$0xff]   ;;  %s5468_s15 = scalar_lea.vmem %s4153_s14, 32  ;;  %p5473_p1 = scmp.lt.s32.totalorder %s4153_s14, %s4153_s14 }
  0x3b   :  { %4942 = vmatpush3.bf16.msra.mxu1 %v5368_v25  ;;  %v5358_v32 = vld [vmem:[%s6738_s0 + $0xb8] sm:$0xff]   ;;  %v5359_v33 = vld [vmem:[%s6738_s0 + $0xc0] sm:$0xff]   ;;  %v5360_v34 = vld [vmem:[%s6738_s0 + $0xc8] sm:$0xff]   ;;  %p5469_p0 = scmp.ne.s32.totalorder %s4153_s14, %s5468_s15  ;;  %p5474_p2 = scmp.lt.s32.totalorder %s5468_s15, %s5468_s15 }
  0x3c   :  { %4943 = vmatprep.subr.bf16.mxu1 %v5369_v27  ;;  %v5361_v35 = vld [vmem:[%s6738_s0 + $0xd0] sm:$0xff]   ;;  %v5362_v36 = vld [vmem:[%s6738_s0 + $0xd8] sm:$0xff]   ;;  %v5706_v39 = vld [vmem:[%s6740_s2] ss:$0 sm:$0xff] }
  0x3d   :  { %p5475_p3 = por %p5474_p2, %p5473_p1 }
  0x3e   :  { %4904 = vmatmul.mubr.msk.bf16.gmra.mxu0 %vm282_vm0, %v5350_v21 }
  0x3f   :  { %4907 = vmatprep.mubr.msk.bf16.mxu0 %vm282_vm0, %v5351_v22  ;;  %4944 = vmatpush3.bf16.msra.mxu1 %v5369_v27  ;;  %p5476_p4 = pnand %p5475_p3, %p5469_p0 }
  0x40   :  { %4945 = vmatprep.subr.bf16.mxu1 %v5370_v29 }
  0x43   :  { %4946 = vmatpush3.bf16.msra.mxu1 %v5370_v29 }
  0x46   :  { %4908 = vmatmul.mubr.msk.bf16.gmra.mxu0 %vm282_vm0, %v5352_v23 }
  0x47   :  { %4911 = vmatprep.mubr.msk.bf16.mxu0 %vm282_vm0, %v5353_v24 }
  0x4e   :  { %4912 = vmatmul.mubr.msk.bf16.gmra.mxu0 %vm282_vm0, %v5354_v26 }
  0x4f   :  { %4915 = vmatprep.mubr.msk.bf16.mxu0 %vm282_vm0, %v5355_v28 }
  0x56   :  { %4916 = vmatmul.mubr.msk.bf16.gmra.mxu0 %vm282_vm0, %v5356_v30 }
  0x57   :  { %4919 = vmatprep.mubr.msk.bf16.mxu0 %vm282_vm0, %v5357_v31 }
  0x5e   :  { %4920 = vmatmul.mubr.msk.bf16.gmra.mxu0 %vm282_vm0, %v5358_v32 }
  0x5f   :  { %4923 = vmatprep.mubr.msk.bf16.mxu0 %vm282_vm0, %v5359_v33 }
  0x66   :  { %4924 = vmatmul.mubr.msk.bf16.gmra.mxu0 %vm282_vm0, %v5360_v34 }
  0x67   :  { %4927 = vmatprep.mubr.msk.bf16.mxu0 %vm282_vm0, %v5361_v35 }
  0x6e   :  { %4928 = vmatmul.mubr.msk.bf16.gmra.mxu0 %vm282_vm0, %v5362_v36 }
  0xc6   :  { %v4877_v37 = vpop.f32.mrf.mxu0 }
  0xc7   :  { %v422_v43 = vadd.f32 %v4877_v37, %v5706_v39 }
  0xc8   :  { %v413_v38 = vpop.f32.mrf.mxu0 }
  0xc9   :  { %v414_v41 = vadd.f32 %v5706_v39, %v413_v38  ;;  %v670_v50 = vmax.f32 %v422_v43, 0.0 }
  0xca   :  { %v4878_v40 = vpop.f32.mrf.mxu0 }
  0xcb   :  { %v425_v42 = vadd.f32 %v4878_v40, %v5706_v39  ;;  %v668_v48 = vmax.f32 %v414_v41, 0.0 }
  0xcc   :  { %v416_v44 = vpop.f32.mrf.mxu0 }
  0xcd   :  { %v417_v45 = vadd.f32 %v5706_v39, %v416_v44  ;;  %v671_v46 = vmax.f32 %v425_v42, 0.0 }
  0xce   :  { %v4881_v47 = vpop.f32.mrf.mxu0 }
  0xcf   :  { %v669_v49 = vmax.f32 %v417_v45, 0.0  ;;  %v733_v53 = vpack.c.bf16 %v671_v46, %v670_v50  ;;  %v438_v57 = vadd.f32 %v4881_v47, %v5706_v39 }
  0xd0   :  { %v429_v51 = vpop.f32.mrf.mxu0 }
  0xd1   :  { %v732_v52 = vpack.c.bf16 %v669_v49, %v668_v48  ;;  %v430_v55 = vadd.f32 %v5706_v39, %v429_v51  ;;  %v674_v0 = vmax.f32 %v438_v57, 0.0 }
  0xd2   :  { %v4882_v54 = vpop.f32.mrf.mxu0 }
  0xd3   :  { %v441_v56 = vadd.f32 %v4882_v54, %v5706_v39  ;;  %4947 = vmatprep.mubr.msk.bf16.mxu1 %vm803_vm1, %v732_v52  ;;  %v672_v62 = vmax.f32 %v430_v55, 0.0 }
  0xd4   :  { %v432_v58 = vpop.f32.mrf.mxu0  ;;  %4948 = vmatmul.mubr.msk.bf16.vlgmr.msra.gmra.mxu1 %vm803_vm1, %v733_v53 }
  0xd5   :  { %v433_v59 = vadd.f32 %v5706_v39, %v432_v58  ;;  %v675_v60 = vmax.f32 %v441_v56, 0.0 }
  0xd6   :  { %v4885_v61 = vpop.f32.mrf.mxu0 }
  0xd7   :  { %v673_v63 = vmax.f32 %v433_v59, 0.0  ;;  %v735_v3 = vpack.c.bf16 %v675_v60, %v674_v0  ;;  %v454_v7 = vadd.f32 %v4885_v61, %v5706_v39 }
  0xd8   :  { %v445_v1 = vpop.f32.mrf.mxu0 }
  0xd9   :  { %v734_v2 = vpack.c.bf16 %v673_v63, %v672_v62  ;;  %v446_v5 = vadd.f32 %v5706_v39, %v445_v1  ;;  %v678_v14 = vmax.f32 %v454_v7, 0.0 }
  0xda   :  { %v4886_v4 = vpop.f32.mrf.mxu0 }
  0xdb   :  { %v457_v6 = vadd.f32 %v4886_v4, %v5706_v39  ;;  %4951 = vmatprep.mubr.msk.bf16.mxu1 %vm803_vm1, %v734_v2  ;;  %v676_v12 = vmax.f32 %v446_v5, 0.0 }
  0xdc   :  { %v448_v8 = vpop.f32.mrf.mxu0  ;;  %4952 = vmatmul.mubr.msk.bf16.gmra.mxu1 %vm803_vm1, %v735_v3 }
  0xdd   :  { %v449_v9 = vadd.f32 %v5706_v39, %v448_v8  ;;  %v679_v10 = vmax.f32 %v457_v6, 0.0 }
  0xde   :  { %v4889_v11 = vpop.f32.mrf.mxu0 }
  0xdf   :  { %v677_v13 = vmax.f32 %v449_v9, 0.0  ;;  %v737_v17 = vpack.c.bf16 %v679_v10, %v678_v14  ;;  %v470_v21 = vadd.f32 %v4889_v11, %v5706_v39 }
  0xe0   :  { %v461_v15 = vpop.f32.mrf.mxu0 }
  0xe1   :  { %v736_v16 = vpack.c.bf16 %v677_v13, %v676_v12  ;;  %v462_v19 = vadd.f32 %v5706_v39, %v461_v15  ;;  %v682_v28 = vmax.f32 %v470_v21, 0.0 }
  0xe2   :  { %v4890_v18 = vpop.f32.mrf.mxu0 }
  0xe3   :  { %v473_v20 = vadd.f32 %v4890_v18, %v5706_v39  ;;  %4955 = vmatprep.mubr.msk.bf16.mxu1 %vm803_vm1, %v736_v16  ;;  %v680_v26 = vmax.f32 %v462_v19, 0.0 }
  0xe4   :  { %v464_v22 = vpop.f32.mrf.mxu0  ;;  %4956 = vmatmul.mubr.msk.bf16.gmra.mxu1 %vm803_vm1, %v737_v17 }
  0xe5   :  { %v465_v23 = vadd.f32 %v5706_v39, %v464_v22  ;;  %v683_v24 = vmax.f32 %v473_v20, 0.0 }
  0xe6   :  { %v4893_v25 = vpop.f32.mrf.mxu0 }
  0xe7   :  { %v681_v27 = vmax.f32 %v465_v23, 0.0  ;;  %v739_v31 = vpack.c.bf16 %v683_v24, %v682_v28  ;;  %v486_v35 = vadd.f32 %v4893_v25, %v5706_v39 }
  0xe8   :  { %v477_v29 = vpop.f32.mrf.mxu0 }
  0xe9   :  { %v738_v30 = vpack.c.bf16 %v681_v27, %v680_v26  ;;  %v478_v33 = vadd.f32 %v5706_v39, %v477_v29  ;;  %v686_v43 = vmax.f32 %v486_v35, 0.0 }
  0xea   :  { %v4894_v32 = vpop.f32.mrf.mxu0 }
  0xeb   :  { %v489_v34 = vadd.f32 %v4894_v32, %v5706_v39  ;;  %4959 = vmatprep.mubr.msk.bf16.mxu1 %vm803_vm1, %v738_v30  ;;  %v684_v41 = vmax.f32 %v478_v33, 0.0 }
  0xec   :  { %v480_v36 = vpop.f32.mrf.mxu0  ;;  %4960 = vmatmul.mubr.msk.bf16.gmra.mxu1 %vm803_vm1, %v739_v31 }
  0xed   :  { %v481_v37 = vadd.f32 %v5706_v39, %v480_v36  ;;  %v687_v38 = vmax.f32 %v489_v34, 0.0 }
  0xee   :  { %v4897_v40 = vpop.f32.mrf.mxu0 }
  0xef   :  { %v685_v42 = vmax.f32 %v481_v37, 0.0  ;;  %v741_v46 = vpack.c.bf16 %v687_v38, %v686_v43  ;;  %v502_v50 = vadd.f32 %v4897_v40, %v5706_v39  ;;  %v5371_v38 = vld [vmem:[%s6743_s5 + $0x18] sm:$0xff]  }
  0xf0   :  { %v493_v44 = vpop.f32.mrf.mxu0  ;;  %5083 = vmatprep.subr.bf16.mxu1 %v5371_v38 }
  0xf1   :  { %v740_v45 = vpack.c.bf16 %v685_v42, %v684_v41  ;;  %v494_v48 = vadd.f32 %v5706_v39, %v493_v44  ;;  %v690_v57 = vmax.f32 %v502_v50, 0.0  ;;  %5084 = vmatpush3.bf16.msra.mxu1 %v5371_v38 }
  0xf2   :  { %v4898_v47 = vpop.f32.mrf.mxu0 }
  0xf3   :  { %v505_v49 = vadd.f32 %v4898_v47, %v5706_v39  ;;  %4963 = vmatprep.mubr.msk.bf16.mxu1 %vm803_vm1, %v740_v45  ;;  %v688_v55 = vmax.f32 %v494_v48, 0.0  ;;  %v5372_v47 = vld [vmem:[%s6743_s5 + $0x10] sm:$0xff]  }
  0xf4   :  { %v496_v51 = vpop.f32.mrf.mxu0  ;;  %4964 = vmatmul.mubr.msk.bf16.gmra.mxu1 %vm803_vm1, %v741_v46  ;;  %5085 = vmatprep.subr.bf16.mxu1 %v5372_v47 }
  0xf5   :  { %v497_v52 = vadd.f32 %v5706_v39, %v496_v51  ;;  %v691_v53 = vmax.f32 %v505_v49, 0.0  ;;  %5086 = vmatpush3.bf16.msra.mxu1 %v5372_v47 }
  0xf6   :  { %v4901_v54 = vpop.f32.mrf.mxu0 }
  0xf7   :  { %v689_v56 = vmax.f32 %v497_v52, 0.0  ;;  %v743_v60 = vpack.c.bf16 %v691_v53, %v690_v57  ;;  %v518_v0 = vadd.f32 %v4901_v54, %v5706_v39  ;;  %v5490_v57 = vmov 0  }
  0xf8   :  { %v509_v58 = vpop.f32.mrf.mxu0  ;;  %1286 = vst.msk [vmem:[#allocation2] sm:$0xf] %vm1285_vm2, %v5490_v57  ;;  %1287 = vst.msk [vmem:[#allocation2 + $0x4] sm:$0xf] %vm1285_vm2, %v5490_v57 }
  0xf9   :  { %v742_v59 = vpack.c.bf16 %v689_v56, %v688_v55  ;;  %v510_v62 = vadd.f32 %v5706_v39, %v509_v58  ;;  %v694_v7 = vmax.f32 %v518_v0, 0.0  ;;  %v5373_v55 = vld [vmem:[%s6743_s5 + $0x38] sm:$0xff]   ;;  %v5374_v56 = vld [vmem:[%s6743_s5 + $0x8] sm:$0xff]   ;;  %1288 = vst.msk [vmem:[#allocation2 + $0x8] sm:$0xf] %vm1285_vm2, %v5490_v57 }
  0xfa   :  { %v4902_v61 = vpop.f32.mrf.mxu0  ;;  %1289 = vst.msk [vmem:[#allocation2 + $0xc] sm:$0xf] %vm1285_vm2, %v5490_v57  ;;  %1290 = vst.msk [vmem:[#allocation2 + $0xa0] sm:$0xf] %vm1285_vm2, %v5490_v57  ;;  %5011 = vmatprep.subr.bf16.mxu0 %v5373_v55  ;;  %5087 = vmatprep.subr.bf16.mxu1 %v5374_v56 }
  0xfb   :  { %v521_v63 = vadd.f32 %v4902_v61, %v5706_v39  ;;  %4967 = vmatprep.mubr.msk.bf16.mxu1 %vm803_vm1, %v742_v59  ;;  %v692_v5 = vmax.f32 %v510_v62, 0.0  ;;  %1291 = vst.msk [vmem:[#allocation2 + $0xa4] sm:$0xf] %vm1285_vm2, %v5490_v57  ;;  %1292 = vst.msk [vmem:[#allocation2 + $0xa8] sm:$0xf] %vm1285_vm2, %v5490_v57  ;;  %5012 = vmatpush3.bf16.msra.mxu0 %v5373_v55 }
  0xfc   :  { %v512_v1 = vpop.f32.mrf.mxu0  ;;  %4968 = vmatmul.mubr.msk.bf16.gmra.mxu1 %vm803_vm1, %v743_v60  ;;  %1293 = vst.msk [vmem:[#allocation2 + $0xac] sm:$0xf] %vm1285_vm2, %v5490_v57  ;;  %1294 = vst.msk [vmem:[#allocation2 + $0x90] sm:$0xf] %vm1285_vm2, %v5490_v57  ;;  %v5794_v60 = vpop.f32.mrf.mxu1 }
  0xfd   :  { %v513_v2 = vadd.f32 %v5706_v39, %v512_v1  ;;  %v695_v3 = vmax.f32 %v521_v63, 0.0  ;;  %1295 = vst.msk [vmem:[#allocation2 + $0x94] sm:$0xf] %vm1285_vm2, %v5490_v57  ;;  %1296 = vst.msk [vmem:[#allocation2 + $0x98] sm:$0xf] %vm1285_vm2, %v5490_v57  ;;  %5088 = vmatpush3.bf16.msra.mxu1 %v5374_v56 }
  0xfe   :  { %v4905_v4 = vpop.f32.mrf.mxu0  ;;  %1297 = vst.msk [vmem:[#allocation2 + $0x9c] sm:$0xf] %vm1285_vm2, %v5490_v57  ;;  %1298 = vst.msk [vmem:[#allocation2 + $0x130] sm:$0xf] %vm1285_vm2, %v5490_v57 }
  0xff   :  { %v693_v6 = vmax.f32 %v513_v2, 0.0  ;;  %v745_v10 = vpack.c.bf16 %v695_v3, %v694_v7  ;;  %v534_v14 = vadd.f32 %v4905_v4, %v5706_v39  ;;  %1299 = vst.msk [vmem:[#allocation2 + $0x134] sm:$0xf] %vm1285_vm2, %v5490_v57  ;;  %1300 = vst.msk [vmem:[#allocation2 + $0x138] sm:$0xf] %vm1285_vm2, %v5490_v57  ;;  %v5375_v2 = vld [vmem:[%s6743_s5 + $0x30] sm:$0xff]  }
 0x100   :  { %v525_v8 = vpop.f32.mrf.mxu0  ;;  %1301 = vst.msk [vmem:[#allocation2 + $0x13c] sm:$0xf] %vm1285_vm2, %v5490_v57  ;;  %v5376_v3 = vld [vmem:[%s6743_s5] sm:$0xff]   ;;  %5013 = vmatprep.subr.bf16.mxu0 %v5375_v2 }
 0x101   :  { %v744_v9 = vpack.c.bf16 %v693_v6, %v692_v5  ;;  %v526_v12 = vadd.f32 %v5706_v39, %v525_v8  ;;  %v698_v21 = vmax.f32 %v534_v14, 0.0  ;;  %v637_v6 = vpop.f32.mrf.mxu1  ;;  %5089 = vmatprep.subr.bf16.mxu1 %v5376_v3  ;;  %5014 = vmatpush3.bf16.msra.mxu0 %v5375_v2 }
 0x102   :  { %v4906_v11 = vpop.f32.mrf.mxu0  ;;  %5090 = vmatpush3.bf16.msra.mxu1 %v5376_v3  ;;  %v638_v47 = vadd.f32 %v5706_v39, %v637_v6 }
 0x103   :  { %v537_v13 = vadd.f32 %v4906_v11, %v5706_v39  ;;  %4971 = vmatprep.mubr.msk.bf16.mxu1 %vm803_vm1, %v744_v9  ;;  %v696_v19 = vmax.f32 %v526_v12, 0.0  ;;  %v5378_v12 = vld [vmem:[%s6743_s5 + $0x28] sm:$0xff]  }
 0x104   :  { %v528_v15 = vpop.f32.mrf.mxu0  ;;  %4972 = vmatmul.mubr.msk.bf16.gmra.mxu1 %vm803_vm1, %v745_v10  ;;  %5015 = vmatprep.subr.bf16.mxu0 %v5378_v12  ;;  %v724_v56 = vmax.f32 %v638_v47, 0.0 }
 0x105   :  { %v529_v16 = vadd.f32 %v5706_v39, %v528_v15  ;;  %v699_v17 = vmax.f32 %v537_v13, 0.0  ;;  %v5811_v15 = vpop.f32.mrf.mxu1  ;;  %5016 = vmatpush3.bf16.msra.mxu0 %v5378_v12 }
 0x106   :  { %v4909_v18 = vpop.f32.mrf.mxu0 }
 0x107   :  { %v697_v20 = vmax.f32 %v529_v16, 0.0  ;;  %v747_v24 = vpack.c.bf16 %v699_v17, %v698_v21  ;;  %v550_v28 = vadd.f32 %v4909_v18, %v5706_v39 }
 0x108   :  { %v541_v22 = vpop.f32.mrf.mxu0 }
 0x109   :  { %v746_v23 = vpack.c.bf16 %v697_v20, %v696_v19  ;;  %v542_v26 = vadd.f32 %v5706_v39, %v541_v22  ;;  %v702_v35 = vmax.f32 %v550_v28, 0.0  ;;  %v5380_v22 = vld [vmem:[%s6743_s5 + $0x20] sm:$0xff]  }
 0x10a   :  { %v4910_v25 = vpop.f32.mrf.mxu0  ;;  %5017 = vmatprep.subr.bf16.mxu0 %v5380_v22 }
 0x10b   :  { %v553_v27 = vadd.f32 %v4910_v25, %v5706_v39  ;;  %4975 = vmatprep.mubr.msk.bf16.mxu1 %vm803_vm1, %v746_v23  ;;  %v700_v33 = vmax.f32 %v542_v26, 0.0  ;;  %5018 = vmatpush3.bf16.msra.mxu0 %v5380_v22 }
 0x10c   :  { %v544_v29 = vpop.f32.mrf.mxu0  ;;  %4976 = vmatmul.mubr.msk.bf16.gmra.mxu1 %vm803_vm1, %v747_v24  ;;  %v640_v24 = vpop.f32.mrf.mxu1 }
 0x10d   :  { %v545_v30 = vadd.f32 %v5706_v39, %v544_v29  ;;  %v703_v31 = vmax.f32 %v553_v27, 0.0 }
 0x10e   :  { %v4913_v32 = vpop.f32.mrf.mxu0 }
 0x10f   :  { %v701_v34 = vmax.f32 %v545_v30, 0.0  ;;  %v749_v40 = vpack.c.bf16 %v703_v31, %v702_v35  ;;  %v566_v44 = vadd.f32 %v4913_v32, %v5706_v39  ;;  %v4937_v32 = vpop.f32.mrf.mxu1 }
 0x110   :  { %v557_v36 = vpop.f32.mrf.mxu0 }
 0x111   :  { %v748_v37 = vpack.c.bf16 %v701_v34, %v700_v33  ;;  %v558_v42 = vadd.f32 %v5706_v39, %v557_v36  ;;  %v706_v52 = vmax.f32 %v566_v44, 0.0 }
 0x112   :  { %v4914_v41 = vpop.f32.mrf.mxu0 }
 0x113   :  { %v569_v43 = vadd.f32 %v4914_v41, %v5706_v39  ;;  %4979 = vmatprep.mubr.msk.bf16.mxu1 %vm803_vm1, %v748_v37  ;;  %v704_v50 = vmax.f32 %v558_v42, 0.0  ;;  %v653_v41 = vpop.f32.mrf.mxu1 }
 0x114   :  { %v560_v45 = vpop.f32.mrf.mxu0  ;;  %4980 = vmatmul.mubr.msk.bf16.gmra.mxu1 %vm803_vm1, %v749_v40  ;;  %v654_v3 = vadd.f32 %v5706_v39, %v653_v41 }
 0x115   :  { %v561_v46 = vadd.f32 %v5706_v39, %v560_v45  ;;  %v707_v48 = vmax.f32 %v569_v43, 0.0 }
 0x116   :  { %v4917_v49 = vpop.f32.mrf.mxu0 }
 0x117   :  { %v705_v51 = vmax.f32 %v561_v46, 0.0  ;;  %v751_v58 = vpack.c.bf16 %v707_v48, %v706_v52  ;;  %v582_v63 = vadd.f32 %v4917_v49, %v5706_v39  ;;  %v641_v48 = vadd.f32 %v5706_v39, %v640_v24 }
 0x118   :  { %v573_v53 = vpop.f32.mrf.mxu0 }
 0x119   :  { %v750_v54 = vpack.c.bf16 %v705_v51, %v704_v50  ;;  %v574_v61 = vadd.f32 %v5706_v39, %v573_v53  ;;  %v710_v9 = vmax.f32 %v582_v63, 0.0  ;;  %v4938_v51 = vpop.f32.mrf.mxu1 }
 0x11a   :  { %v4918_v59 = vpop.f32.mrf.mxu0 }
 0x11b   :  { %v585_v62 = vadd.f32 %v4918_v59, %v5706_v39  ;;  %4983 = vmatprep.mubr.msk.bf16.mxu1 %vm803_vm1, %v750_v54  ;;  %v708_v7 = vmax.f32 %v574_v61, 0.0  ;;  %v656_v61 = vpop.f32.mrf.mxu1 }
 0x11c   :  { %v576_v0 = vpop.f32.mrf.mxu0  ;;  %4984 = vmatmul.mubr.msk.bf16.gmra.mxu1 %vm803_vm1, %v751_v58  ;;  %v725_v58 = vmax.f32 %v641_v48, 0.0 }
 0x11d   :  { %v577_v1 = vadd.f32 %v5706_v39, %v576_v0  ;;  %v711_v4 = vmax.f32 %v585_v62, 0.0 }
 0x11e   :  { %v4921_v5 = vpop.f32.mrf.mxu0  ;;  %v760_v2 = vpack.c.bf16 %v725_v58, %v724_v56 }
 0x11f   :  { %v709_v8 = vmax.f32 %v577_v1, 0.0  ;;  %v753_v13 = vpack.c.bf16 %v711_v4, %v710_v9  ;;  %v598_v18 = vadd.f32 %v4921_v5, %v5706_v39  ;;  %v657_v4 = vadd.f32 %v5706_v39, %v656_v61 }
 0x120   :  { %v589_v10 = vpop.f32.mrf.mxu0  ;;  %v646_v5 = vadd.f32 %v5794_v60, %v5706_v39  ;;  %v665_v60 = vadd.f32 %v4938_v51, %v5706_v39 }
 0x121   :  { %v752_v11 = vpack.c.bf16 %v709_v8, %v708_v7  ;;  %v590_v16 = vadd.f32 %v5706_v39, %v589_v10  ;;  %v714_v27 = vmax.f32 %v598_v18, 0.0  ;;  %v649_v7 = vadd.f32 %v5811_v15, %v5706_v39 }
 0x122   :  { %v4922_v14 = vpop.f32.mrf.mxu0  ;;  %v728_v8 = vmax.f32 %v654_v3, 0.0  ;;  %v729_v9 = vmax.f32 %v657_v4, 0.0  ;;  %v726_v10 = vmax.f32 %v646_v5, 0.0 }
 0x123   :  { %v601_v17 = vadd.f32 %v4922_v14, %v5706_v39  ;;  %4987 = vmatprep.mubr.msk.bf16.mxu1 %vm803_vm1, %v752_v11  ;;  %v712_v25 = vmax.f32 %v590_v16, 0.0  ;;  %v727_v11 = vmax.f32 %v649_v7, 0.0  ;;  %v662_v14 = vadd.f32 %v4937_v32, %v5706_v39 }
 0x124   :  { %v592_v19 = vpop.f32.mrf.mxu0  ;;  %4988 = vmatmul.mubr.msk.bf16.gmra.mxu1 %vm803_vm1, %v753_v13  ;;  %v762_v12 = vpack.c.bf16 %v729_v9, %v728_v8  ;;  %v731_v16 = vmax.f32 %v665_v60, 0.0 }
 0x125   :  { %v715_v20 = vmax.f32 %v601_v17, 0.0  ;;  %v593_v21 = vadd.f32 %v5706_v39, %v592_v19  ;;  %v761_v13 = vpack.c.bf16 %v727_v11, %v726_v10  ;;  %v730_v15 = vmax.f32 %v662_v14, 0.0  ;;  %v5377_v17 = vld [vmem:[#allocation2] sm:$0xff]   ;;  %v5379_v19 = vld [vmem:[#allocation2 + $0x8] sm:$0xff]  }
 0x126   :  { %v4925_v23 = vpop.f32.mrf.mxu0  ;;  %v5417_v11 = vld [vmem:[%s6743_s5 + $0x48] sm:$0xff]  }
 0x127   :  { %v713_v26 = vmax.f32 %v593_v21, 0.0  ;;  %v755_v30 = vpack.c.bf16 %v715_v20, %v714_v27  ;;  %v614_v35 = vadd.f32 %v4925_v23, %v5706_v39  ;;  %v763_v18 = vpack.c.bf16 %v731_v16, %v730_v15  ;;  %v5855_v20 = vld [vmem:[%s6742_s4] ss:$0 sm:$0xff] }
 0x128   :  { %v605_v28 = vpop.f32.mrf.mxu0 }
 0x129   :  { %v754_v29 = vpack.c.bf16 %v713_v26, %v712_v25  ;;  %v606_v33 = vadd.f32 %v5706_v39, %v605_v28  ;;  %v718_v44 = vmax.f32 %v614_v35, 0.0 }
 0x12a   :  { %v4926_v31 = vpop.f32.mrf.mxu0 }
 0x12b   :  { %v617_v34 = vadd.f32 %v4926_v31, %v5706_v39  ;;  %4991 = vmatprep.mubr.msk.bf16.mxu1 %vm803_vm1, %v754_v29  ;;  %v716_v42 = vmax.f32 %v606_v33, 0.0 }
 0x12c   :  { %v608_v36 = vpop.f32.mrf.mxu0  ;;  %4992 = vmatmul.mubr.msk.bf16.gmra.mxu1 %vm803_vm1, %v755_v30 }
 0x12d   :  { %v609_v37 = vadd.f32 %v5706_v39, %v608_v36  ;;  %v719_v38 = vmax.f32 %v617_v34, 0.0 }
 0x12e   :  { %v4929_v40 = vpop.f32.mrf.mxu0 }
 0x12f   :  { %v717_v43 = vmax.f32 %v609_v37, 0.0  ;;  %v757_v49 = vpack.c.bf16 %v719_v38, %v718_v44  ;;  %v630_v54 = vadd.f32 %v4929_v40, %v5706_v39 }
 0x130   :  { %v621_v45 = vpop.f32.mrf.mxu0 }
 0x131   :  { %v756_v46 = vpack.c.bf16 %v717_v43, %v716_v42  ;;  %v622_v52 = vadd.f32 %v5706_v39, %v621_v45  ;;  %v722_v0 = vmax.f32 %v630_v54, 0.0 }
 0x132   :  { %v4930_v50 = vpop.f32.mrf.mxu0 }
 0x133   :  { %v633_v53 = vadd.f32 %v4930_v50, %v5706_v39  ;;  %4995 = vmatprep.mubr.msk.bf16.mxu1 %vm803_vm1, %v756_v46  ;;  %v720_v62 = vmax.f32 %v622_v52, 0.0 }
 0x134   :  { %v624_v55 = vpop.f32.mrf.mxu0  ;;  %4996 = vmatmul.mubr.msk.bf16.gmra.mxu1 %vm803_vm1, %v757_v49 }
 0x135   :  { %v625_v57 = vadd.f32 %v5706_v39, %v624_v55  ;;  %v723_v59 = vmax.f32 %v633_v53, 0.0  ;;  %v5860_v39 = vld [vmem:[%s6743_s5 + $0x58] sm:$0xff]  }
 0x136   :  { %5155 = vmatprep.subr.bf16.mxu0 %v5860_v39 }
 0x137   :  { %v721_v63 = vmax.f32 %v625_v57, 0.0  ;;  %v759_v6 = vpack.c.bf16 %v723_v59, %v722_v0 }
 0x139   :  { %v758_v1 = vpack.c.bf16 %v721_v63, %v720_v62 }
 0x13b   :  { %4999 = vmatprep.mubr.msk.bf16.mxu1 %vm803_vm1, %v758_v1 }
 0x13c   :  { %5000 = vmatmul.mubr.msk.bf16.gmra.mxu1 %vm803_vm1, %v759_v6 }
 0x13d   :  { %5003 = vmatprep.mubr.msk.bf16.mxu1 %vm803_vm1, %v760_v2  ;;  %v5414_v2 = vld [vmem:[%s6743_s5 + $0x50] sm:$0xff]  }
 0x144   :  { %5004 = vmatmul.mubr.msk.bf16.gmra.mxu1 %vm803_vm1, %v761_v13 }
 0x145   :  { %5007 = vmatprep.mubr.msk.bf16.mxu1 %vm803_vm1, %v762_v12 }
 0x14c   :  { %5008 = vmatmul.mubr.msk.bf16.gmra.mxu1 %vm803_vm1, %v763_v18 }
 0x14d   :  { %5091 = vmatprep.mubr.msk.bf16.mxu1 %vm803_vm1, %v5377_v17 }
 0x154   :  { %5092 = vmatmul.mubr.msk.bf16.vlgmr.msra.gmra.mxu1 %vm803_vm1, %v5379_v19 }
 0x194   :  { %v4949_v21 = vpop.f32.mrf.mxu1 }
 0x195   :  { %v943_v22 = vadd.f32 %v4949_v21, %v5855_v20  ;;  %v5419_v21 = vld [vmem:[%s6743_s5 + $0x40] sm:$0xff]  }
 0x196   :  { %v934_v23 = vpop.f32.mrf.mxu1 }
 0x197   :  { %v1191_v24 = vmax.f32 %v943_v22, 0.0  ;;  %v935_v25 = vadd.f32 %v5855_v20, %v934_v23 }
 0x198   :  { %v4950_v26 = vpop.f32.mrf.mxu1 }
 0x199   :  { %v4541_v27 = vpack.c.bf16 %v1191_v24, %v1191_v24  ;;  %v1189_v28 = vmax.f32 %v935_v25, 0.0  ;;  %v946_v29 = vadd.f32 %v4950_v26, %v5855_v20 }
 0x19a   :  { %v937_v30 = vpop.f32.mrf.mxu1 }
 0x19b   :  { %1528 = vst.msk [vmem:[#allocation2 + $0x18] sm:$0xf] %vm1285_vm2, %v4541_v27  ;;  %v4539_v31 = vpack.c.bf16 %v1189_v28, %v1189_v28  ;;  %v1192_v32 = vmax.f32 %v946_v29, 0.0  ;;  %v938_v33 = vadd.f32 %v5855_v20, %v937_v30 }
 0x19c   :  { %v4953_v34 = vpop.f32.mrf.mxu1 }
 0x19d   :  { %1526 = vst.msk [vmem:[#allocation2 + $0x10] sm:$0xf] %vm1285_vm2, %v4539_v31  ;;  %v4542_v35 = vpack.c.bf16 %v1192_v32, %v1192_v32  ;;  %v1190_v36 = vmax.f32 %v938_v33, 0.0  ;;  %v959_v37 = vadd.f32 %v4953_v34, %v5855_v20 }
 0x19e   :  { %v950_v38 = vpop.f32.mrf.mxu1 }
 0x19f   :  { %1529 = vst.msk [vmem:[#allocation2 + $0x1c] sm:$0xf] %vm1285_vm2, %v4542_v35  ;;  %v4540_v40 = vpack.c.bf16 %v1190_v36, %v1190_v36  ;;  %v1195_v41 = vmax.f32 %v959_v37, 0.0  ;;  %v951_v42 = vadd.f32 %v5855_v20, %v950_v38 }
 0x1a0   :  { %v4954_v43 = vpop.f32.mrf.mxu1 }
 0x1a1   :  { %1527 = vst.msk [vmem:[#allocation2 + $0x14] sm:$0xf] %vm1285_vm2, %v4540_v40  ;;  %v4545_v44 = vpack.c.bf16 %v1195_v41, %v1195_v41  ;;  %v1193_v45 = vmax.f32 %v951_v42, 0.0  ;;  %v962_v46 = vadd.f32 %v4954_v43, %v5855_v20 }
 0x1a2   :  { %v953_v47 = vpop.f32.mrf.mxu1 }
 0x1a3   :  { %1532 = vst.msk [vmem:[#allocation2 + $0x28] sm:$0xf] %vm1285_vm2, %v4545_v44  ;;  %v4543_v48 = vpack.c.bf16 %v1193_v45, %v1193_v45  ;;  %v1196_v49 = vmax.f32 %v962_v46, 0.0  ;;  %v954_v50 = vadd.f32 %v5855_v20, %v953_v47 }
 0x1a4   :  { %v4957_v51 = vpop.f32.mrf.mxu1 }
 0x1a5   :  { %1530 = vst.msk [vmem:[#allocation2 + $0x20] sm:$0xf] %vm1285_vm2, %v4543_v48  ;;  %v4546_v52 = vpack.c.bf16 %v1196_v49, %v1196_v49  ;;  %v1194_v53 = vmax.f32 %v954_v50, 0.0  ;;  %v975_v54 = vadd.f32 %v4957_v51, %v5855_v20 }
 0x1a6   :  { %v966_v55 = vpop.f32.mrf.mxu1  ;;  %v5382_v1 = vld [vmem:[#allocation2 + $0x18] sm:$0xff]  }
 0x1a7   :  { %1533 = vst.msk [vmem:[#allocation2 + $0x2c] sm:$0xf] %vm1285_vm2, %v4546_v52  ;;  %v4544_v56 = vpack.c.bf16 %v1194_v53, %v1194_v53  ;;  %v1199_v57 = vmax.f32 %v975_v54, 0.0  ;;  %v967_v58 = vadd.f32 %v5855_v20, %v966_v55 }
 0x1a8   :  { %v4958_v59 = vpop.f32.mrf.mxu1  ;;  %v5381_v61 = vld [vmem:[#allocation2 + $0x10] sm:$0xff]  }
 0x1a9   :  { %1531 = vst.msk [vmem:[#allocation2 + $0x24] sm:$0xf] %vm1285_vm2, %v4544_v56  ;;  %v4549_v62 = vpack.c.bf16 %v1199_v57, %v1199_v57  ;;  %v1197_v63 = vmax.f32 %v967_v58, 0.0  ;;  %v978_v0 = vadd.f32 %v4958_v59, %v5855_v20  ;;  %5019 = vmatprep.mubr.msk.bf16.mxu0 %vm803_vm1, %v5381_v61  ;;  %5095 = vmatprep.mubr.msk.bf16.mxu1 %vm803_vm1, %v5381_v61 }
 0x1aa   :  { %v969_v3 = vpop.f32.mrf.mxu1  ;;  %5020 = vmatmul.mubr.msk.bf16.vlgmr.msra.gmra.mxu0 %vm803_vm1, %v5382_v1  ;;  %5096 = vmatmul.mubr.msk.bf16.gmra.mxu1 %vm803_vm1, %v5382_v1 }
 0x1ab   :  { %1536 = vst.msk [vmem:[#allocation2 + $0x38] sm:$0xf] %vm1285_vm2, %v4549_v62  ;;  %v4547_v4 = vpack.c.bf16 %v1197_v63, %v1197_v63  ;;  %v1200_v5 = vmax.f32 %v978_v0, 0.0  ;;  %v970_v6 = vadd.f32 %v5855_v20, %v969_v3  ;;  %5156 = vmatpush3.bf16.msra.mxu0 %v5860_v39 }
 0x1ac   :  { %v4961_v7 = vpop.f32.mrf.mxu1  ;;  %5157 = vmatprep.subr.bf16.mxu0 %v5414_v2 }
 0x1ad   :  { %1534 = vst.msk [vmem:[#allocation2 + $0x30] sm:$0xf] %vm1285_vm2, %v4547_v4  ;;  %v4550_v8 = vpack.c.bf16 %v1200_v5, %v1200_v5  ;;  %v1198_v9 = vmax.f32 %v970_v6, 0.0  ;;  %v991_v10 = vadd.f32 %v4961_v7, %v5855_v20 }
 0x1ae   :  { %v982_v12 = vpop.f32.mrf.mxu1  ;;  %v5384_v39 = vld [vmem:[#allocation2 + $0x28] sm:$0xff]  }
 0x1af   :  { %1537 = vst.msk [vmem:[#allocation2 + $0x3c] sm:$0xf] %vm1285_vm2, %v4550_v8  ;;  %v4548_v13 = vpack.c.bf16 %v1198_v9, %v1198_v9  ;;  %v1203_v14 = vmax.f32 %v991_v10, 0.0  ;;  %v983_v60 = vadd.f32 %v5855_v20, %v982_v12  ;;  %5158 = vmatpush3.bf16.msra.mxu0 %v5414_v2 }
 0x1b0   :  { %v4962_v15 = vpop.f32.mrf.mxu1  ;;  %v5383_v16 = vld [vmem:[#allocation2 + $0x20] sm:$0xff]   ;;  %5159 = vmatprep.subr.bf16.mxu0 %v5417_v11 }
 0x1b1   :  { %1535 = vst.msk [vmem:[#allocation2 + $0x34] sm:$0xf] %vm1285_vm2, %v4548_v13  ;;  %v4553_v17 = vpack.c.bf16 %v1203_v14, %v1203_v14  ;;  %v1201_v18 = vmax.f32 %v983_v60, 0.0  ;;  %v994_v19 = vadd.f32 %v4962_v15, %v5855_v20  ;;  %5023 = vmatprep.mubr.msk.bf16.mxu0 %vm803_vm1, %v5383_v16  ;;  %5099 = vmatprep.mubr.msk.bf16.mxu1 %vm803_vm1, %v5383_v16 }
 0x1b2   :  { %v985_v22 = vpop.f32.mrf.mxu1  ;;  %5024 = vmatmul.mubr.msk.bf16.gmra.mxu0 %vm803_vm1, %v5384_v39  ;;  %5100 = vmatmul.mubr.msk.bf16.gmra.mxu1 %vm803_vm1, %v5384_v39 }
 0x1b3   :  { %1540 = vst.msk [vmem:[#allocation2 + $0x48] sm:$0xf] %vm1285_vm2, %v4553_v17  ;;  %v4551_v23 = vpack.c.bf16 %v1201_v18, %v1201_v18  ;;  %v1204_v24 = vmax.f32 %v994_v19, 0.0  ;;  %v986_v25 = vadd.f32 %v5855_v20, %v985_v22  ;;  %5160 = vmatpush3.bf16.msra.mxu0 %v5417_v11 }
 0x1b4   :  { %v4965_v26 = vpop.f32.mrf.mxu1  ;;  %5161 = vmatprep.subr.bf16.mxu0 %v5419_v21 }
 0x1b5   :  { %1538 = vst.msk [vmem:[#allocation2 + $0x40] sm:$0xf] %vm1285_vm2, %v4551_v23  ;;  %v4554_v27 = vpack.c.bf16 %v1204_v24, %v1204_v24  ;;  %v1202_v28 = vmax.f32 %v986_v25, 0.0  ;;  %v1007_v29 = vadd.f32 %v4965_v26, %v5855_v20 }
 0x1b6   :  { %v998_v30 = vpop.f32.mrf.mxu1  ;;  %v5386_v40 = vld [vmem:[#allocation2 + $0x38] sm:$0xff]  }
 0x1b7   :  { %1541 = vst.msk [vmem:[#allocation2 + $0x4c] sm:$0xf] %vm1285_vm2, %v4554_v27  ;;  %v4552_v31 = vpack.c.bf16 %v1202_v28, %v1202_v28  ;;  %v1207_v32 = vmax.f32 %v1007_v29, 0.0  ;;  %v999_v33 = vadd.f32 %v5855_v20, %v998_v30  ;;  %5162 = vmatpush3.bf16.msra.mxu0 %v5419_v21 }
 0x1b8   :  { %v4966_v34 = vpop.f32.mrf.mxu1  ;;  %v5385_v35 = vld [vmem:[#allocation2 + $0x30] sm:$0xff]  }
 0x1b9   :  { %1539 = vst.msk [vmem:[#allocation2 + $0x44] sm:$0xf] %vm1285_vm2, %v4552_v31  ;;  %v4557_v36 = vpack.c.bf16 %v1207_v32, %v1207_v32  ;;  %v1205_v37 = vmax.f32 %v999_v33, 0.0  ;;  %v1010_v38 = vadd.f32 %v4966_v34, %v5855_v20  ;;  %5027 = vmatprep.mubr.msk.bf16.mxu0 %vm803_vm1, %v5385_v35  ;;  %5103 = vmatprep.mubr.msk.bf16.mxu1 %vm803_vm1, %v5385_v35 }
 0x1ba   :  { %v1001_v41 = vpop.f32.mrf.mxu1  ;;  %5028 = vmatmul.mubr.msk.bf16.gmra.mxu0 %vm803_vm1, %v5386_v40  ;;  %5104 = vmatmul.mubr.msk.bf16.gmra.mxu1 %vm803_vm1, %v5386_v40 }
 0x1bb   :  { %1544 = vst.msk [vmem:[#allocation2 + $0x58] sm:$0xf] %vm1285_vm2, %v4557_v36  ;;  %v4555_v42 = vpack.c.bf16 %v1205_v37, %v1205_v37  ;;  %v1208_v43 = vmax.f32 %v1010_v38, 0.0  ;;  %v1002_v44 = vadd.f32 %v5855_v20, %v1001_v41 }
 0x1bc   :  { %v4969_v45 = vpop.f32.mrf.mxu1 }
 0x1bd   :  { %1542 = vst.msk [vmem:[#allocation2 + $0x50] sm:$0xf] %vm1285_vm2, %v4555_v42  ;;  %v4558_v46 = vpack.c.bf16 %v1208_v43, %v1208_v43  ;;  %v1206_v47 = vmax.f32 %v1002_v44, 0.0  ;;  %v1023_v48 = vadd.f32 %v4969_v45, %v5855_v20  ;;  %v5396_v44 = vld [vmem:[#allocation2 + $0xa0] sm:$0xff]  }
 0x1be   :  { %v1014_v49 = vpop.f32.mrf.mxu1  ;;  %v5388_v58 = vld [vmem:[#allocation2 + $0x48] sm:$0xff]  }
 0x1bf   :  { %1545 = vst.msk [vmem:[#allocation2 + $0x5c] sm:$0xf] %vm1285_vm2, %v4558_v46  ;;  %v4556_v50 = vpack.c.bf16 %v1206_v47, %v1206_v47  ;;  %v1211_v51 = vmax.f32 %v1023_v48, 0.0  ;;  %v1015_v52 = vadd.f32 %v5855_v20, %v1014_v49 }
 0x1c0   :  { %v4970_v53 = vpop.f32.mrf.mxu1  ;;  %v5387_v54 = vld [vmem:[#allocation2 + $0x40] sm:$0xff]  }
 0x1c1   :  { %1543 = vst.msk [vmem:[#allocation2 + $0x54] sm:$0xf] %vm1285_vm2, %v4556_v50  ;;  %v4561_v55 = vpack.c.bf16 %v1211_v51, %v1211_v51  ;;  %v1209_v56 = vmax.f32 %v1015_v52, 0.0  ;;  %v1026_v57 = vadd.f32 %v4970_v53, %v5855_v20  ;;  %5031 = vmatprep.mubr.msk.bf16.mxu0 %vm803_vm1, %v5387_v54  ;;  %5107 = vmatprep.mubr.msk.bf16.mxu1 %vm803_vm1, %v5387_v54 }
 0x1c2   :  { %v1017_v59 = vpop.f32.mrf.mxu1  ;;  %5032 = vmatmul.mubr.msk.bf16.gmra.mxu0 %vm803_vm1, %v5388_v58  ;;  %5108 = vmatmul.mubr.msk.bf16.gmra.mxu1 %vm803_vm1, %v5388_v58 }
 0x1c3   :  { %1548 = vst.msk [vmem:[#allocation2 + $0x68] sm:$0xf] %vm1285_vm2, %v4561_v55  ;;  %v4559_v61 = vpack.c.bf16 %v1209_v56, %v1209_v56  ;;  %v1212_v62 = vmax.f32 %v1026_v57, 0.0  ;;  %v1018_v63 = vadd.f32 %v5855_v20, %v1017_v59 }
 0x1c4   :  { %v4973_v0 = vpop.f32.mrf.mxu1 }
 0x1c5   :  { %1546 = vst.msk [vmem:[#allocation2 + $0x60] sm:$0xf] %vm1285_vm2, %v4559_v61  ;;  %v4562_v1 = vpack.c.bf16 %v1212_v62, %v1212_v62  ;;  %v1210_v2 = vmax.f32 %v1018_v63, 0.0  ;;  %v1039_v3 = vadd.f32 %v4973_v0, %v5855_v20  ;;  %v5398_v0 = vld [vmem:[#allocation2 + $0xa8] sm:$0xff]  }
 0x1c6   :  { %v1030_v4 = vpop.f32.mrf.mxu1  ;;  %v5390_v13 = vld [vmem:[#allocation2 + $0x58] sm:$0xff]  }
 0x1c7   :  { %1549 = vst.msk [vmem:[#allocation2 + $0x6c] sm:$0xf] %vm1285_vm2, %v4562_v1  ;;  %v4560_v5 = vpack.c.bf16 %v1210_v2, %v1210_v2  ;;  %v1215_v6 = vmax.f32 %v1039_v3, 0.0  ;;  %v1031_v7 = vadd.f32 %v5855_v20, %v1030_v4 }
 0x1c8   :  { %v4974_v8 = vpop.f32.mrf.mxu1  ;;  %v5389_v9 = vld [vmem:[#allocation2 + $0x50] sm:$0xff]  }
 0x1c9   :  { %1547 = vst.msk [vmem:[#allocation2 + $0x64] sm:$0xf] %vm1285_vm2, %v4560_v5  ;;  %v4565_v10 = vpack.c.bf16 %v1215_v6, %v1215_v6  ;;  %v1213_v11 = vmax.f32 %v1031_v7, 0.0  ;;  %v1042_v12 = vadd.f32 %v4974_v8, %v5855_v20  ;;  %5035 = vmatprep.mubr.msk.bf16.mxu0 %vm803_vm1, %v5389_v9  ;;  %5111 = vmatprep.mubr.msk.bf16.mxu1 %vm803_vm1, %v5389_v9 }
 0x1ca   :  { %v1033_v14 = vpop.f32.mrf.mxu1  ;;  %5036 = vmatmul.mubr.msk.bf16.gmra.mxu0 %vm803_vm1, %v5390_v13  ;;  %5112 = vmatmul.mubr.msk.bf16.gmra.mxu1 %vm803_vm1, %v5390_v13 }
 0x1cb   :  { %1552 = vst.msk [vmem:[#allocation2 + $0x78] sm:$0xf] %vm1285_vm2, %v4565_v10  ;;  %v4563_v60 = vpack.c.bf16 %v1213_v11, %v1213_v11  ;;  %v1216_v15 = vmax.f32 %v1042_v12, 0.0  ;;  %v1034_v16 = vadd.f32 %v5855_v20, %v1033_v14 }
 0x1cc   :  { %v4977_v17 = vpop.f32.mrf.mxu1 }
 0x1cd   :  { %1550 = vst.msk [vmem:[#allocation2 + $0x70] sm:$0xf] %vm1285_vm2, %v4563_v60  ;;  %v4566_v18 = vpack.c.bf16 %v1216_v15, %v1216_v15  ;;  %v1214_v19 = vmax.f32 %v1034_v16, 0.0  ;;  %v1055_v39 = vadd.f32 %v4977_v17, %v5855_v20 }
 0x1ce   :  { %v1046_v21 = vpop.f32.mrf.mxu1  ;;  %v5392_v30 = vld [vmem:[#allocation2 + $0x68] sm:$0xff]  }
 0x1cf   :  { %1553 = vst.msk [vmem:[#allocation2 + $0x7c] sm:$0xf] %vm1285_vm2, %v4566_v18  ;;  %v4564_v22 = vpack.c.bf16 %v1214_v19, %v1214_v19  ;;  %v1219_v23 = vmax.f32 %v1055_v39, 0.0  ;;  %v1047_v24 = vadd.f32 %v5855_v20, %v1046_v21 }
 0x1d0   :  { %v4978_v25 = vpop.f32.mrf.mxu1  ;;  %v5391_v26 = vld [vmem:[#allocation2 + $0x60] sm:$0xff]  }
 0x1d1   :  { %1551 = vst.msk [vmem:[#allocation2 + $0x74] sm:$0xf] %vm1285_vm2, %v4564_v22  ;;  %v4569_v27 = vpack.c.bf16 %v1219_v23, %v1219_v23  ;;  %v1217_v28 = vmax.f32 %v1047_v24, 0.0  ;;  %v1058_v29 = vadd.f32 %v4978_v25, %v5855_v20  ;;  %5039 = vmatprep.mubr.msk.bf16.mxu0 %vm803_vm1, %v5391_v26  ;;  %5115 = vmatprep.mubr.msk.bf16.mxu1 %vm803_vm1, %v5391_v26 }
 0x1d2   :  { %v1049_v31 = vpop.f32.mrf.mxu1  ;;  %5040 = vmatmul.mubr.msk.bf16.gmra.mxu0 %vm803_vm1, %v5392_v30  ;;  %5116 = vmatmul.mubr.msk.bf16.gmra.mxu1 %vm803_vm1, %v5392_v30 }
 0x1d3   :  { %1556 = vst.msk [vmem:[#allocation2 + $0x88] sm:$0xf] %vm1285_vm2, %v4569_v27  ;;  %v4567_v32 = vpack.c.bf16 %v1217_v28, %v1217_v28  ;;  %v1220_v33 = vmax.f32 %v1058_v29, 0.0  ;;  %v1050_v34 = vadd.f32 %v5855_v20, %v1049_v31 }
 0x1d4   :  { %v4981_v35 = vpop.f32.mrf.mxu1 }
 0x1d5   :  { %1554 = vst.msk [vmem:[#allocation2 + $0x80] sm:$0xf] %vm1285_vm2, %v4567_v32  ;;  %v4570_v36 = vpack.c.bf16 %v1220_v33, %v1220_v33  ;;  %v1218_v37 = vmax.f32 %v1050_v34, 0.0  ;;  %v1071_v38 = vadd.f32 %v4981_v35, %v5855_v20 }
 0x1d6   :  { %v1062_v40 = vpop.f32.mrf.mxu1  ;;  %v5394_v50 = vld [vmem:[#allocation2 + $0x78] sm:$0xff]  }
 0x1d7   :  { %1557 = vst.msk [vmem:[#allocation2 + $0x8c] sm:$0xf] %vm1285_vm2, %v4570_v36  ;;  %v4568_v41 = vpack.c.bf16 %v1218_v37, %v1218_v37  ;;  %v1223_v42 = vmax.f32 %v1071_v38, 0.0  ;;  %v1063_v43 = vadd.f32 %v5855_v20, %v1062_v40 }
 0x1d8   :  { %v4982_v45 = vpop.f32.mrf.mxu1  ;;  %v5393_v46 = vld [vmem:[#allocation2 + $0x70] sm:$0xff]  }
 0x1d9   :  { %1555 = vst.msk [vmem:[#allocation2 + $0x84] sm:$0xf] %vm1285_vm2, %v4568_v41  ;;  %v4573_v47 = vpack.c.bf16 %v1223_v42, %v1223_v42  ;;  %v1221_v48 = vmax.f32 %v1063_v43, 0.0  ;;  %v1074_v49 = vadd.f32 %v4982_v45, %v5855_v20  ;;  %5043 = vmatprep.mubr.msk.bf16.mxu0 %vm803_vm1, %v5393_v46  ;;  %5119 = vmatprep.mubr.msk.bf16.mxu1 %vm803_vm1, %v5393_v46 }
 0x1da   :  { %v1065_v51 = vpop.f32.mrf.mxu1  ;;  %5044 = vmatmul.mubr.msk.bf16.gmra.mxu0 %vm803_vm1, %v5394_v50  ;;  %5120 = vmatmul.mubr.msk.bf16.gmra.mxu1 %vm803_vm1, %v5394_v50 }
 0x1db   :  { %1560 = vst.msk [vmem:[#allocation2 + $0xb8] sm:$0xf] %vm1285_vm2, %v4573_v47  ;;  %v4571_v52 = vpack.c.bf16 %v1221_v48, %v1221_v48  ;;  %v1224_v53 = vmax.f32 %v1074_v49, 0.0  ;;  %v1066_v54 = vadd.f32 %v5855_v20, %v1065_v51  ;;  %5123 = vmatprep.mubr.msk.bf16.mxu1 %vm803_vm1, %v5396_v44 }
 0x1dc   :  { %v4985_v55 = vpop.f32.mrf.mxu1 }
 0x1dd   :  { %1558 = vst.msk [vmem:[#allocation2 + $0xb0] sm:$0xf] %vm1285_vm2, %v4571_v52  ;;  %v4574_v56 = vpack.c.bf16 %v1224_v53, %v1224_v53  ;;  %v1222_v57 = vmax.f32 %v1066_v54, 0.0  ;;  %v1087_v58 = vadd.f32 %v4985_v55, %v5855_v20 }
 0x1de   :  { %v1078_v59 = vpop.f32.mrf.mxu1  ;;  %v5397_v6 = vld [vmem:[#allocation2 + $0x88] sm:$0xff]  }
 0x1df   :  { %1561 = vst.msk [vmem:[#allocation2 + $0xbc] sm:$0xf] %vm1285_vm2, %v4574_v56  ;;  %v4572_v61 = vpack.c.bf16 %v1222_v57, %v1222_v57  ;;  %v1227_v62 = vmax.f32 %v1087_v58, 0.0  ;;  %v1079_v63 = vadd.f32 %v5855_v20, %v1078_v59 }
 0x1e0   :  { %v4986_v1 = vpop.f32.mrf.mxu1  ;;  %v5395_v2 = vld [vmem:[#allocation2 + $0x80] sm:$0xff]  }
 0x1e1   :  { %1559 = vst.msk [vmem:[#allocation2 + $0xb4] sm:$0xf] %vm1285_vm2, %v4572_v61  ;;  %v4577_v3 = vpack.c.bf16 %v1227_v62, %v1227_v62  ;;  %v1225_v4 = vmax.f32 %v1079_v63, 0.0  ;;  %v1090_v5 = vadd.f32 %v4986_v1, %v5855_v20  ;;  %5047 = vmatprep.mubr.msk.bf16.mxu0 %vm803_vm1, %v5395_v2 }
 0x1e2   :  { %v1081_v7 = vpop.f32.mrf.mxu1  ;;  %5048 = vmatmul.mubr.msk.bf16.gmra.mxu0 %vm803_vm1, %v5397_v6  ;;  %5124 = vmatmul.mubr.msk.bf16.gmra.mxu1 %vm803_vm1, %v5398_v0 }
 0x1e3   :  { %1564 = vst.msk [vmem:[#allocation2 + $0xc8] sm:$0xf] %vm1285_vm2, %v4577_v3  ;;  %v4575_v8 = vpack.c.bf16 %v1225_v4, %v1225_v4  ;;  %v1228_v9 = vmax.f32 %v1090_v5, 0.0  ;;  %v1082_v10 = vadd.f32 %v5855_v20, %v1081_v7 }
 0x1e4   :  { %v4989_v11 = vpop.f32.mrf.mxu1 }
 0x1e5   :  { %1562 = vst.msk [vmem:[#allocation2 + $0xc0] sm:$0xf] %vm1285_vm2, %v4575_v8  ;;  %v4578_v12 = vpack.c.bf16 %v1228_v9, %v1228_v9  ;;  %v1226_v13 = vmax.f32 %v1082_v10, 0.0  ;;  %v1103_v14 = vadd.f32 %v4989_v11, %v5855_v20 }
 0x1e6   :  { %v1094_v60 = vpop.f32.mrf.mxu1  ;;  %v5400_v23 = vld [vmem:[#allocation2 + $0xb8] sm:$0xff]  }
 0x1e7   :  { %1565 = vst.msk [vmem:[#allocation2 + $0xcc] sm:$0xf] %vm1285_vm2, %v4578_v12  ;;  %v4576_v15 = vpack.c.bf16 %v1226_v13, %v1226_v13  ;;  %v1231_v16 = vmax.f32 %v1103_v14, 0.0  ;;  %v1095_v17 = vadd.f32 %v5855_v20, %v1094_v60 }
 0x1e8   :  { %v4990_v18 = vpop.f32.mrf.mxu1  ;;  %v5399_v19 = vld [vmem:[#allocation2 + $0xb0] sm:$0xff]  }
 0x1e9   :  { %1563 = vst.msk [vmem:[#allocation2 + $0xc4] sm:$0xf] %vm1285_vm2, %v4576_v15  ;;  %v4581_v39 = vpack.c.bf16 %v1231_v16, %v1231_v16  ;;  %v1229_v21 = vmax.f32 %v1095_v17, 0.0  ;;  %v1106_v22 = vadd.f32 %v4990_v18, %v5855_v20  ;;  %5051 = vmatprep.mubr.msk.bf16.mxu0 %vm803_vm1, %v5399_v19  ;;  %5127 = vmatprep.mubr.msk.bf16.mxu1 %vm803_vm1, %v5399_v19 }
 0x1ea   :  { %v1097_v24 = vpop.f32.mrf.mxu1  ;;  %5052 = vmatmul.mubr.msk.bf16.gmra.mxu0 %vm803_vm1, %v5400_v23  ;;  %5128 = vmatmul.mubr.msk.bf16.gmra.mxu1 %vm803_vm1, %v5400_v23 }
 0x1eb   :  { %1568 = vst.msk [vmem:[#allocation2 + $0xd8] sm:$0xf] %vm1285_vm2, %v4581_v39  ;;  %v4579_v25 = vpack.c.bf16 %v1229_v21, %v1229_v21  ;;  %v1232_v26 = vmax.f32 %v1106_v22, 0.0  ;;  %v1098_v27 = vadd.f32 %v5855_v20, %v1097_v24 }
 0x1ec   :  { %v4993_v28 = vpop.f32.mrf.mxu1 }
 0x1ed   :  { %1566 = vst.msk [vmem:[#allocation2 + $0xd0] sm:$0xf] %vm1285_vm2, %v4579_v25  ;;  %v4582_v29 = vpack.c.bf16 %v1232_v26, %v1232_v26  ;;  %v1230_v30 = vmax.f32 %v1098_v27, 0.0  ;;  %v1119_v31 = vadd.f32 %v4993_v28, %v5855_v20 }
 0x1ee   :  { %v1110_v32 = vpop.f32.mrf.mxu1  ;;  %v5402_v42 = vld [vmem:[#allocation2 + $0xc8] sm:$0xff]  }
 0x1ef   :  { %1569 = vst.msk [vmem:[#allocation2 + $0xdc] sm:$0xf] %vm1285_vm2, %v4582_v29  ;;  %v4580_v33 = vpack.c.bf16 %v1230_v30, %v1230_v30  ;;  %v1235_v34 = vmax.f32 %v1119_v31, 0.0  ;;  %v1111_v35 = vadd.f32 %v5855_v20, %v1110_v32 }
 0x1f0   :  { %v4994_v36 = vpop.f32.mrf.mxu1  ;;  %v5401_v37 = vld [vmem:[#allocation2 + $0xc0] sm:$0xff]  }
 0x1f1   :  { %1567 = vst.msk [vmem:[#allocation2 + $0xd4] sm:$0xf] %vm1285_vm2, %v4580_v33  ;;  %v4585_v38 = vpack.c.bf16 %v1235_v34, %v1235_v34  ;;  %v1233_v40 = vmax.f32 %v1111_v35, 0.0  ;;  %v1122_v41 = vadd.f32 %v4994_v36, %v5855_v20  ;;  %5055 = vmatprep.mubr.msk.bf16.mxu0 %vm803_vm1, %v5401_v37  ;;  %5131 = vmatprep.mubr.msk.bf16.mxu1 %vm803_vm1, %v5401_v37 }
 0x1f2   :  { %v1113_v43 = vpop.f32.mrf.mxu1  ;;  %5056 = vmatmul.mubr.msk.bf16.gmra.mxu0 %vm803_vm1, %v5402_v42  ;;  %5132 = vmatmul.mubr.msk.bf16.gmra.mxu1 %vm803_vm1, %v5402_v42 }
 0x1f3   :  { %1572 = vst.msk [vmem:[#allocation2 + $0xe8] sm:$0xf] %vm1285_vm2, %v4585_v38  ;;  %v4583_v44 = vpack.c.bf16 %v1233_v40, %v1233_v40  ;;  %v1236_v45 = vmax.f32 %v1122_v41, 0.0  ;;  %v1114_v46 = vadd.f32 %v5855_v20, %v1113_v43 }
 0x1f4   :  { %v4997_v47 = vpop.f32.mrf.mxu1 }
 0x1f5   :  { %1570 = vst.msk [vmem:[#allocation2 + $0xe0] sm:$0xf] %vm1285_vm2, %v4583_v44  ;;  %v4586_v48 = vpack.c.bf16 %v1236_v45, %v1236_v45  ;;  %v1234_v49 = vmax.f32 %v1114_v46, 0.0  ;;  %v1135_v50 = vadd.f32 %v4997_v47, %v5855_v20 }
 0x1f6   :  { %v1126_v51 = vpop.f32.mrf.mxu1  ;;  %v5404_v61 = vld [vmem:[#allocation2 + $0xd8] sm:$0xff]  }
 0x1f7   :  { %1573 = vst.msk [vmem:[#allocation2 + $0xec] sm:$0xf] %vm1285_vm2, %v4586_v48  ;;  %v4584_v52 = vpack.c.bf16 %v1234_v49, %v1234_v49  ;;  %v1239_v53 = vmax.f32 %v1135_v50, 0.0  ;;  %v1127_v54 = vadd.f32 %v5855_v20, %v1126_v51 }
 0x1f8   :  { %v4998_v55 = vpop.f32.mrf.mxu1  ;;  %v5403_v56 = vld [vmem:[#allocation2 + $0xd0] sm:$0xff]  }
 0x1f9   :  { %1571 = vst.msk [vmem:[#allocation2 + $0xe4] sm:$0xf] %vm1285_vm2, %v4584_v52  ;;  %v4589_v57 = vpack.c.bf16 %v1239_v53, %v1239_v53  ;;  %v1237_v58 = vmax.f32 %v1127_v54, 0.0  ;;  %v1138_v59 = vadd.f32 %v4998_v55, %v5855_v20  ;;  %5059 = vmatprep.mubr.msk.bf16.mxu0 %vm803_vm1, %v5403_v56  ;;  %5135 = vmatprep.mubr.msk.bf16.mxu1 %vm803_vm1, %v5403_v56  ;;  %v5467_v55 = vld [vmem:[%s6742_s4] ss:$0 sm:$0xff] }
 0x1fa   :  { %v1129_v62 = vpop.f32.mrf.mxu1  ;;  %5060 = vmatmul.mubr.msk.bf16.gmra.mxu0 %vm803_vm1, %v5404_v61  ;;  %5136 = vmatmul.mubr.msk.bf16.gmra.mxu1 %vm803_vm1, %v5404_v61 }
 0x1fb   :  { %1576 = vst.msk [vmem:[#allocation2 + $0xf8] sm:$0xf] %vm1285_vm2, %v4589_v57  ;;  %v4587_v63 = vpack.c.bf16 %v1237_v58, %v1237_v58  ;;  %v1240_v0 = vmax.f32 %v1138_v59, 0.0  ;;  %v1130_v1 = vadd.f32 %v5855_v20, %v1129_v62 }
 0x1fc   :  { %v5001_v2 = vpop.f32.mrf.mxu1 }
 0x1fd   :  { %1574 = vst.msk [vmem:[#allocation2 + $0xf0] sm:$0xf] %vm1285_vm2, %v4587_v63  ;;  %v4590_v3 = vpack.c.bf16 %v1240_v0, %v1240_v0  ;;  %v1238_v4 = vmax.f32 %v1130_v1, 0.0  ;;  %v1151_v5 = vadd.f32 %v5001_v2, %v5855_v20  ;;  %v5418_v0 = vld [vmem:[#allocation2 + $0x20] sm:$0xff]   ;;  %v5420_v1 = vld [vmem:[#allocation2 + $0x28] sm:$0xff]   ;;  %v5421_v2 = vld [vmem:[#allocation2 + $0x30] sm:$0xff]  }
 0x1fe   :  { %v1142_v6 = vpop.f32.mrf.mxu1  ;;  %v5406_v60 = vld [vmem:[#allocation2 + $0xe8] sm:$0xff]  }
 0x1ff   :  { %1577 = vst.msk [vmem:[#allocation2 + $0xfc] sm:$0xf] %vm1285_vm2, %v4590_v3  ;;  %v4588_v7 = vpack.c.bf16 %v1238_v4, %v1238_v4  ;;  %v1243_v8 = vmax.f32 %v1151_v5, 0.0  ;;  %v1143_v9 = vadd.f32 %v5855_v20, %v1142_v6  ;;  %v5422_v3 = vld [vmem:[#allocation2 + $0x38] sm:$0xff]   ;;  %v5423_v4 = vld [vmem:[#allocation2 + $0x40] sm:$0xff]   ;;  %v5424_v5 = vld [vmem:[#allocation2 + $0x48] sm:$0xff]  }
 0x200   :  { %v5002_v10 = vpop.f32.mrf.mxu1  ;;  %v5405_v11 = vld [vmem:[#allocation2 + $0xe0] sm:$0xff]   ;;  %v5425_v6 = vld [vmem:[#allocation2 + $0x50] sm:$0xff]  }
 0x201   :  { %1575 = vst.msk [vmem:[#allocation2 + $0xf4] sm:$0xf] %vm1285_vm2, %v4588_v7  ;;  %v4593_v12 = vpack.c.bf16 %v1243_v8, %v1243_v8  ;;  %v1241_v13 = vmax.f32 %v1143_v9, 0.0  ;;  %v1154_v14 = vadd.f32 %v5002_v10, %v5855_v20  ;;  %5063 = vmatprep.mubr.msk.bf16.mxu0 %vm803_vm1, %v5405_v11  ;;  %5139 = vmatprep.mubr.msk.bf16.mxu1 %vm803_vm1, %v5405_v11  ;;  %v5426_v7 = vld [vmem:[#allocation2 + $0x58] sm:$0xff]   ;;  %v5427_v8 = vld [vmem:[#allocation2 + $0x60] sm:$0xff]   ;;  %v5428_v9 = vld [vmem:[#allocation2 + $0x68] sm:$0xff]  }
 0x202   :  { %v1145_v15 = vpop.f32.mrf.mxu1  ;;  %5064 = vmatmul.mubr.msk.bf16.gmra.mxu0 %vm803_vm1, %v5406_v60  ;;  %5140 = vmatmul.mubr.msk.bf16.gmra.mxu1 %vm803_vm1, %v5406_v60  ;;  %v5429_v10 = vld [vmem:[#allocation2 + $0x70] sm:$0xff]   ;;  %v5430_v11 = vld [vmem:[#allocation2 + $0x78] sm:$0xff]  }
 0x203   :  { %1580 = vst.msk [vmem:[#allocation2 + $0x108] sm:$0xf] %vm1285_vm2, %v4593_v12  ;;  %v4591_v16 = vpack.c.bf16 %v1241_v13, %v1241_v13  ;;  %v1244_v17 = vmax.f32 %v1154_v14, 0.0  ;;  %v1146_v18 = vadd.f32 %v5855_v20, %v1145_v15  ;;  %v5431_v12 = vld [vmem:[#allocation2 + $0x80] sm:$0xff]   ;;  %v5433_v13 = vld [vmem:[#allocation2 + $0x90] sm:$0xff]   ;;  %v5432_v14 = vld [vmem:[#allocation2 + $0x88] sm:$0xff]  }
 0x204   :  { %v5005_v19 = vpop.f32.mrf.mxu1  ;;  %v5451_v60 = vld [vmem:[%s6745_s7 + $0x38] sm:$0xff]   ;;  %v5452_v15 = vld [vmem:[%s6745_s7 + $0x30] sm:$0xff]  }
 0x205   :  { %1578 = vst.msk [vmem:[#allocation2 + $0x100] sm:$0xf] %vm1285_vm2, %v4591_v16  ;;  %v4594_v39 = vpack.c.bf16 %v1244_v17, %v1244_v17  ;;  %v1242_v21 = vmax.f32 %v1146_v18, 0.0  ;;  %v1167_v22 = vadd.f32 %v5005_v19, %v5855_v20  ;;  %5227 = vmatprep.subr.bf16.mxu1 %v5451_v60  ;;  %v5434_v16 = vld [vmem:[#allocation2 + $0x98] sm:$0xff]   ;;  %v5435_v17 = vld [vmem:[#allocation2 + $0xc0] sm:$0xff]   ;;  %v5453_v18 = vld [vmem:[%s6745_s7 + $0x28] sm:$0xff]  }
 0x206   :  { %v1158_v23 = vpop.f32.mrf.mxu1  ;;  %v5408_v32 = vld [vmem:[#allocation2 + $0xf8] sm:$0xff]   ;;  %5228 = vmatpush3.bf16.msra.mxu1 %v5451_v60  ;;  %v5454_v19 = vld [vmem:[%s6745_s7 + $0x20] sm:$0xff]  }
 0x207   :  { %1581 = vst.msk [vmem:[#allocation2 + $0x10c] sm:$0xf] %vm1285_vm2, %v4594_v39  ;;  %v4592_v24 = vpack.c.bf16 %v1242_v21, %v1242_v21  ;;  %v1247_v25 = vmax.f32 %v1167_v22, 0.0  ;;  %v1159_v26 = vadd.f32 %v5855_v20, %v1158_v23  ;;  %5229 = vmatprep.subr.bf16.mxu1 %v5452_v15  ;;  %v5436_v39 = vld [vmem:[#allocation2 + $0xc8] sm:$0xff]   ;;  %v5437_v21 = vld [vmem:[#allocation2 + $0xd0] sm:$0xff]   ;;  %v5455_v22 = vld [vmem:[%s6745_s7 + $0x18] sm:$0xff]  }
 0x208   :  { %v5006_v27 = vpop.f32.mrf.mxu1  ;;  %v5407_v28 = vld [vmem:[#allocation2 + $0xf0] sm:$0xff]  }
 0x209   :  { %1579 = vst.msk [vmem:[#allocation2 + $0x104] sm:$0xf] %vm1285_vm2, %v4592_v24  ;;  %v4597_v29 = vpack.c.bf16 %v1247_v25, %v1247_v25  ;;  %v1245_v30 = vmax.f32 %v1159_v26, 0.0  ;;  %v1170_v31 = vadd.f32 %v5006_v27, %v5855_v20  ;;  %5067 = vmatprep.mubr.msk.bf16.mxu0 %vm803_vm1, %v5407_v28  ;;  %5143 = vmatprep.mubr.msk.bf16.mxu1 %vm803_vm1, %v5407_v28  ;;  %v5456_v26 = vld [vmem:[%s6745_s7 + $0x10] sm:$0xff]  }
 0x20a   :  { %v1161_v33 = vpop.f32.mrf.mxu1  ;;  %5068 = vmatmul.mubr.msk.bf16.gmra.mxu0 %vm803_vm1, %v5408_v32  ;;  %5144 = vmatmul.mubr.msk.bf16.gmra.mxu1 %vm803_vm1, %v5408_v32  ;;  %v5457_v32 = vld [vmem:[%s6745_s7 + $0x8] sm:$0xff]  }
 0x20b   :  { %1584 = vst.msk [vmem:[#allocation2 + $0x118] sm:$0xf] %vm1285_vm2, %v4597_v29  ;;  %v4595_v34 = vpack.c.bf16 %v1245_v30, %v1245_v30  ;;  %v1248_v35 = vmax.f32 %v1170_v31, 0.0  ;;  %v1162_v36 = vadd.f32 %v5855_v20, %v1161_v33  ;;  %5230 = vmatpush3.bf16.msra.mxu1 %v5452_v15  ;;  %v5438_v30 = vld [vmem:[#allocation2 + $0xd8] sm:$0xff]   ;;  %v5439_v31 = vld [vmem:[#allocation2 + $0xe0] sm:$0xff]  }
 0x20c   :  { %v5009_v37 = vpop.f32.mrf.mxu1  ;;  %5231 = vmatprep.subr.bf16.mxu1 %v5453_v18  ;;  %v5450_v15 = vld [vmem:[#allocation2 + $0x138] sm:$0xff]  }
 0x20d   :  { %1582 = vst.msk [vmem:[#allocation2 + $0x110] sm:$0xf] %vm1285_vm2, %v4595_v34  ;;  %v4598_v38 = vpack.c.bf16 %v1248_v35, %v1248_v35  ;;  %v1246_v40 = vmax.f32 %v1162_v36, 0.0  ;;  %v1183_v41 = vadd.f32 %v5009_v37, %v5855_v20  ;;  %v5458_v36 = vld [vmem:[%s6745_s7] sm:$0xff]  }
 0x20e   :  { %v1174_v42 = vpop.f32.mrf.mxu1  ;;  %v5411_v51 = vld [vmem:[#allocation2 + $0x108] sm:$0xff]  }
 0x20f   :  { %1585 = vst.msk [vmem:[#allocation2 + $0x11c] sm:$0xf] %vm1285_vm2, %v4598_v38  ;;  %v4596_v43 = vpack.c.bf16 %v1246_v40, %v1246_v40  ;;  %v1251_v44 = vmax.f32 %v1183_v41, 0.0  ;;  %v1175_v45 = vadd.f32 %v5855_v20, %v1174_v42  ;;  %5232 = vmatpush3.bf16.msra.mxu1 %v5453_v18  ;;  %v5440_v41 = vld [vmem:[#allocation2 + $0xe8] sm:$0xff]   ;;  %v5441_v42 = vld [vmem:[#allocation2 + $0xf0] sm:$0xff]  }
 0x210   :  { %v5010_v46 = vpop.f32.mrf.mxu1  ;;  %v5410_v47 = vld [vmem:[#allocation2 + $0x100] sm:$0xff]   ;;  %5233 = vmatprep.subr.bf16.mxu1 %v5454_v19 }
 0x211   :  { %1583 = vst.msk [vmem:[#allocation2 + $0x114] sm:$0xf] %vm1285_vm2, %v4596_v43  ;;  %v4601_v48 = vpack.c.bf16 %v1251_v44, %v1251_v44  ;;  %v1249_v49 = vmax.f32 %v1175_v45, 0.0  ;;  %v1186_v50 = vadd.f32 %v5010_v46, %v5855_v20  ;;  %5071 = vmatprep.mubr.msk.bf16.mxu0 %vm803_vm1, %v5410_v47  ;;  %5147 = vmatprep.mubr.msk.bf16.mxu1 %vm803_vm1, %v5410_v47 }
 0x212   :  { %v1177_v52 = vpop.f32.mrf.mxu1  ;;  %5072 = vmatmul.mubr.msk.bf16.gmra.mxu0 %vm803_vm1, %v5411_v51  ;;  %5148 = vmatmul.mubr.msk.bf16.gmra.mxu1 %vm803_vm1, %v5411_v51 }
 0x213   :  { %1588 = vst.msk [vmem:[#allocation2 + $0x128] sm:$0xf] %vm1285_vm2, %v4601_v48  ;;  %v4599_v53 = vpack.c.bf16 %v1249_v49, %v1249_v49  ;;  %v1252_v54 = vmax.f32 %v1186_v50, 0.0  ;;  %v1178_v56 = vadd.f32 %v5467_v55, %v1177_v52  ;;  %5234 = vmatpush3.bf16.msra.mxu1 %v5454_v19  ;;  %v5442_v49 = vld [vmem:[#allocation2 + $0xf8] sm:$0xff]   ;;  %v5443_v50 = vld [vmem:[#allocation2 + $0x100] sm:$0xff]  }
 0x214   :  { %v6097_v23 = vpop.f32.mrf.mxu1  ;;  %5235 = vmatprep.subr.bf16.mxu1 %v5455_v22 }
 0x215   :  { %1586 = vst.msk [vmem:[#allocation2 + $0x120] sm:$0xf] %vm1285_vm2, %v4599_v53  ;;  %v4602_v20 = vpack.c.bf16 %v1252_v54, %v1252_v54  ;;  %v1250_v57 = vmax.f32 %v1178_v56, 0.0 }
 0x216   :  { %v5413_v61 = vld [vmem:[#allocation2 + $0x118] sm:$0xff]   ;;  %v6108_v27 = vpop.f32.mrf.mxu1 }
 0x217   :  { %1589 = vst.msk [vmem:[#allocation2 + $0x12c] sm:$0xf] %vm1285_vm2, %v4602_v20  ;;  %v4600_v58 = vpack.c.bf16 %v1250_v57, %v1250_v57  ;;  %5236 = vmatpush3.bf16.msra.mxu1 %v5455_v22  ;;  %v5444_v20 = vld [vmem:[#allocation2 + $0x108] sm:$0xff]  }
 0x218   :  { %v5412_v59 = vld [vmem:[#allocation2 + $0x110] sm:$0xff]   ;;  %5237 = vmatprep.subr.bf16.mxu1 %v5456_v26  ;;  %v6117_v33 = vpop.f32.mrf.mxu1 }
 0x219   :  { %1587 = vst.msk [vmem:[#allocation2 + $0x124] sm:$0xf] %vm1285_vm2, %v4600_v58  ;;  %5075 = vmatprep.mubr.msk.bf16.mxu0 %vm803_vm1, %v5412_v59  ;;  %5151 = vmatprep.mubr.msk.bf16.mxu1 %vm803_vm1, %v5412_v59  ;;  %v5445_v57 = vld [vmem:[#allocation2 + $0x110] sm:$0xff]  }
 0x21a   :  { %5076 = vmatmul.mubr.msk.bf16.gmra.mxu0 %vm803_vm1, %v5413_v61  ;;  %5152 = vmatmul.mubr.msk.bf16.gmra.mxu1 %vm803_vm1, %v5413_v61  ;;  %v6128_v37 = vpop.f32.mrf.mxu1 }
 0x21b   :  { %5238 = vmatpush3.bf16.msra.mxu1 %v5456_v26 }
 0x21c   :  { %5239 = vmatprep.subr.bf16.mxu1 %v5457_v32 }
 0x21e   :  { %v5416_v63 = vld [vmem:[#allocation2 + $0x128] sm:$0xff]  }
 0x21f   :  { %5240 = vmatpush3.bf16.msra.mxu1 %v5457_v32 }
 0x220   :  { %v5415_v62 = vld [vmem:[#allocation2 + $0x120] sm:$0xff]   ;;  %5241 = vmatprep.subr.bf16.mxu1 %v5458_v36 }
 0x221   :  { %5079 = vmatprep.mubr.msk.bf16.mxu0 %vm803_vm1, %v5415_v62 }
 0x222   :  { %5080 = vmatmul.mubr.msk.bf16.gmra.mxu0 %vm803_vm1, %v5416_v63 }
 0x223   :  { %5163 = vmatprep.mubr.msk.bf16.mxu0 %vm803_vm1, %v5418_v0  ;;  %5242 = vmatpush3.bf16.msra.mxu1 %v5458_v36 }
 0x22a   :  { %5164 = vmatmul.mubr.msk.bf16.vlgmr.msra.gmra.mxu0 %vm803_vm1, %v5420_v1  ;;  %v5446_v1 = vld [vmem:[#allocation2 + $0x118] sm:$0xff]  }
 0x22b   :  { %5167 = vmatprep.mubr.msk.bf16.mxu0 %vm803_vm1, %v5421_v2  ;;  %v5447_v2 = vld [vmem:[#allocation2 + $0x120] sm:$0xff]  }
 0x232   :  { %5168 = vmatmul.mubr.msk.bf16.gmra.mxu0 %vm803_vm1, %v5422_v3 }
 0x233   :  { %5171 = vmatprep.mubr.msk.bf16.mxu0 %vm803_vm1, %v5423_v4 }
 0x23a   :  { %5172 = vmatmul.mubr.msk.bf16.gmra.mxu0 %vm803_vm1, %v5424_v5 }
 0x23b   :  { %5175 = vmatprep.mubr.msk.bf16.mxu0 %vm803_vm1, %v5425_v6 }
 0x242   :  { %5176 = vmatmul.mubr.msk.bf16.gmra.mxu0 %vm803_vm1, %v5426_v7 }
 0x243   :  { %5179 = vmatprep.mubr.msk.bf16.mxu0 %vm803_vm1, %v5427_v8  ;;  %v5449_v8 = vld [vmem:[#allocation2 + $0x130] sm:$0xff]  }
 0x24a   :  { %5180 = vmatmul.mubr.msk.bf16.gmra.mxu0 %vm803_vm1, %v5428_v9 }
 0x24b   :  { %5183 = vmatprep.mubr.msk.bf16.mxu0 %vm803_vm1, %v5429_v10  ;;  %v5448_v10 = vld [vmem:[#allocation2 + $0x128] sm:$0xff]  }
 0x252   :  { %5184 = vmatmul.mubr.msk.bf16.gmra.mxu0 %vm803_vm1, %v5430_v11 }
 0x253   :  { %5187 = vmatprep.mubr.msk.bf16.mxu0 %vm803_vm1, %v5431_v12 }
 0x25a   :  { %5188 = vmatmul.mubr.msk.bf16.gmra.mxu0 %vm803_vm1, %v5432_v14 }
 0x25b   :  { %5191 = vmatprep.mubr.msk.bf16.mxu0 %vm803_vm1, %v5433_v13 }
 0x262   :  { %5192 = vmatmul.mubr.msk.bf16.gmra.mxu0 %vm803_vm1, %v5434_v16 }
 0x263   :  { %5195 = vmatprep.mubr.msk.bf16.mxu0 %vm803_vm1, %v5435_v17 }
 0x26a   :  { %v6099_v24 = vpop.f32.mrf.mxu0  ;;  %5196 = vmatmul.mubr.msk.bf16.gmra.mxu0 %vm803_vm1, %v5436_v39  ;;  %v6134_v43 = vpop.f32.mrf.mxu1 }
 0x26b   :  { %5199 = vmatprep.mubr.msk.bf16.mxu0 %vm803_vm1, %v5437_v21 }
 0x26c   :  { %v6103_v25 = vpop.f32.mrf.mxu0  ;;  %v6142_v46 = vpop.f32.mrf.mxu1 }
 0x26e   :  { %v6110_v28 = vpop.f32.mrf.mxu0  ;;  %v6148_v51 = vpop.f32.mrf.mxu1 }
 0x270   :  { %v6112_v29 = vpop.f32.mrf.mxu0  ;;  %v6156_v54 = vpop.f32.mrf.mxu1 }
 0x272   :  { %v6119_v34 = vpop.f32.mrf.mxu0  ;;  %5200 = vmatmul.mubr.msk.bf16.gmra.mxu0 %vm803_vm1, %v5438_v30  ;;  %v6162_v58 = vpop.f32.mrf.mxu1 }
 0x273   :  { %5203 = vmatprep.mubr.msk.bf16.mxu0 %vm803_vm1, %v5439_v31 }
 0x274   :  { %v6123_v35 = vpop.f32.mrf.mxu0  ;;  %v6170_v62 = vpop.f32.mrf.mxu1 }
 0x276   :  { %v6130_v38 = vpop.f32.mrf.mxu0  ;;  %v6176_v3 = vpop.f32.mrf.mxu1 }
 0x278   :  { %v6132_v40 = vpop.f32.mrf.mxu0  ;;  %v6184_v6 = vpop.f32.mrf.mxu1 }
 0x27a   :  { %v6136_v44 = vpop.f32.mrf.mxu0  ;;  %5204 = vmatmul.mubr.msk.bf16.gmra.mxu0 %vm803_vm1, %v5440_v41  ;;  %v6190_v11 = vpop.f32.mrf.mxu1 }
 0x27b   :  { %5207 = vmatprep.mubr.msk.bf16.mxu0 %vm803_vm1, %v5441_v42 }
 0x27c   :  { %v6140_v45 = vpop.f32.mrf.mxu0  ;;  %v6198_v14 = vpop.f32.mrf.mxu1 }
 0x27e   :  { %v6144_v47 = vpop.f32.mrf.mxu0  ;;  %v6204_v17 = vpop.f32.mrf.mxu1 }
 0x280   :  { %v6146_v48 = vpop.f32.mrf.mxu0  ;;  %v6211_v39 = vpop.f32.mrf.mxu1 }
 0x282   :  { %v6150_v52 = vpop.f32.mrf.mxu0  ;;  %5208 = vmatmul.mubr.msk.bf16.gmra.mxu0 %vm803_vm1, %v5442_v49  ;;  %v6217_v26 = vpop.f32.mrf.mxu1 }
 0x283   :  { %5211 = vmatprep.mubr.msk.bf16.mxu0 %vm803_vm1, %v5443_v50 }
 0x284   :  { %v6154_v53 = vpop.f32.mrf.mxu0  ;;  %v6223_v32 = vpop.f32.mrf.mxu1 }
 0x286   :  { %v6158_v55 = vpop.f32.mrf.mxu0  ;;  %v6229_v42 = vpop.f32.mrf.mxu1 }
 0x288   :  { %v6160_v56 = vpop.f32.mrf.mxu0 }
 0x28a   :  { %v6164_v59 = vpop.f32.mrf.mxu0  ;;  %5212 = vmatmul.mubr.msk.bf16.gmra.mxu0 %vm803_vm1, %v5444_v20  ;;  %v6235_v20 = vpop.f32.mrf.mxu1 }
 0x28b   :  { %5215 = vmatprep.mubr.msk.bf16.mxu0 %vm803_vm1, %v5445_v57 }
 0x28c   :  { %v6168_v61 = vpop.f32.mrf.mxu0 }
 0x28e   :  { %v6172_v63 = vpop.f32.mrf.mxu0 }
 0x290   :  { %v6174_v0 = vpop.f32.mrf.mxu0 }
 0x292   :  { %v6178_v4 = vpop.f32.mrf.mxu0  ;;  %5216 = vmatmul.mubr.msk.bf16.gmra.mxu0 %vm803_vm1, %v5446_v1 }
 0x293   :  { %5219 = vmatprep.mubr.msk.bf16.mxu0 %vm803_vm1, %v5447_v2  ;;  %v6241_v2 = vpop.f32.mrf.mxu1 }
 0x294   :  { %v6182_v5 = vpop.f32.mrf.mxu0 }
 0x296   :  { %v6186_v7 = vpop.f32.mrf.mxu0 }
 0x298   :  { %v6188_v9 = vpop.f32.mrf.mxu0 }
 0x29a   :  { %v6192_v12 = vpop.f32.mrf.mxu0  ;;  %5220 = vmatmul.mubr.msk.bf16.gmra.mxu0 %vm803_vm1, %v5448_v10 }
 0x29b   :  { %5223 = vmatprep.mubr.msk.bf16.mxu0 %vm803_vm1, %v5449_v8 }
 0x29c   :  { %v6196_v13 = vpop.f32.mrf.mxu0 }
 0x29e   :  { %v6200_v60 = vpop.f32.mrf.mxu0 }
 0x29f   :  { %6751 = vst [vmem:[#allocation6_spill] sm:$0xff] %v6200_v60 }
 0x2a0   :  { %v6202_v16 = vpop.f32.mrf.mxu0 }
 0x2a1   :  { %6752 = vst [vmem:[#allocation7_spill] sm:$0xff] %v6202_v16 }
 0x2a2   :  { %v6206_v18 = vpop.f32.mrf.mxu0  ;;  %5224 = vmatmul.mubr.msk.bf16.gmra.mxu0 %vm803_vm1, %v5450_v15  ;;  %v6247_v15 = vpop.f32.mrf.mxu1 }
 0x2a3   :  { %6753 = vst [vmem:[#allocation8_spill] sm:$0xff] %v6206_v18 }
 0x2a4   :  { %v6209_v19 = vpop.f32.mrf.mxu0 }
 0x2a5   :  { %6754 = vst [vmem:[#allocation9_spill] sm:$0xff] %v6209_v19 }
 0x2a6   :  { %v6213_v21 = vpop.f32.mrf.mxu0 }
 0x2a7   :  { %6755 = vst [vmem:[#allocation10_spill] sm:$0xff] %v6213_v21 }
 0x2a8   :  { %v6215_v22 = vpop.f32.mrf.mxu0 }
 0x2a9   :  { %6756 = vst [vmem:[#allocation11_spill] sm:$0xff] %v6215_v22 }
 0x2aa   :  { %v6219_v30 = vpop.f32.mrf.mxu0 }
 0x2ab   :  { %6757 = vst [vmem:[#allocation12_spill] sm:$0xff] %v6219_v30 }
 0x2ac   :  { %v6221_v31 = vpop.f32.mrf.mxu0 }
 0x2ad   :  { %6758 = vst [vmem:[#allocation13_spill] sm:$0xff] %v6221_v31 }
 0x2ae   :  { %v6225_v36 = vpop.f32.mrf.mxu0 }
 0x2af   :  { %6759 = vst [vmem:[#allocation14_spill] sm:$0xff] %v6225_v36 }
 0x2b0   :  { %v6227_v41 = vpop.f32.mrf.mxu0 }
 0x2b1   :  { %6760 = vst [vmem:[#allocation15_spill] sm:$0xff] %v6227_v41 }
 0x2b2   :  { %v6231_v49 = vpop.f32.mrf.mxu0 }
 0x2b3   :  { %6761 = vst [vmem:[#allocation16_spill] sm:$0xff] %v6231_v49  ;;  %v6253_v49 = vpop.f32.mrf.mxu1 }
 0x2b4   :  { %v6233_v50 = vpop.f32.mrf.mxu0 }
 0x2b5   :  { %6762 = vst [vmem:[#allocation17_spill] sm:$0xff] %v6233_v50 }
 0x2b6   :  { %v6237_v57 = vpop.f32.mrf.mxu0 }
 0x2b7   :  { %6763 = vst [vmem:[#allocation18_spill] sm:$0xff] %v6237_v57  ;;  %v6259_v57 = vpop.f32.mrf.mxu1 }
 0x2b8   :  { %v6239_v1 = vpop.f32.mrf.mxu0 }
 0x2b9   :  { %6764 = vst [vmem:[#allocation19_spill] sm:$0xff] %v6239_v1 }
 0x2ba   :  { %v6243_v8 = vpop.f32.mrf.mxu0 }
 0x2bb   :  { %6765 = vst [vmem:[#allocation20_spill] sm:$0xff] %v6243_v8  ;;  %v6265_v8 = vpop.f32.mrf.mxu1 }
 0x2bc   :  { %v6245_v10 = vpop.f32.mrf.mxu0 }
 0x2bd   :  { %6766 = vst [vmem:[#allocation21_spill] sm:$0xff] %v6245_v10 }
 0x2be   :  { %v6249_v41 = vpop.f32.mrf.mxu0 }
 0x2bf   :  { %6767 = vst [vmem:[#allocation22_spill] sm:$0xff] %v6249_v41  ;;  %v6271_v41 = vpop.f32.mrf.mxu1 }
 0x2c0   :  { %v6251_v36 = vpop.f32.mrf.mxu0 }
 0x2c1   :  { %6768 = vst [vmem:[#allocation23_spill] sm:$0xff] %v6251_v36 }
 0x2c2   :  { %v6255_v50 = vpop.f32.mrf.mxu0 }
 0x2c3   :  { %6769 = vst [vmem:[#allocation24_spill] sm:$0xff] %v6255_v50  ;;  %v6277_v50 = vpop.f32.mrf.mxu1 }
 0x2c4   :  { %v6257_v31 = vpop.f32.mrf.mxu0  ;;  %6777 = vst [vmem:[#allocation32_spill] sm:$0xff] %v6277_v50 }
 0x2c5   :  { %6770 = vst [vmem:[#allocation25_spill] sm:$0xff] %v6257_v31 }
 0x2c6   :  { %v6261_v1 = vpop.f32.mrf.mxu0 }
 0x2c7   :  { %6771 = vst [vmem:[#allocation26_spill] sm:$0xff] %v6261_v1  ;;  %v6283_v1 = vpop.f32.mrf.mxu1 }
 0x2c8   :  { %v6263_v30 = vpop.f32.mrf.mxu0  ;;  %6780 = vst [vmem:[#allocation35_spill] sm:$0xff] %v6283_v1 }
 0x2c9   :  { %6772 = vst [vmem:[#allocation27_spill] sm:$0xff] %v6263_v30 }
 0x2ca   :  { %v6267_v10 = vpop.f32.mrf.mxu0 }
 0x2cb   :  { %6773 = vst [vmem:[#allocation28_spill] sm:$0xff] %v6267_v10  ;;  %v6289_v10 = vpop.f32.mrf.mxu1 }
 0x2cc   :  { %v6269_v22 = vpop.f32.mrf.mxu0  ;;  %6783 = vst [vmem:[#allocation38_spill] sm:$0xff] %v6289_v10 }
 0x2cd   :  { %6774 = vst [vmem:[#allocation29_spill] sm:$0xff] %v6269_v22 }
 0x2ce   :  { %v6273_v36 = vpop.f32.mrf.mxu0 }
 0x2cf   :  { %6775 = vst [vmem:[#allocation30_spill] sm:$0xff] %v6273_v36  ;;  %v6295_v36 = vpop.f32.mrf.mxu1 }
 0x2d0   :  { %v6275_v21 = vpop.f32.mrf.mxu0  ;;  %6786 = vst [vmem:[#allocation41_spill] sm:$0xff] %v6295_v36 }
 0x2d1   :  { %6776 = vst [vmem:[#allocation31_spill] sm:$0xff] %v6275_v21 }
 0x2d2   :  { %v6279_v31 = vpop.f32.mrf.mxu0 }
 0x2d3   :  { %6778 = vst [vmem:[#allocation33_spill] sm:$0xff] %v6279_v31  ;;  %v6301_v31 = vpop.f32.mrf.mxu1 }
 0x2d4   :  { %v6281_v19 = vpop.f32.mrf.mxu0  ;;  %6789 = vst [vmem:[#allocation44_spill] sm:$0xff] %v6301_v31 }
 0x2d5   :  { %6779 = vst [vmem:[#allocation34_spill] sm:$0xff] %v6281_v19 }
 0x2d6   :  { %v6285_v30 = vpop.f32.mrf.mxu0 }
 0x2d7   :  { %6781 = vst [vmem:[#allocation36_spill] sm:$0xff] %v6285_v30  ;;  %v6307_v30 = vpop.f32.mrf.mxu1 }
 0x2d8   :  { %v6287_v18 = vpop.f32.mrf.mxu0  ;;  %6792 = vst [vmem:[#allocation47_spill] sm:$0xff] %v6307_v30 }
 0x2d9   :  { %6782 = vst [vmem:[#allocation37_spill] sm:$0xff] %v6287_v18 }
 0x2da   :  { %v6291_v22 = vpop.f32.mrf.mxu0 }
 0x2db   :  { %6784 = vst [vmem:[#allocation39_spill] sm:$0xff] %v6291_v22  ;;  %v6315_v22 = vpop.f32.mrf.mxu1 }
 0x2dc   :  { %v6293_v16 = vpop.f32.mrf.mxu0  ;;  %6795 = vst [vmem:[#allocation50_spill] sm:$0xff] %v6315_v22 }
 0x2dd   :  { %6785 = vst [vmem:[#allocation40_spill] sm:$0xff] %v6293_v16  ;;  %v2347_v16 = vadd.f32 %v6097_v23, %v6099_v24  ;;  %v6326_v30 = vpop.f32.mrf.mxu1  ;;  %v2342_v24 = vadd.f32 %v6128_v37, %v6112_v29 }
 0x2de   :  { %v6297_v21 = vpop.f32.mrf.mxu0 }
 0x2df   :  { %6787 = vst [vmem:[#allocation42_spill] sm:$0xff] %v6297_v21 }
 0x2e0   :  { %v6299_v50 = vpop.f32.mrf.mxu0 }
 0x2e1   :  { %6788 = vst [vmem:[#allocation43_spill] sm:$0xff] %v6299_v50  ;;  %v2339_v50 = vadd.f32 %v6108_v27, %v6103_v25 }
 0x2e2   :  { %v6303_v19 = vpop.f32.mrf.mxu0 }
 0x2e3   :  { %6790 = vst [vmem:[#allocation45_spill] sm:$0xff] %v6303_v19 }
 0x2e4   :  { %v6305_v1 = vpop.f32.mrf.mxu0 }
 0x2e5   :  { %6791 = vst [vmem:[#allocation46_spill] sm:$0xff] %v6305_v1  ;;  %v6322_v1 = vld [vmem:[%s6744_s6] ss:$0 sm:$0xff] }
 0x2e6   :  { %v6309_v18 = vpop.f32.mrf.mxu0 }
 0x2e7   :  { %6793 = vst [vmem:[#allocation48_spill] sm:$0xff] %v6309_v18  ;;  %v2350_v18 = vadd.f32 %v6117_v33, %v6110_v28  ;;  %v2355_v28 = vadd.f32 %v6142_v46, %v6123_v35  ;;  %v6337_v33 = vpop.f32.mrf.mxu1  ;;  %v2358_v35 = vadd.f32 %v6156_v54, %v6132_v40 }
 0x2e8   :  { %v6311_v10 = vpop.f32.mrf.mxu0 }
 0x2e9   :  { %6794 = vst [vmem:[#allocation49_spill] sm:$0xff] %v6311_v10 }
 0x2ea   :  { %v5165_v21 = vpop.f32.mrf.mxu0 }
 0x2eb   :  { %v3237_v31 = vadd.f32 %v5165_v21, %v2347_v16  ;;  %v2363_v16 = vadd.f32 %v6134_v43, %v6119_v34 }
 0x2ec   :  { %v2980_v19 = vpop.f32.mrf.mxu0 }
 0x2ed   :  { %v3235_v10 = vadd.f32 %v2980_v19, %v2339_v50  ;;  %v3308_v22 = vadd.f32 %v6322_v1, %v3237_v31  ;;  %v2366_v31 = vadd.f32 %v6148_v51, %v6130_v38 }
 0x2ee   :  { %v5166_v23 = vpop.f32.mrf.mxu0 }
 0x2ef   :  { %v3238_v25 = vadd.f32 %v5166_v23, %v2350_v18  ;;  %v3306_v21 = vadd.f32 %v6322_v1, %v3235_v10  ;;  %v3372_v50 = vmax.f32 %v3308_v22, 0.0 }
 0x2f0   :  { %v2983_v27 = vpop.f32.mrf.mxu0 }
 0x2f1   :  { %v3309_v36 = vadd.f32 %v6322_v1, %v3238_v25  ;;  %v3236_v60 = vadd.f32 %v2983_v27, %v2342_v24  ;;  %v3370_v43 = vmax.f32 %v3306_v21, 0.0  ;;  %v6342_v24 = vpop.f32.mrf.mxu1 }
 0x2f2   :  { %v5169_v19 = vpop.f32.mrf.mxu0 }
 0x2f3   :  { %v3373_v29 = vmax.f32 %v3309_v36, 0.0  ;;  %v3307_v37 = vadd.f32 %v6322_v1, %v3236_v60  ;;  %v3241_v18 = vadd.f32 %v5169_v19, %v2363_v16  ;;  %v2379_v16 = vadd.f32 %v6162_v58, %v6136_v44  ;;  %v6353_v19 = vpop.f32.mrf.mxu1 }
 0x2f4   :  { %v2996_v34 = vpop.f32.mrf.mxu0  ;;  %v2382_v44 = vadd.f32 %v6176_v3, %v6144_v47 }
 0x2f5   :  { %v3435_v10 = vpack.c.bf16 %v3373_v29, %v3372_v50  ;;  %v3371_v23 = vmax.f32 %v3307_v37, 0.0  ;;  %v3239_v25 = vadd.f32 %v2996_v34, %v2355_v28  ;;  %v3312_v46 = vadd.f32 %v6322_v1, %v3241_v18 }
 0x2f6   :  { %v5170_v27 = vpop.f32.mrf.mxu0  ;;  %v2371_v28 = vadd.f32 %v6170_v62, %v6140_v45  ;;  %v2374_v62 = vadd.f32 %v6184_v6, %v6146_v48 }
 0x2f7   :  { %v3242_v22 = vadd.f32 %v5170_v27, %v2366_v31  ;;  %v3434_v36 = vpack.c.bf16 %v3371_v23, %v3370_v43  ;;  %v3310_v38 = vadd.f32 %v6322_v1, %v3239_v25  ;;  %v3376_v54 = vmax.f32 %v3312_v46, 0.0  ;;  %v6358_v23 = vpop.f32.mrf.mxu1 }
 0x2f8   :  { %v2999_v60 = vpop.f32.mrf.mxu0  ;;  %v2395_v46 = vadd.f32 %v6190_v11, %v6150_v52  ;;  %v2398_v52 = vadd.f32 %v6204_v17, %v6158_v55 }
 0x2f9   :  { %v3313_v51 = vadd.f32 %v6322_v1, %v3242_v22  ;;  %v3240_v21 = vadd.f32 %v2999_v60, %v2358_v35  ;;  %5243 = vmatprep.mubr.bf16.mxu1 %v3434_v36  ;;  %v3374_v18 = vmax.f32 %v3310_v38, 0.0  ;;  %v2387_v36 = vadd.f32 %v6198_v14, %v6154_v53  ;;  %v6369_v60 = vpop.f32.mrf.mxu1 }
 0x2fa   :  { %v5173_v40 = vpop.f32.mrf.mxu0  ;;  %5244 = vmatmul.mubr.bf16.vlgmr.msra.gmra.mxu1 %v3435_v10  ;;  %v2390_v14 = vadd.f32 %v6211_v39, %v6160_v56 }
 0x2fb   :  { %v3377_v50 = vmax.f32 %v3313_v51, 0.0  ;;  %v3311_v29 = vadd.f32 %v6322_v1, %v3240_v21  ;;  %v3245_v37 = vadd.f32 %v5173_v40, %v2379_v16 }
 0x2fc   :  { %v3012_v58 = vpop.f32.mrf.mxu0 }
 0x2fd   :  { %v3437_v31 = vpack.c.bf16 %v3377_v50, %v3376_v54  ;;  %v3375_v34 = vmax.f32 %v3311_v29, 0.0  ;;  %v3243_v43 = vadd.f32 %v3012_v58, %v2371_v28  ;;  %v3316_v10 = vadd.f32 %v6322_v1, %v3245_v37  ;;  %v6374_v50 = vpop.f32.mrf.mxu1 }
 0x2fe   :  { %v5174_v45 = vpop.f32.mrf.mxu0 }
 0x2ff   :  { %v3246_v25 = vadd.f32 %v5174_v45, %v2382_v44  ;;  %v3436_v27 = vpack.c.bf16 %v3375_v34, %v3374_v18  ;;  %v3314_v47 = vadd.f32 %v6322_v1, %v3243_v43  ;;  %v3380_v6 = vmax.f32 %v3316_v10, 0.0  ;;  %v6385_v43 = vpop.f32.mrf.mxu1 }
 0x300   :  { %v3015_v35 = vpop.f32.mrf.mxu0  ;;  %v2411_v18 = vadd.f32 %v6217_v26, %v6164_v59  ;;  %v2403_v34 = vadd.f32 %v6223_v32, %v6168_v61  ;;  %v2414_v59 = vadd.f32 %v6229_v42, %v6172_v63  ;;  %v2406_v32 = vadd.f32 %v6235_v20, %v6174_v0 }
 0x301   :  { %v3317_v3 = vadd.f32 %v6322_v1, %v3246_v25  ;;  %v3244_v22 = vadd.f32 %v3015_v35, %v2374_v62  ;;  %5247 = vmatprep.mubr.bf16.mxu1 %v3436_v27  ;;  %v3378_v21 = vmax.f32 %v3314_v47, 0.0  ;;  %v6390_v47 = vpop.f32.mrf.mxu1 }
 0x302   :  { %v5177_v48 = vpop.f32.mrf.mxu0  ;;  %5248 = vmatmul.mubr.bf16.gmra.mxu1 %v3437_v31 }
 0x303   :  { %v3381_v16 = vmax.f32 %v3317_v3, 0.0  ;;  %v3315_v38 = vadd.f32 %v6322_v1, %v3244_v22  ;;  %v3249_v51 = vadd.f32 %v5177_v48, %v2395_v46 }
 0x304   :  { %v3028_v11 = vpop.f32.mrf.mxu0 }
 0x305   :  { %v3439_v28 = vpack.c.bf16 %v3381_v16, %v3380_v6  ;;  %v3379_v40 = vmax.f32 %v3315_v38, 0.0  ;;  %v3247_v54 = vadd.f32 %v3028_v11, %v2387_v36  ;;  %v3320_v29 = vadd.f32 %v6322_v1, %v3249_v51  ;;  %v6401_v51 = vpop.f32.mrf.mxu1 }
 0x306   :  { %v5178_v53 = vpop.f32.mrf.mxu0  ;;  %v2427_v6 = vadd.f32 %v6241_v2, %v6178_v4  ;;  %v2419_v38 = vadd.f32 %v6247_v15, %v6182_v5  ;;  %v2430_v4 = vadd.f32 %v6253_v49, %v6186_v7  ;;  %v2422_v15 = vadd.f32 %v6259_v57, %v6188_v9 }
 0x307   :  { %v3250_v37 = vadd.f32 %v5178_v53, %v2398_v52  ;;  %v3438_v44 = vpack.c.bf16 %v3379_v40, %v3378_v21  ;;  %v3318_v55 = vadd.f32 %v6322_v1, %v3247_v54  ;;  %v3384_v39 = vmax.f32 %v3320_v29, 0.0 }
 0x308   :  { %v3031_v58 = vpop.f32.mrf.mxu0 }
 0x309   :  { %v3321_v17 = vadd.f32 %v6322_v1, %v3250_v37  ;;  %v3248_v31 = vadd.f32 %v3031_v58, %v2390_v14  ;;  %5251 = vmatprep.mubr.bf16.mxu1 %v3438_v44  ;;  %v3382_v25 = vmax.f32 %v3318_v55, 0.0  ;;  %v6406_v14 = vpop.f32.mrf.mxu1 }
 0x30a   :  { %v5181_v56 = vpop.f32.mrf.mxu0  ;;  %5252 = vmatmul.mubr.bf16.gmra.mxu1 %v3439_v28 }
 0x30b   :  { %v3385_v45 = vmax.f32 %v3321_v17, 0.0  ;;  %v3319_v62 = vadd.f32 %v6322_v1, %v3248_v31  ;;  %v3253_v10 = vadd.f32 %v5181_v56, %v2411_v18  ;;  %v2443_v18 = vadd.f32 %v6265_v8, %v6192_v12  ;;  %v6417_v31 = vpop.f32.mrf.mxu1  ;;  %v6797_v12 = vld [vmem:[#allocation32_spill] sm:$0xff] }
 0x30c   :  { %v3044_v26 = vpop.f32.mrf.mxu0  ;;  %v2435_v17 = vadd.f32 %v6271_v41, %v6196_v13  ;;  %v6798_v41 = vld [vmem:[#allocation7_spill] sm:$0xff] }
 0x30d   :  { %v3441_v27 = vpack.c.bf16 %v3385_v45, %v3384_v39  ;;  %v3383_v35 = vmax.f32 %v3319_v62, 0.0  ;;  %v3251_v46 = vadd.f32 %v3044_v26, %v2403_v34  ;;  %v3324_v3 = vadd.f32 %v6322_v1, %v3253_v10  ;;  %v6796_v45 = vld [vmem:[#allocation6_spill] sm:$0xff] }
 0x30e   :  { %v5182_v61 = vpop.f32.mrf.mxu0  ;;  %v2446_v8 = vadd.f32 %v6797_v12, %v6796_v45 }
 0x30f   :  { %v3254_v22 = vadd.f32 %v5182_v61, %v2414_v59  ;;  %v3440_v36 = vpack.c.bf16 %v3383_v35, %v3382_v25  ;;  %v3322_v63 = vadd.f32 %v6322_v1, %v3251_v46  ;;  %v3388_v20 = vmax.f32 %v3324_v3, 0.0  ;;  %v6799_v35 = vld [vmem:[#allocation35_spill] sm:$0xff] }
 0x310   :  { %v3047_v48 = vpop.f32.mrf.mxu0  ;;  %v2438_v46 = vadd.f32 %v6799_v35, %v6798_v41 }
 0x311   :  { %v3325_v42 = vadd.f32 %v6322_v1, %v3254_v22  ;;  %v3252_v16 = vadd.f32 %v3047_v48, %v2406_v32  ;;  %5255 = vmatprep.mubr.bf16.mxu1 %v3440_v36  ;;  %v3386_v28 = vmax.f32 %v3322_v63, 0.0  ;;  %v6800_v36 = vld [vmem:[#allocation8_spill] sm:$0xff]  ;;  %v6801_v48 = vld [vmem:[#allocation38_spill] sm:$0xff] }
 0x312   :  { %v5185_v0 = vpop.f32.mrf.mxu0  ;;  %5256 = vmatmul.mubr.bf16.gmra.mxu1 %v3441_v27  ;;  %v6422_v27 = vpop.f32.mrf.mxu1 }
 0x313   :  { %v3389_v52 = vmax.f32 %v3325_v42, 0.0  ;;  %v3323_v11 = vadd.f32 %v6322_v1, %v3252_v16  ;;  %v3257_v21 = vadd.f32 %v5185_v0, %v2427_v6  ;;  %v2459_v6 = vadd.f32 %v6801_v48, %v6800_v36  ;;  %v6803_v0 = vld [vmem:[#allocation41_spill] sm:$0xff] }
 0x314   :  { %v3060_v2 = vpop.f32.mrf.mxu0 }
 0x315   :  { %v3443_v40 = vpack.c.bf16 %v3389_v52, %v3388_v20  ;;  %v3387_v54 = vmax.f32 %v3323_v11, 0.0  ;;  %v3255_v53 = vadd.f32 %v3060_v2, %v2419_v38  ;;  %v3328_v29 = vadd.f32 %v6322_v1, %v3257_v21  ;;  %v6802_v38 = vld [vmem:[#allocation9_spill] sm:$0xff]  ;;  %v6433_v52 = vpop.f32.mrf.mxu1 }
 0x316   :  { %v5186_v5 = vpop.f32.mrf.mxu0  ;;  %v2451_v20 = vadd.f32 %v6803_v0, %v6802_v38 }
 0x317   :  { %v3258_v37 = vadd.f32 %v5186_v5, %v2430_v4  ;;  %v3442_v44 = vpack.c.bf16 %v3387_v54, %v3386_v28  ;;  %v3326_v7 = vadd.f32 %v6322_v1, %v3255_v53  ;;  %v3392_v57 = vmax.f32 %v3328_v29, 0.0  ;;  %v6805_v54 = vld [vmem:[#allocation44_spill] sm:$0xff] }
 0x318   :  { %v3063_v58 = vpop.f32.mrf.mxu0 }
 0x319   :  { %v3329_v49 = vadd.f32 %v6322_v1, %v3258_v37  ;;  %v3256_v55 = vadd.f32 %v3063_v58, %v2422_v15  ;;  %5259 = vmatprep.mubr.bf16.mxu1 %v3442_v44  ;;  %v3390_v10 = vmax.f32 %v3326_v7, 0.0  ;;  %v6438_v58 = vpop.f32.mrf.mxu1  ;;  %v6806_v7 = vld [vmem:[#allocation11_spill] sm:$0xff] }
 0x31a   :  { %v5189_v9 = vpop.f32.mrf.mxu0  ;;  %5260 = vmatmul.mubr.bf16.gmra.mxu1 %v3443_v40  ;;  %v6804_v40 = vld [vmem:[#allocation10_spill] sm:$0xff] }
 0x31b   :  { %v3393_v34 = vmax.f32 %v3329_v49, 0.0  ;;  %v3327_v56 = vadd.f32 %v6322_v1, %v3256_v55  ;;  %v3261_v39 = vadd.f32 %v5189_v9, %v2443_v18  ;;  %v2462_v53 = vadd.f32 %v6805_v54, %v6804_v40  ;;  %v6807_v49 = vld [vmem:[#allocation47_spill] sm:$0xff]  ;;  %v6814_v40 = vld [vmem:[#allocation17_spill] sm:$0xff] }
 0x31c   :  { %v3076_v62 = vpop.f32.mrf.mxu0  ;;  %v2454_v55 = vadd.f32 %v6807_v49, %v6806_v7  ;;  %v2483_v54 = vadd.f32 %v6358_v23, %v6814_v40  ;;  %v6822_v40 = vld [vmem:[#allocation25_spill] sm:$0xff] }
 0x31d   :  { %v3445_v59 = vpack.c.bf16 %v3393_v34, %v3392_v57  ;;  %v3391_v26 = vmax.f32 %v3327_v56, 0.0  ;;  %v3259_v25 = vadd.f32 %v3076_v62, %v2435_v17  ;;  %v3332_v61 = vadd.f32 %v6322_v1, %v3261_v39  ;;  %v6808_v56 = vld [vmem:[#allocation12_spill] sm:$0xff]  ;;  %v6809_v39 = vld [vmem:[#allocation50_spill] sm:$0xff] }
 0x31e   :  { %v5190_v13 = vpop.f32.mrf.mxu0  ;;  %v2475_v45 = vadd.f32 %v6809_v39, %v6808_v56 }
 0x31f   :  { %v3262_v32 = vadd.f32 %v5190_v13, %v2446_v8  ;;  %v3444_v3 = vpack.c.bf16 %v3391_v26, %v3390_v10  ;;  %v3330_v63 = vadd.f32 %v6322_v1, %v3259_v25  ;;  %v3396_v21 = vmax.f32 %v3332_v61, 0.0  ;;  %v6810_v10 = vld [vmem:[#allocation13_spill] sm:$0xff]  ;;  %v6449_v26 = vpop.f32.mrf.mxu1  ;;  %v6811_v61 = vld [vmem:[#allocation14_spill] sm:$0xff] }
 0x320   :  { %v3079_v22 = vpop.f32.mrf.mxu0 }
 0x321   :  { %v3333_v42 = vadd.f32 %v6322_v1, %v3262_v32  ;;  %v3260_v16 = vadd.f32 %v3079_v22, %v2438_v46  ;;  %5263 = vmatprep.mubr.bf16.mxu1 %v3444_v3  ;;  %v3394_v15 = vmax.f32 %v3330_v63, 0.0  ;;  %v2478_v32 = vadd.f32 %v6337_v33, %v6811_v61  ;;  %v6454_v63 = vpop.f32.mrf.mxu1 }
 0x322   :  { %v5193_v11 = vpop.f32.mrf.mxu0  ;;  %5264 = vmatmul.mubr.bf16.gmra.mxu1 %v3445_v59  ;;  %v2467_v59 = vadd.f32 %v6326_v30, %v6810_v10 }
 0x323   :  { %v3397_v4 = vmax.f32 %v3333_v42, 0.0  ;;  %v3331_v2 = vadd.f32 %v6322_v1, %v3260_v16  ;;  %v3265_v28 = vadd.f32 %v5193_v11, %v2459_v6  ;;  %v6812_v42 = vld [vmem:[#allocation15_spill] sm:$0xff] }
 0x324   :  { %v3092_v5 = vpop.f32.mrf.mxu0  ;;  %v2470_v16 = vadd.f32 %v6342_v24, %v6812_v42 }
 0x325   :  { %v3447_v29 = vpack.c.bf16 %v3397_v4, %v3396_v21  ;;  %v3395_v37 = vmax.f32 %v3331_v2, 0.0  ;;  %v3263_v44 = vadd.f32 %v3092_v5, %v2451_v20  ;;  %v3336_v17 = vadd.f32 %v6322_v1, %v3265_v28  ;;  %v6813_v21 = vld [vmem:[#allocation16_spill] sm:$0xff] }
 0x326   :  { %v5194_v18 = vpop.f32.mrf.mxu0  ;;  %v2491_v4 = vadd.f32 %v6353_v19, %v6813_v21 }
 0x327   :  { %v3266_v9 = vadd.f32 %v5194_v18, %v2462_v53  ;;  %v3446_v57 = vpack.c.bf16 %v3395_v37, %v3394_v15  ;;  %v3334_v12 = vadd.f32 %v6322_v1, %v3263_v44  ;;  %v3400_v13 = vmax.f32 %v3336_v17, 0.0  ;;  %v6465_v53 = vpop.f32.mrf.mxu1  ;;  %v6815_v44 = vld [vmem:[#allocation18_spill] sm:$0xff] }
 0x328   :  { %v3095_v34 = vpop.f32.mrf.mxu0  ;;  %v2494_v19 = vadd.f32 %v6369_v60, %v6815_v44  ;;  %v6823_v44 = vld [vmem:[#allocation26_spill] sm:$0xff] }
 0x329   :  { %v3337_v8 = vadd.f32 %v6322_v1, %v3266_v9  ;;  %v3264_v62 = vadd.f32 %v3095_v34, %v2454_v55  ;;  %5267 = vmatprep.mubr.bf16.mxu1 %v3446_v57  ;;  %v3398_v22 = vmax.f32 %v3334_v12, 0.0  ;;  %v6470_v9 = vpop.f32.mrf.mxu1  ;;  %v6816_v57 = vld [vmem:[#allocation19_spill] sm:$0xff] }
 0x32a   :  { %v5197_v25 = vpop.f32.mrf.mxu0  ;;  %5268 = vmatmul.mubr.bf16.gmra.mxu1 %v3447_v29  ;;  %v2486_v34 = vadd.f32 %v6374_v50, %v6816_v57  ;;  %v6824_v57 = vld [vmem:[#allocation27_spill] sm:$0xff] }
 0x32b   :  { %v3401_v41 = vmax.f32 %v3337_v8, 0.0  ;;  %v3335_v35 = vadd.f32 %v6322_v1, %v3264_v62  ;;  %v3269_v46 = vadd.f32 %v5197_v25, %v2475_v45  ;;  %v6817_v8 = vld [vmem:[#allocation20_spill] sm:$0xff]  ;;  %v6818_v25 = vld [vmem:[#allocation21_spill] sm:$0xff] }
 0x32c   :  { %v3108_v3 = vpop.f32.mrf.mxu0  ;;  %v2507_v62 = vadd.f32 %v6385_v43, %v6817_v8 }
 0x32d   :  { %v3449_v36 = vpack.c.bf16 %v3401_v41, %v3400_v13  ;;  %v3399_v48 = vmax.f32 %v3335_v35, 0.0  ;;  %v3267_v6 = vadd.f32 %v3108_v3, %v2467_v59  ;;  %v3340_v38 = vadd.f32 %v6322_v1, %v3269_v46  ;;  %v6481_v41 = vpop.f32.mrf.mxu1  ;;  %v6819_v3 = vld [vmem:[#allocation22_spill] sm:$0xff] }
 0x32e   :  { %v5198_v30 = vpop.f32.mrf.mxu0  ;;  %v2499_v13 = vadd.f32 %v6390_v47, %v6818_v25  ;;  %v2510_v43 = vadd.f32 %v6401_v51, %v6819_v3 }
 0x32f   :  { %v3270_v0 = vadd.f32 %v5198_v30, %v2478_v32  ;;  %v3448_v20 = vpack.c.bf16 %v3399_v48, %v3398_v22  ;;  %v3338_v33 = vadd.f32 %v6322_v1, %v3267_v6  ;;  %v3404_v5 = vmax.f32 %v3340_v38, 0.0  ;;  %v6486_v42 = vpop.f32.mrf.mxu1 }
 0x330   :  { %v3111_v11 = vpop.f32.mrf.mxu0 }
 0x331   :  { %v3341_v2 = vadd.f32 %v6322_v1, %v3270_v0  ;;  %v3268_v28 = vadd.f32 %v3111_v11, %v2470_v16  ;;  %5271 = vmatprep.mubr.bf16.mxu1 %v3448_v20  ;;  %v3402_v7 = vmax.f32 %v3338_v33, 0.0  ;;  %v6820_v16 = vld [vmem:[#allocation23_spill] sm:$0xff] }
 0x332   :  { %v5201_v24 = vpop.f32.mrf.mxu0  ;;  %5272 = vmatmul.mubr.bf16.gmra.mxu1 %v3449_v36  ;;  %v2502_v38 = vadd.f32 %v6406_v14, %v6820_v16 }
 0x333   :  { %v3405_v15 = vmax.f32 %v3341_v2, 0.0  ;;  %v3339_v29 = vadd.f32 %v6322_v1, %v3268_v28  ;;  %v3273_v37 = vadd.f32 %v5201_v24, %v2491_v4  ;;  %v6821_v4 = vld [vmem:[#allocation24_spill] sm:$0xff]  ;;  %v5146_v24 = vpop.f32.mrf.mxu1 }
 0x334   :  { %v3124_v18 = vpop.f32.mrf.mxu0  ;;  %v2523_v33 = vadd.f32 %v6417_v31, %v6821_v4  ;;  %v2526_v31 = vadd.f32 %v6433_v52, %v6823_v44 }
 0x335   :  { %v3451_v49 = vpack.c.bf16 %v3405_v15, %v3404_v5  ;;  %v3403_v55 = vmax.f32 %v3339_v29, 0.0  ;;  %v3271_v17 = vadd.f32 %v3124_v18, %v2483_v54  ;;  %v3344_v56 = vadd.f32 %v6322_v1, %v3273_v37 }
 0x336   :  { %v5202_v23 = vpop.f32.mrf.mxu0  ;;  %v2515_v54 = vadd.f32 %v6422_v27, %v6822_v40  ;;  %v2518_v27 = vadd.f32 %v6438_v58, %v6824_v57 }
 0x337   :  { %v3274_v39 = vadd.f32 %v5202_v23, %v2494_v19  ;;  %v3450_v45 = vpack.c.bf16 %v3403_v55, %v3402_v7  ;;  %v3342_v60 = vadd.f32 %v6322_v1, %v3271_v17  ;;  %v3408_v35 = vmax.f32 %v3344_v56, 0.0  ;;  %v2549_v17 = vpop.f32.mrf.mxu1 }
 0x338   :  { %v3127_v12 = vpop.f32.mrf.mxu0 }
 0x339   :  { %v3345_v10 = vadd.f32 %v6322_v1, %v3274_v39  ;;  %v3272_v59 = vadd.f32 %v3127_v12, %v2486_v34  ;;  %5275 = vmatprep.mubr.bf16.mxu1 %v3450_v45  ;;  %v3406_v36 = vmax.f32 %v3342_v60, 0.0  ;;  %v6825_v12 = vld [vmem:[#allocation28_spill] sm:$0xff]  ;;  %v5149_v25 = vpop.f32.mrf.mxu1 }
 0x33a   :  { %v5205_v50 = vpop.f32.mrf.mxu0  ;;  %5276 = vmatmul.mubr.bf16.gmra.mxu1 %v3451_v49  ;;  %v2539_v8 = vadd.f32 %v6449_v26, %v6825_v12  ;;  %v6834_v12 = vld [vmem:[#allocation40_spill] sm:$0xff] }
 0x33b   :  { %v3409_v46 = vmax.f32 %v3345_v10, 0.0  ;;  %v3343_v61 = vadd.f32 %v6322_v1, %v3272_v59  ;;  %v3277_v32 = vadd.f32 %v5205_v50, %v2507_v62  ;;  %v6826_v10 = vld [vmem:[#allocation29_spill] sm:$0xff] }
 0x33c   :  { %v3140_v22 = vpop.f32.mrf.mxu0  ;;  %v2531_v59 = vadd.f32 %v6454_v63, %v6826_v10 }
 0x33d   :  { %v3453_v48 = vpack.c.bf16 %v3409_v46, %v3408_v35  ;;  %v3407_v6 = vmax.f32 %v3343_v61, 0.0  ;;  %v3275_v30 = vadd.f32 %v3140_v22, %v2499_v13  ;;  %v3348_v0 = vadd.f32 %v6322_v1, %v3277_v32  ;;  %v6827_v61 = vld [vmem:[#allocation30_spill] sm:$0xff] }
 0x33e   :  { %v5206_v47 = vpop.f32.mrf.mxu0  ;;  %v2542_v26 = vadd.f32 %v6465_v53, %v6827_v61 }
 0x33f   :  { %v3278_v20 = vadd.f32 %v5206_v47, %v2510_v43  ;;  %v3452_v11 = vpack.c.bf16 %v3407_v6, %v3406_v36  ;;  %v3346_v51 = vadd.f32 %v6322_v1, %v3275_v30  ;;  %v3412_v14 = vmax.f32 %v3348_v0, 0.0  ;;  %v6828_v30 = vld [vmem:[#allocation31_spill] sm:$0xff] }
 0x340   :  { %v3143_v21 = vpop.f32.mrf.mxu0  ;;  %v2534_v63 = vadd.f32 %v6470_v9, %v6828_v30 }
 0x341   :  { %v3349_v2 = vadd.f32 %v6322_v1, %v3278_v20  ;;  %v3276_v28 = vadd.f32 %v3143_v21, %v2502_v38  ;;  %5279 = vmatprep.mubr.bf16.mxu1 %v3452_v11  ;;  %v3410_v18 = vmax.f32 %v3346_v51, 0.0  ;;  %v6829_v20 = vld [vmem:[#allocation33_spill] sm:$0xff] }
 0x342   :  { %v5209_v5 = vpop.f32.mrf.mxu0  ;;  %5280 = vmatmul.mubr.bf16.gmra.mxu1 %v3453_v48  ;;  %v2562_v48 = vpop.f32.mrf.mxu1  ;;  %v2555_v11 = vadd.f32 %v6481_v41, %v6829_v20 }
 0x343   :  { %v3413_v15 = vmax.f32 %v3349_v2, 0.0  ;;  %v3347_v29 = vadd.f32 %v6322_v1, %v3276_v28  ;;  %v3281_v37 = vadd.f32 %v5209_v5, %v2523_v33  ;;  %v6830_v33 = vld [vmem:[#allocation34_spill] sm:$0xff] }
 0x344   :  { %v3156_v19 = vpop.f32.mrf.mxu0  ;;  %v2547_v51 = vadd.f32 %v6486_v42, %v6830_v33  ;;  %v5150_v2 = vpop.f32.mrf.mxu1 }
 0x345   :  { %v3455_v7 = vpack.c.bf16 %v3413_v15, %v3412_v14  ;;  %v3411_v49 = vmax.f32 %v3347_v29, 0.0  ;;  %v3279_v55 = vadd.f32 %v3156_v19, %v2515_v54  ;;  %v3352_v34 = vadd.f32 %v6322_v1, %v3281_v37  ;;  %v6831_v14 = vld [vmem:[#allocation36_spill] sm:$0xff] }
 0x346   :  { %v5210_v23 = vpop.f32.mrf.mxu0  ;;  %v2558_v15 = vadd.f32 %v5146_v24, %v6831_v14  ;;  %v2565_v19 = vpop.f32.mrf.mxu1 }
 0x347   :  { %v3282_v56 = vadd.f32 %v5210_v23, %v2526_v31  ;;  %v3454_v39 = vpack.c.bf16 %v3411_v49, %v3410_v18  ;;  %v3350_v52 = vadd.f32 %v6322_v1, %v3279_v55  ;;  %v3416_v58 = vmax.f32 %v3352_v34, 0.0 }
 0x348   :  { %v3159_v45 = vpop.f32.mrf.mxu0 }
 0x349   :  { %v3353_v62 = vadd.f32 %v6322_v1, %v3282_v56  ;;  %v3280_v60 = vadd.f32 %v3159_v45, %v2518_v27  ;;  %5283 = vmatprep.mubr.bf16.mxu1 %v3454_v39  ;;  %v3414_v3 = vmax.f32 %v3350_v52, 0.0  ;;  %v6833_v27 = vld [vmem:[#allocation39_spill] sm:$0xff]  ;;  %v5153_v45 = vpop.f32.mrf.mxu1 }
 0x34a   :  { %v5213_v13 = vpop.f32.mrf.mxu0  ;;  %5284 = vmatmul.mubr.bf16.gmra.mxu1 %v3455_v7  ;;  %v6832_v7 = vld [vmem:[#allocation37_spill] sm:$0xff]  ;;  %v2571_v34 = vadd.f32 %v5149_v25, %v6833_v27 }
 0x34b   :  { %v3417_v50 = vmax.f32 %v3353_v62, 0.0  ;;  %v3351_v35 = vadd.f32 %v6322_v1, %v3280_v60  ;;  %v3285_v46 = vadd.f32 %v5213_v13, %v2539_v8  ;;  %v2550_v49 = vadd.f32 %v2549_v17, %v6832_v7  ;;  %v2578_v61 = vpop.f32.mrf.mxu1 }
 0x34c   :  { %v3172_v32 = vpop.f32.mrf.mxu0  ;;  %v2563_v8 = vadd.f32 %v2562_v48, %v6834_v12 }
 0x34d   :  { %v3457_v43 = vpack.c.bf16 %v3417_v50, %v3416_v58  ;;  %v3415_v22 = vmax.f32 %v3351_v35, 0.0  ;;  %v3283_v36 = vadd.f32 %v3172_v32, %v2531_v59  ;;  %v3356_v47 = vadd.f32 %v6322_v1, %v3285_v46  ;;  %v6835_v59 = vld [vmem:[#allocation42_spill] sm:$0xff]  ;;  %v6836_v32 = vld [vmem:[#allocation43_spill] sm:$0xff] }
 0x34e   :  { %v5214_v6 = vpop.f32.mrf.mxu0  ;;  %v2574_v13 = vadd.f32 %v5150_v2, %v6835_v59 }
 0x34f   :  { %v3286_v16 = vadd.f32 %v5214_v6, %v2542_v26  ;;  %v3456_v38 = vpack.c.bf16 %v3415_v22, %v3414_v3  ;;  %v3354_v53 = vadd.f32 %v6322_v1, %v3283_v36  ;;  %v3420_v9 = vmax.f32 %v3356_v47, 0.0  ;;  %v6837_v6 = vld [vmem:[#allocation45_spill] sm:$0xff] }
 0x350   :  { %v3175_v0 = vpop.f32.mrf.mxu0  ;;  %v2566_v3 = vadd.f32 %v2565_v19, %v6836_v32  ;;  %v2587_v30 = vadd.f32 %v5153_v45, %v6837_v6 }
 0x351   :  { %v3357_v21 = vadd.f32 %v6322_v1, %v3286_v16  ;;  %v3284_v4 = vadd.f32 %v3175_v0, %v2534_v63  ;;  %5287 = vmatprep.mubr.bf16.mxu1 %v3456_v38  ;;  %v3418_v29 = vmax.f32 %v3354_v53, 0.0  ;;  %v5154_v38 = vpop.f32.mrf.mxu1  ;;  %v6838_v0 = vld [vmem:[#allocation46_spill] sm:$0xff] }
 0x352   :  { %v5217_v28 = vpop.f32.mrf.mxu0  ;;  %5288 = vmatmul.mubr.bf16.gmra.mxu1 %v3457_v43  ;;  %v2579_v20 = vadd.f32 %v2578_v61, %v6838_v0  ;;  %v5491_v0 = vmov 1966171168  }
 0x353   :  { %v3421_v40 = vmax.f32 %v3357_v21, 0.0  ;;  %v3355_v54 = vadd.f32 %v6322_v1, %v3284_v4  ;;  %v3289_v5 = vadd.f32 %v5217_v28, %v2555_v11  ;;  %v2581_v14 = vpop.f32.mrf.mxu1 }
 0x354   :  { %v3188_v41 = vpop.f32.mrf.mxu0 }
 0x355   :  { %v3459_v37 = vpack.c.bf16 %v3421_v40, %v3420_v9  ;;  %v3419_v44 = vmax.f32 %v3355_v54, 0.0  ;;  %v3287_v31 = vadd.f32 %v3188_v41, %v2547_v51  ;;  %v3360_v42 = vadd.f32 %v6322_v1, %v3289_v5  ;;  %v6839_v51 = vld [vmem:[#allocation48_spill] sm:$0xff]  ;;  %v6840_v41 = vld [vmem:[#allocation49_spill] sm:$0xff] }
 0x356   :  { %v5218_v18 = vpop.f32.mrf.mxu0  ;;  %v2590_v2 = vadd.f32 %v5154_v38, %v6839_v51  ;;  %v4529_v51 = vld.sshfl [vmem:[%s6749_s11] sm:$0x33 pattern:$0x75316420] }
 0x357   :  { %v3290_v55 = vadd.f32 %v5218_v18, %v2558_v15  ;;  %v3458_v23 = vpack.c.bf16 %v3419_v44, %v3418_v29  ;;  %v3358_v56 = vadd.f32 %v6322_v1, %v3287_v31  ;;  %v3424_v62 = vmax.f32 %v3360_v42, 0.0 }
 0x358   :  { %v3191_v57 = vpop.f32.mrf.mxu0  ;;  %v2582_v29 = vadd.f32 %v2581_v14, %v6840_v41 }
 0x359   :  { %v3361_v24 = vadd.f32 %v6322_v1, %v3290_v55  ;;  %v3288_v39 = vadd.f32 %v3191_v57, %v2550_v49  ;;  %5291 = vmatprep.mubr.bf16.mxu1 %v3458_v23  ;;  %v3422_v25 = vmax.f32 %v3358_v56, 0.0 }
 0x35a   :  { %v5221_v52 = vpop.f32.mrf.mxu0  ;;  %5292 = vmatmul.mubr.bf16.gmra.mxu1 %v3459_v37 }
 0x35b   :  { %v3425_v17 = vmax.f32 %v3361_v24, 0.0  ;;  %v3359_v60 = vadd.f32 %v6322_v1, %v3288_v39  ;;  %v3293_v10 = vadd.f32 %v5221_v52, %v2571_v34  ;;  %v6547_v39 = vld [vmem:[%s6746_s8] ss:$0 sm:$0xff] }
 0x35c   :  { %v3204_v58 = vpop.f32.mrf.mxu0 }
 0x35d   :  { %v3461_v50 = vpack.c.bf16 %v3425_v17, %v3424_v62  ;;  %v3423_v35 = vmax.f32 %v3359_v60, 0.0  ;;  %v3291_v46 = vadd.f32 %v3204_v58, %v2563_v8  ;;  %v3364_v43 = vadd.f32 %v6322_v1, %v3293_v10 }
 0x35e   :  { %v5222_v26 = vpop.f32.mrf.mxu0 }
 0x35f   :  { %v3294_v22 = vadd.f32 %v5222_v26, %v2574_v13  ;;  %v3460_v36 = vpack.c.bf16 %v3423_v35, %v3422_v25  ;;  %v3362_v63 = vadd.f32 %v6322_v1, %v3291_v46  ;;  %v3428_v53 = vmax.f32 %v3364_v43, 0.0 }
 0x360   :  { %v3207_v48 = vpop.f32.mrf.mxu0 }
 0x361   :  { %v3365_v47 = vadd.f32 %v6322_v1, %v3294_v22  ;;  %v3292_v16 = vadd.f32 %v3207_v48, %v2566_v3  ;;  %5295 = vmatprep.mubr.bf16.mxu1 %v3460_v36  ;;  %v3426_v9 = vmax.f32 %v3362_v63, 0.0 }
 0x362   :  { %v5225_v11 = vpop.f32.mrf.mxu0  ;;  %5296 = vmatmul.mubr.bf16.gmra.mxu1 %v3461_v50 }
 0x363   :  { %v3429_v21 = vmax.f32 %v3365_v47, 0.0  ;;  %v3363_v4 = vadd.f32 %v6322_v1, %v3292_v16  ;;  %v3297_v33 = vadd.f32 %v5225_v11, %v2587_v30  ;;  %v3935_v11 = vlaneseq }
 0x364   :  { %v3220_v28 = vpop.f32.mrf.mxu0 }
 0x365   :  { %v3463_v40 = vpack.c.bf16 %v3429_v21, %v3428_v53  ;;  %v3427_v54 = vmax.f32 %v3363_v4, 0.0  ;;  %v3295_v5 = vadd.f32 %v3220_v28, %v2579_v20  ;;  %v3368_v37 = vadd.f32 %v6322_v1, %v3297_v33 }
 0x366   :  { %v5226_v15 = vpop.f32.mrf.mxu0  ;;  %v3933_v20 = vunpack.c.l.s4 %v5491_v0  ;;  %v3936_v4 = vshrl.u32 %v3935_v11, 7 }
 0x367   :  { %v3298_v44 = vadd.f32 %v5226_v15, %v2590_v2  ;;  %v3462_v31 = vpack.c.bf16 %v3427_v54, %v3426_v9  ;;  %v3366_v18 = vadd.f32 %v6322_v1, %v3295_v5  ;;  %v3432_v42 = vmax.f32 %v3368_v37, 0.0 }
 0x368   :  { %v3223_v19 = vpop.f32.mrf.mxu0  ;;  %v3934_v21 = vunpack.c.0.s8 %v3933_v20  ;;  %v3931_v2 = vcombine.high %v4529_v51, %v4529_v51 }
 0x369   :  { %v3369_v7 = vadd.f32 %v6322_v1, %v3298_v44  ;;  %v3296_v49 = vadd.f32 %v3223_v19, %v2582_v29  ;;  %5299 = vmatprep.mubr.bf16.mxu1 %v3462_v31  ;;  %v3430_v57 = vmax.f32 %v3366_v18, 0.0 }
 0x36a   :  { %5300 = vmatmul.mubr.bf16.gmra.mxu1 %v3463_v40  ;;  %v3937_v9 = vsub.s32 %v3934_v21, %v3936_v4 }
 0x36b   :  { %v3433_v55 = vmax.f32 %v3369_v7, 0.0  ;;  %v3367_v23 = vadd.f32 %v6322_v1, %v3296_v49 }
 0x36c   :  { %v6574_v54 = vrot.slane %v4529_v51, %v3937_v9  ;;  %v3945_v5 = vrot.slane %v3931_v2, %v3937_v9 }
 0x36d   :  { %v3465_v27 = vpack.c.bf16 %v3433_v55, %v3432_v42  ;;  %v3431_v34 = vmax.f32 %v3367_v23, 0.0 }
 0x36e   :  { %3984 = vmatprep.mubr.bf16.mxu0 %v3945_v5  ;;  %v3947_v41 = vcombine.high %v3945_v5, %v3945_v5 }
 0x36f   :  { %v3464_v56 = vpack.c.bf16 %v3431_v34, %v3430_v57 }
 0x371   :  { %5303 = vmatprep.mubr.bf16.mxu1 %v3464_v56 }
 0x372   :  { %5304 = vmatmul.mubr.bf16.gmra.mxu1 %v3465_v27 }
 0x373   :  { %4024 = vmatprep.mubr.bf16.mxu1 %v3947_v41 }
 0x3ba   :  { %v5245_v24 = vpop.f32.mrf.mxu1 }
 0x3bb   :  { %v3580_v12 = vadd.f32 %v5245_v24, %v6547_v39 }
 0x3bc   :  { %v3571_v45 = vpop.f32.mrf.mxu1 }
 0x3bd   :  { %v3572_v52 = vadd.f32 %v6547_v39, %v3571_v45  ;;  %v3828_v17 = vmax.f32 %v3580_v12, 0.0 }
 0x3be   :  { %v5246_v8 = vpop.f32.mrf.mxu1 }
 0x3bf   :  { %v3583_v1 = vadd.f32 %v5246_v8, %v6547_v39  ;;  %v3826_v13 = vmax.f32 %v3572_v52, 0.0 }
 0x3c0   :  { %v3574_v62 = vpop.f32.mrf.mxu1 }
 0x3c1   :  { %v3829_v60 = vmax.f32 %v3583_v1, 0.0  ;;  %v3575_v10 = vadd.f32 %v6547_v39, %v3574_v62 }
 0x3c2   :  { %v5249_v59 = vpop.f32.mrf.mxu1 }
 0x3c3   :  { %v6553_v58 = vpack.c.bf16 %v3829_v60, %v3828_v17  ;;  %v3827_v25 = vmax.f32 %v3575_v10, 0.0  ;;  %v3596_v46 = vadd.f32 %v5249_v59, %v6547_v39 }
 0x3c4   :  { %v3587_v50 = vpop.f32.mrf.mxu1 }
 0x3c5   :  { %v6555_v35 = vpack.c.bf16 %v3827_v25, %v3826_v13  ;;  %v3588_v26 = vadd.f32 %v6547_v39, %v3587_v50  ;;  %v3832_v43 = vmax.f32 %v3596_v46, 0.0 }
 0x3c6   :  { %v5250_v61 = vpop.f32.mrf.mxu1 }
 0x3c7   :  { %v3599_v32 = vadd.f32 %v5250_v61, %v6547_v39  ;;  %v3830_v6 = vmax.f32 %v3588_v26, 0.0 }
 0x3c8   :  { %v3590_v3 = vpop.f32.mrf.mxu1 }
 0x3c9   :  { %v3833_v22 = vmax.f32 %v3599_v32, 0.0  ;;  %v3591_v36 = vadd.f32 %v6547_v39, %v3590_v3 }
 0x3ca   :  { %v6561_v48 = vpop.f32.mrf.mxu1 }
 0x3cb   :  { %v6563_v30 = vpack.c.bf16 %v3833_v22, %v3832_v43  ;;  %v3831_v63 = vmax.f32 %v3591_v36, 0.0  ;;  %v3612_v11 = vadd.f32 %v6561_v48, %v6547_v39 }
 0x3cc   :  { %v6565_v47 = vpop.f32.mrf.mxu1 }
 0x3cd   :  { %v6567_v16 = vpack.c.bf16 %v3831_v63, %v3830_v6 }
 0x3ce   :  { %v5254_v38 = vpop.f32.mrf.mxu1 }
 0x3cf   :  { %v3615_v61 = vadd.f32 %v5254_v38, %v6547_v39 }
 0x3d0   :  { %v6569_v53 = vpop.f32.mrf.mxu1 }
 0x3d1   :  { %v3837_v38 = vmax.f32 %v3615_v61, 0.0  ;;  %v3607_v9 = vadd.f32 %v6547_v39, %v6569_v53 }
 0x3d2   :  { %v5257_v33 = vpop.f32.mrf.mxu1 }
 0x3d3   :  { %v3628_v24 = vadd.f32 %v5257_v33, %v6547_v39 }
 0x3d4   :  { %v3619_v28 = vpop.f32.mrf.mxu1 }
 0x3d5   :  { %v3840_v13 = vmax.f32 %v3628_v24, 0.0  ;;  %v3620_v25 = vadd.f32 %v6547_v39, %v3619_v28 }
 0x3d6   :  { %v5258_v40 = vpop.f32.mrf.mxu1 }
 0x3d7   :  { %v3631_v27 = vadd.f32 %v5258_v40, %v6547_v39  ;;  %v3838_v21 = vmax.f32 %v3620_v25, 0.0 }
 0x3d8   :  { %v3622_v14 = vpop.f32.mrf.mxu1 }
 0x3d9   :  { %v3841_v52 = vmax.f32 %v3631_v27, 0.0  ;;  %v3623_v1 = vadd.f32 %v6547_v39, %v3622_v14 }
 0x3da   :  { %v6576_v15 = vpop.f32.mrf.mxu1 }
 0x3db   :  { %v3897_v43 = vpack.c.bf16 %v3841_v52, %v3840_v13  ;;  %v3839_v22 = vmax.f32 %v3623_v1, 0.0 }
 0x3dc   :  { %v6578_v29 = vpop.f32.mrf.mxu1 }
 0x3dd   :  { %v3896_v40 = vpack.c.bf16 %v3839_v22, %v3838_v21  ;;  %v3644_v22 = vadd.f32 %v6576_v15, %v6547_v39 }
 0x3de   :  { %v6580_v37 = vpop.f32.mrf.mxu1 }
 0x3df   :  { %v3844_v15 = vmax.f32 %v3644_v22, 0.0 }
 0x3e0   :  { %v6582_v44 = vpop.f32.mrf.mxu1 }
 0x3e2   :  { %v5265_v31 = vpop.f32.mrf.mxu1 }
 0x3e3   :  { %v3660_v27 = vadd.f32 %v5265_v31, %v6547_v39 }
 0x3e4   :  { %v6584_v19 = vpop.f32.mrf.mxu1 }
 0x3e6   :  { %v5266_v18 = vpop.f32.mrf.mxu1 }
 0x3e7   :  { %v3663_v5 = vadd.f32 %v5266_v18, %v6547_v39 }
 0x3e8   :  { %v6586_v7 = vpop.f32.mrf.mxu1 }
 0x3e9   :  { %v3655_v1 = vadd.f32 %v6547_v39, %v6586_v7  ;;  %v3647_v7 = vadd.f32 %v6580_v37, %v6547_v39 }
 0x3ea   :  { %v5269_v49 = vpop.f32.mrf.mxu1 }
 0x3eb   :  { %v3676_v50 = vadd.f32 %v5269_v49, %v6547_v39 }
 0x3ec   :  { %v3667_v42 = vpop.f32.mrf.mxu1 }
 0x3ed   :  { %v3852_v4 = vmax.f32 %v3676_v50, 0.0  ;;  %v3668_v51 = vadd.f32 %v6547_v39, %v3667_v42  ;;  %v3604_v42 = vadd.f32 %v6547_v39, %v6565_v47 }
 0x3ee   :  { %v5270_v55 = vpop.f32.mrf.mxu1 }
 0x3ef   :  { %v3679_v62 = vadd.f32 %v5270_v55, %v6547_v39  ;;  %v3834_v31 = vmax.f32 %v3604_v42, 0.0 }
 0x3f0   :  { %v3670_v23 = vpop.f32.mrf.mxu1 }
 0x3f1   :  { %v3853_v36 = vmax.f32 %v3679_v62, 0.0  ;;  %v3671_v63 = vadd.f32 %v6547_v39, %v3670_v23 }
 0x3f2   :  { %v5273_v57 = vpop.f32.mrf.mxu1 }
 0x3f3   :  { %v3692_v56 = vadd.f32 %v5273_v57, %v6547_v39  ;;  %v3903_v14 = vpack.c.bf16 %v3853_v36, %v3852_v4  ;;  %v3851_v41 = vmax.f32 %v3671_v63, 0.0  ;;  %v3836_v57 = vmax.f32 %v3612_v11, 0.0 }
 0x3f4   :  { %v3683_v34 = vpop.f32.mrf.mxu1  ;;  %v3639_v11 = vadd.f32 %v6547_v39, %v6582_v44 }
 0x3f5   :  { %v3684_v12 = vadd.f32 %v6547_v39, %v3683_v34  ;;  %v3856_v60 = vmax.f32 %v3692_v56, 0.0  ;;  %v3850_v56 = vmax.f32 %v3668_v51, 0.0 }
 0x3f6   :  { %v5274_v45 = vpop.f32.mrf.mxu1 }
 0x3f7   :  { %v3695_v8 = vadd.f32 %v5274_v45, %v6547_v39  ;;  %v3854_v26 = vmax.f32 %v3684_v12, 0.0  ;;  %v3895_v45 = vpack.c.bf16 %v3837_v38, %v3836_v57  ;;  %v3835_v12 = vmax.f32 %v3607_v9, 0.0 }
 0x3f8   :  { %v3686_v17 = vpop.f32.mrf.mxu1  ;;  %v3902_v62 = vpack.c.bf16 %v3851_v41, %v3850_v56  ;;  %v3636_v38 = vadd.f32 %v6547_v39, %v6578_v29  ;;  %v5459_v29 = vld [vmem:[%s6747_s9 + $0x38] sm:$0xff]   ;;  %v5492_v41 = vmov 0.0  }
 0x3f9   :  { %v3857_v10 = vmax.f32 %v3695_v8, 0.0  ;;  %v3687_v59 = vadd.f32 %v6547_v39, %v3686_v17  ;;  %v3849_v8 = vmax.f32 %v3663_v5, 0.0  ;;  %v3894_v50 = vpack.c.bf16 %v3835_v12, %v3834_v31 }
 0x3fa   :  { %v5277_v46 = vpop.f32.mrf.mxu1  ;;  %v3842_v44 = vmax.f32 %v3636_v38, 0.0 }
 0x3fb   :  { %v3905_v32 = vpack.c.bf16 %v3857_v10, %v3856_v60  ;;  %v3855_v3 = vmax.f32 %v3687_v59, 0.0  ;;  %v3708_v20 = vadd.f32 %v5277_v46, %v6547_v39  ;;  %v3848_v60 = vmax.f32 %v3660_v27, 0.0  ;;  %v5462_v27 = vld [vmem:[%s6747_s9 + $0x20] sm:$0xff]  }
 0x3fc   :  { %v3699_v6 = vpop.f32.mrf.mxu1  ;;  %v3652_v59 = vadd.f32 %v6547_v39, %v6584_v19 }
 0x3fd   :  { %v3904_v0 = vpack.c.bf16 %v3855_v3, %v3854_v26  ;;  %4820 = vmatprep.subr.bf16.mxu0 %v3905_v32  ;;  %v3700_v2 = vadd.f32 %v6547_v39, %v3699_v6  ;;  %v3860_v49 = vmax.f32 %v3708_v20, 0.0  ;;  %v3901_v46 = vpack.c.bf16 %v3849_v8, %v3848_v60 }
 0x3fe   :  { %v5278_v33 = vpop.f32.mrf.mxu1  ;;  %4821 = vmatpush3.bf16.msra.mxu0 %v3897_v43  ;;  %v3847_v26 = vmax.f32 %v3655_v1, 0.0  ;;  %v3846_v36 = vmax.f32 %v3652_v59, 0.0  ;;  %v3845_v20 = vmax.f32 %v3647_v7, 0.0 }
 0x3ff   :  { %v3711_v28 = vadd.f32 %v5278_v33, %v6547_v39  ;;  %4822 = vmatprep.subr.bf16.mxu0 %v3904_v0  ;;  %v3858_v53 = vmax.f32 %v3700_v2, 0.0 }
 0x400   :  { %v3702_v48 = vpop.f32.mrf.mxu1  ;;  %v3900_v21 = vpack.c.bf16 %v3847_v26, %v3846_v36  ;;  %v3899_v2 = vpack.c.bf16 %v3845_v20, %v3844_v15 }
 0x401   :  { %v3861_v55 = vmax.f32 %v3711_v28, 0.0  ;;  %v3703_v23 = vadd.f32 %v6547_v39, %v3702_v48  ;;  %v3843_v28 = vmax.f32 %v3639_v11, 0.0 }
 0x402   :  { %v5281_v34 = vpop.f32.mrf.mxu1  ;;  %4823 = vmatpush3.bf16.msra.mxu0 %v3896_v40 }
 0x403   :  { %v6613_v24 = vpack.c.bf16 %v3861_v55, %v3860_v49  ;;  %v3859_v18 = vmax.f32 %v3703_v23, 0.0  ;;  %4824 = vmatprep.subr.bf16.mxu0 %v3903_v14  ;;  %v3724_v47 = vadd.f32 %v5281_v34, %v6547_v39  ;;  %v3898_v5 = vpack.c.bf16 %v3843_v28, %v3842_v44  ;;  %v5461_v23 = vld [vmem:[%s6747_s9 + $0x28] sm:$0xff]  }
 0x404   :  { %v3715_v52 = vpop.f32.mrf.mxu1 }
 0x405   :  { %v6617_v17 = vpack.c.bf16 %v3859_v18, %v3858_v53  ;;  %v3716_v13 = vadd.f32 %v6547_v39, %v3715_v52  ;;  %v3864_v32 = vmax.f32 %v3724_v47, 0.0  ;;  %v5463_v53 = vld [vmem:[%s6747_s9 + $0x18] sm:$0xff]  }
 0x406   :  { %v5282_v10 = vpop.f32.mrf.mxu1  ;;  %4825 = vmatpush3.bf16.msra.mxu0 %v3895_v45 }
 0x407   :  { %v3727_v25 = vadd.f32 %v5282_v10, %v6547_v39  ;;  %4826 = vmatprep.subr.bf16.mxu0 %v3902_v62  ;;  %v3862_v6 = vmax.f32 %v3716_v13, 0.0 }
 0x408   :  { %v3718_v61 = vpop.f32.mrf.mxu1 }
 0x409   :  { %v3865_v3 = vmax.f32 %v3727_v25, 0.0  ;;  %v3719_v43 = vadd.f32 %v6547_v39, %v3718_v61 }
 0x40a   :  { %v6629_v19 = vpop.f32.mrf.mxu1  ;;  %4827 = vmatpush3.bf16.msra.mxu0 %v3894_v50 }
 0x40b   :  { %v6631_v63 = vpack.c.bf16 %v3865_v3, %v3864_v32  ;;  %v3863_v0 = vmax.f32 %v3719_v43, 0.0  ;;  %4828 = vmatprep.subr.bf16.mxu0 %v3901_v46  ;;  %v3740_v38 = vadd.f32 %v6629_v19, %v6547_v39 }
 0x40c   :  { %v6633_v37 = vpop.f32.mrf.mxu1 }
 0x40d   :  { %v6637_v4 = vpack.c.bf16 %v3863_v0, %v3862_v6 }
 0x40e   :  { %v6639_v33 = vpop.f32.mrf.mxu1  ;;  %4829 = vmatpush3.bf16.msra.mxu0 %v6563_v30 }
 0x40f   :  { %4830 = vmatprep.subr.bf16.mxu0 %v3900_v21  ;;  %v3743_v6 = vadd.f32 %v6639_v33, %v6547_v39 }
 0x410   :  { %v6644_v51 = vpop.f32.mrf.mxu1 }
 0x411   :  { %v3869_v44 = vmax.f32 %v3743_v6, 0.0  ;;  %v3735_v33 = vadd.f32 %v6547_v39, %v6644_v51 }
 0x412   :  { %v5289_v9 = vpop.f32.mrf.mxu1  ;;  %4831 = vmatpush3.bf16.msra.mxu0 %v6567_v16 }
 0x413   :  { %4832 = vmatprep.subr.bf16.mxu0 %v3899_v2  ;;  %v3756_v47 = vadd.f32 %v5289_v9, %v6547_v39 }
 0x414   :  { %v3747_v40 = vpop.f32.mrf.mxu1 }
 0x415   :  { %v3872_v26 = vmax.f32 %v3756_v47, 0.0  ;;  %v3748_v32 = vadd.f32 %v6547_v39, %v3747_v40 }
 0x416   :  { %v5290_v14 = vpop.f32.mrf.mxu1  ;;  %4833 = vmatpush3.bf16.msra.mxu0 %v6553_v58  ;;  %v5460_v58 = vld [vmem:[%s6747_s9 + $0x30] sm:$0xff]  }
 0x417   :  { %4834 = vmatprep.subr.bf16.mxu0 %v3898_v5  ;;  %v3759_v52 = vadd.f32 %v5290_v14, %v6547_v39  ;;  %v3870_v2 = vmax.f32 %v3748_v32, 0.0 }
 0x418   :  { %v3750_v30 = vpop.f32.mrf.mxu1 }
 0x419   :  { %v3873_v59 = vmax.f32 %v3759_v52, 0.0  ;;  %v3751_v13 = vadd.f32 %v6547_v39, %v3750_v30 }
 0x41a   :  { %v6648_v48 = vpop.f32.mrf.mxu1  ;;  %4835 = vmatpush3.bf16.msra.mxu0 %v6555_v35 }
 0x41b   :  { %5307 = vmatprep.subr.bf16.mxu0 %v5492_v41  ;;  %v3913_v0 = vpack.c.bf16 %v3873_v59, %v3872_v26  ;;  %v3871_v20 = vmax.f32 %v3751_v13, 0.0 }
 0x41c   :  { %v6655_v16 = vpop.f32.mrf.mxu1 }
 0x41d   :  { %3985 = vmatmul.mubr.bf16.vlgmr.msra.gmra.mxu0 %v6574_v54  ;;  %v3912_v40 = vpack.c.bf16 %v3871_v20, %v3870_v2 }
 0x41e   :  { %v6658_v49 = vpop.f32.mrf.mxu1  ;;  %5308 = vmatpush3.bf16.msra.mxu0 %v5459_v29  ;;  %v3868_v29 = vmax.f32 %v3740_v38, 0.0  ;;  %5323 = vmatprep.mubr.msk.bf16.mxu0 %vm5493_vm3, %v5492_v41 }
 0x41f   :  { %5309 = vmatprep.subr.bf16.mxu0 %v5492_v41 }
 0x420   :  { %v6664_v35 = vpop.f32.mrf.mxu1 }
 0x421   :  { %v3767_v47 = vadd.f32 %v6547_v39, %v6664_v35  ;;  %v3946_v35 = vcombine.high %v6574_v54, %v6574_v54  ;;  %v5466_v54 = vld [vmem:[%s6747_s9] sm:$0xff]  }
 0x422   :  { %v5297_v55 = vpop.f32.mrf.mxu1  ;;  %5310 = vmatpush3.bf16.msra.mxu0 %v5460_v58  ;;  %v3732_v58 = vadd.f32 %v6547_v39, %v6633_v37  ;;  %v3775_v37 = vadd.f32 %v6658_v49, %v6547_v39 }
 0x423   :  { %5311 = vmatprep.subr.bf16.mxu0 %v5492_v41  ;;  %v3788_v19 = vadd.f32 %v5297_v55, %v6547_v39 }
 0x424   :  { %v6670_v57 = vpop.f32.mrf.mxu1 }
 0x426   :  { %v5298_v42 = vpop.f32.mrf.mxu1  ;;  %5312 = vmatpush3.bf16.msra.mxu0 %v5461_v23 }
 0x427   :  { %5313 = vmatprep.subr.bf16.mxu0 %v5492_v41  ;;  %v3791_v5 = vadd.f32 %v5298_v42, %v6547_v39  ;;  %v3880_v42 = vmax.f32 %v3788_v19, 0.0 }
 0x428   :  { %v3782_v34 = vpop.f32.mrf.mxu1 }
 0x42a   :  { %v5301_v56 = vpop.f32.mrf.mxu1  ;;  %5314 = vmatpush3.bf16.msra.mxu0 %v5462_v27  ;;  %v3911_v27 = vpack.c.bf16 %v3869_v44, %v3868_v29 }
 0x42b   :  { %5315 = vmatprep.subr.bf16.mxu0 %v5492_v41  ;;  %v3804_v3 = vadd.f32 %v5301_v56, %v6547_v39  ;;  %v3867_v56 = vmax.f32 %v3735_v33, 0.0 }
 0x42c   :  { %v3795_v18 = vpop.f32.mrf.mxu1 }
 0x42d   :  { %v3884_v28 = vmax.f32 %v3804_v3, 0.0  ;;  %v3796_v9 = vadd.f32 %v6547_v39, %v3795_v18  ;;  %v3783_v18 = vadd.f32 %v6547_v39, %v3782_v34  ;;  %v3877_v34 = vmax.f32 %v3775_v37, 0.0 }
 0x42e   :  { %v5302_v45 = vpop.f32.mrf.mxu1  ;;  %5316 = vmatpush3.bf16.msra.mxu0 %v5463_v53  ;;  %v3881_v53 = vmax.f32 %v3791_v5, 0.0 }
 0x42f   :  { %5317 = vmatprep.subr.bf16.mxu0 %v5492_v41  ;;  %v3807_v50 = vadd.f32 %v5302_v45, %v6547_v39  ;;  %v3882_v23 = vmax.f32 %v3796_v9, 0.0  ;;  %v3866_v45 = vmax.f32 %v3732_v58, 0.0  ;;  %v3879_v52 = vmax.f32 %v3783_v18, 0.0 }
 0x430   :  { %v3798_v12 = vpop.f32.mrf.mxu1  ;;  %v3917_v55 = vpack.c.bf16 %v3881_v53, %v3880_v42 }
 0x431   :  { %v3885_v11 = vmax.f32 %v3807_v50, 0.0  ;;  %v3799_v21 = vadd.f32 %v6547_v39, %v3798_v12  ;;  %v3780_v12 = vadd.f32 %v6547_v39, %v6670_v57 }
 0x432   :  { %v5305_v8 = vpop.f32.mrf.mxu1 }
 0x433   :  { %v3820_v62 = vadd.f32 %v5305_v8, %v6547_v39  ;;  %v3919_v14 = vpack.c.bf16 %v3885_v11, %v3884_v28  ;;  %v3883_v30 = vmax.f32 %v3799_v21, 0.0  ;;  %v3910_v8 = vpack.c.bf16 %v3867_v56, %v3866_v45 }
 0x434   :  { %v3811_v1 = vpop.f32.mrf.mxu1 }
 0x435   :  { %v3812_v60 = vadd.f32 %v6547_v39, %v3811_v1  ;;  %v3888_v7 = vmax.f32 %v3820_v62, 0.0  ;;  %v3918_v51 = vpack.c.bf16 %v3883_v30, %v3882_v23  ;;  %v3772_v1 = vadd.f32 %v6648_v48, %v6547_v39 }
 0x436   :  { %v5306_v31 = vpop.f32.mrf.mxu1  ;;  %v3878_v62 = vmax.f32 %v3780_v12, 0.0 }
 0x437   :  { %v3823_v10 = vadd.f32 %v5306_v31, %v6547_v39  ;;  %v3886_v43 = vmax.f32 %v3812_v60, 0.0  ;;  %v3876_v57 = vmax.f32 %v3772_v1, 0.0  ;;  %v3764_v60 = vadd.f32 %v6547_v39, %v6655_v16 }
 0x438   :  { %v3814_v25 = vpop.f32.mrf.mxu1  ;;  %v3916_v31 = vpack.c.bf16 %v3879_v52, %v3878_v62 }
 0x439   :  { %v3889_v46 = vmax.f32 %v3823_v10, 0.0  ;;  %v3815_v61 = vadd.f32 %v6547_v39, %v3814_v25  ;;  %v3915_v49 = vpack.c.bf16 %v3877_v34, %v3876_v57  ;;  %v3875_v10 = vmax.f32 %v3767_v47, 0.0  ;;  %v5464_v39 = vld [vmem:[%s6747_s9 + $0x10] sm:$0xff]  }
 0x43a   :  { %v3874_v59 = vmax.f32 %v3764_v60, 0.0  ;;  %5318 = vmatpush3.bf16.msra.mxu0 %v5464_v39 }
 0x43b   :  { %v3921_v22 = vpack.c.bf16 %v3889_v46, %v3888_v7  ;;  %v3887_v36 = vmax.f32 %v3815_v61, 0.0  ;;  %5319 = vmatprep.subr.bf16.mxu0 %v5492_v41 }
 0x43c   :  { %v3914_v48 = vpack.c.bf16 %v3875_v10, %v3874_v59 }
 0x43d   :  { %v3920_v15 = vpack.c.bf16 %v3887_v36, %v3886_v43  ;;  %4842 = vmatprep.subr.bf16.mxu1 %v3921_v22  ;;  %v4530_v43 = vld [vmem:[%s6748_s10] ss:$0 sm:$0xff] }
 0x43e   :  { %4843 = vmatpush3.bf16.msra.mxu1 %v3913_v0 }
 0x43f   :  { %4844 = vmatprep.subr.bf16.mxu1 %v3920_v15 }
 0x442   :  { %4845 = vmatpush3.bf16.msra.mxu1 %v3912_v40 }
 0x443   :  { %4846 = vmatprep.subr.bf16.mxu1 %v3919_v14 }
 0x446   :  { %4847 = vmatpush3.bf16.msra.mxu1 %v3911_v27 }
 0x447   :  { %4848 = vmatprep.subr.bf16.mxu1 %v3918_v51 }
 0x44a   :  { %4849 = vmatpush3.bf16.msra.mxu1 %v3910_v8 }
 0x44b   :  { %4850 = vmatprep.subr.bf16.mxu1 %v3917_v55 }
 0x44e   :  { %4851 = vmatpush3.bf16.msra.mxu1 %v6631_v63  ;;  %v5465_v63 = vld [vmem:[%s6747_s9 + $0x8] sm:$0xff]  }
 0x44f   :  { %4852 = vmatprep.subr.bf16.mxu1 %v3916_v31  ;;  %5320 = vmatpush3.bf16.msra.mxu0 %v5465_v63 }
 0x450   :  { %5321 = vmatprep.subr.bf16.mxu0 %v5492_v41 }
 0x452   :  { %4853 = vmatpush3.bf16.msra.mxu1 %v6637_v4 }
 0x453   :  { %4854 = vmatprep.subr.bf16.mxu1 %v3915_v49  ;;  %5322 = vmatpush3.bf16.msra.mxu0 %v5466_v54 }
 0x456   :  { %4855 = vmatpush3.bf16.msra.mxu1 %v6613_v24 }
 0x457   :  { %4856 = vmatprep.subr.bf16.mxu1 %v3914_v48 }
 0x45a   :  { %4857 = vmatpush3.bf16.msra.mxu1 %v6617_v17 }
 0x45d   :  { %4025 = vmatmul.mubr.bf16.vlgmr.msra.gmra.mxu1 %v3946_v35 }
 0x4dd   :  { %v4836_v24 = vpop.f32.mrf.mxu0 }
 0x4df   :  { %v4837_v17 = vpop.f32.mrf.mxu0 }
 0x4e0   :  { %v4838_v4 = vadd.f32 %v4837_v17, %v4836_v24 }
 0x4e1   :  { %v4839_v16 = vpop.f32.mrf.mxu0 }
 0x4e3   :  { %v4840_v13 = vpop.f32.mrf.mxu0 }
 0x51d   :  { %v4858_v25 = vpop.f32.mrf.mxu1 }
 0x51f   :  { %v4859_v50 = vpop.f32.mrf.mxu1 }
 0x520   :  { %v4860_v7 = vadd.f32 %v4859_v50, %v4858_v25 }
 0x521   :  { %v4861_v46 = vpop.f32.mrf.mxu1 }
 0x522   :  { %v4027_v61 = vadd.f32 %v4860_v7, %v4838_v4 }
 0x523   :  { %v4862_v26 = vpop.f32.mrf.mxu1 }
 0x524   :  { %v4032_v32 = vmul.f32 0.005, %v4027_v61 }
 0x526   :  { %v4033_v3 = vpack.c.bf16 %v4032_v32, %v4032_v32 }
 0x528   :  { %5324 = vmatmul.mubr.bf16.vlgmr.msra.gmra.mxu0 %v4033_v3 }
 0x5e8   :  { %v4139_v41 = vpop.f32.mrf.mxu0 }
 0x5e9   :  { %v4140_v22 = vadd.f32 %v4530_v43, %v4139_v41 }
 0x5ea   :  { %v5325_v36 = vpop.f32.mrf.mxu0 }
 0x5eb   :  { %4145 = vst [vmem:[#allocation3] sm:$0x3] %v4140_v22 }
 0x5ec   :  { %v4142_v6 = vpop.f32.mrf.mxu0 }
 0x5ed   :  { %5479 = shalt.err (!%p5476_p4)
}
 0x5ee   :  { %4155 = dma.vmem_to_hbm [thread:$0]  %s4153_s14, 32, %s6750_s12, [#allocation4]   ;;  %v5326_v0 = vpop.f32.mrf.mxu0 }
 0x5ef   :  { %5488 = dma.done.wait [#allocation4], 32  }
 0x5f0   :  { %5489 = vsyncadd [#allocation4], 4294967264 }
 0x5f1   :  { %4159 = vsyncpa [#allocation4], 1 }

</bundles_post_ra>
